<compile_context>
chip_gen: v6e
topology: v6e:2x2x1
jax: 0.10.0
libtpu: 0.0.40
codegen_flags: <defaults>
</compile_context>

<pallas_src>
import math
from functools import partial

import jax
import jax.numpy as jnp
import numpy as np
from jax.experimental import pallas as pl
from jax.experimental.pallas import tpu as pltpu


# ----------------------------- in-kernel helpers -----------------------------

def _perm_0213(x):
    """(a, b, c, d) -> (a, c, b, d); lane (last) dim untouched."""
    try:
        return pltpu.einshape("abcd->acbd", x)
    except Exception:                      # einshape unavailable -> plain transpose
        return jnp.transpose(x, (0, 2, 1, 3))


# --------------------------------- the kernel --------------------------------

def qformer_layer_kernel(*refs, num_heads, do_cross, need_weights, compute_dtype):
    refs = list(refs)
    n_out = 1 + (1 if need_weights else 0) + (1 if (need_weights and do_cross) else 0)
    in_refs, out_refs = refs[:-n_out], refs[-n_out:]

    it = iter(in_refs)
    q_ref = next(it)
    if do_cross:
        vl_ref, mask_ref = next(it), next(it)
    ln1_g, ln1_b, w_qkv, b_qkv, w_so, b_so = [next(it) for _ in range(6)]
    if do_cross:
        ln2_g, ln2_b, w_cq, b_cq, w_ckv, b_ckv, w_co, b_co = [next(it) for _ in range(8)]
    ln3_g, ln3_b, w_f1, b_f1, w_f2, b_f2 = [next(it) for _ in range(6)]

    out_ref = out_refs[0]
    sa_ref = out_refs[1] if need_weights else None
    ca_ref = out_refs[2] if (need_weights and do_cross) else None

    NB, Lq, D = q_ref.shape
    H = num_heads
    dh = D // H
    scale = jnp.float32(1.0 / math.sqrt(dh))

    def matmul(a, w_ref, b_ref):
        # Cast operands to the compute dtype (bf16 by default), accumulate f32,
        # add the f32 bias.  Weight is already (in, out) so the contraction is
        # lhs-last vs rhs-first (canonical MXU feed, no in-kernel transpose).
        a = a.astype(w_ref.dtype)
        return jnp.dot(a, w_ref[...], preferred_element_type=jnp.float32) + b_ref[...]

    def layer_norm(x, g_ref, b_ref, eps=1e-5):
        # fused single-pass stats: E[x], E[x^2]
        m = jnp.mean(x, axis=-1, keepdims=True)
        m2 = jnp.mean(x * x, axis=-1, keepdims=True)
        inv = jax.lax.rsqrt(jnp.maximum(m2 - m * m, 0.0) + eps)
        return (x - m) * inv * g_ref[...] + b_ref[...]

    def split_heads(x2d, L):               # (NB*L, D) -> (NB*H, L, dh)
        x4 = x2d.reshape(NB, L, H, dh)
        return _perm_0213(x4).reshape(NB * H, L, dh)

    def merge_heads(xg, L):                # (NB*H, L, dh) -> (NB*L, D)
        x4 = xg.reshape(NB, H, L, dh)
        return _perm_0213(x4).reshape(NB * L, H * dh)

    def attention(q2, k2, v2, L_k, add_mask=None):
        """Head-batched attention on folded operands.

        q2 : (NB*Lq, D) f32 (bias included);  k2, v2 : (NB*L_k, D) f32
        add_mask : optional (NB*H, 1, L_k) additive f32 key mask
        Returns (NB*Lq, D) f32 context and optional (NB, Lq, L_k) head-avg attn.
        """
        qg = split_heads(q2 * scale, Lq).astype(compute_dtype)
        kg = split_heads(k2, L_k).astype(compute_dtype)
        vg = split_heads(v2, L_k).astype(compute_dtype)

        s = jnp.einsum("gqd,gkd->gqk", qg, kg,
                       preferred_element_type=jnp.float32)          # (NB*H, Lq, L_k)
        if add_mask is not None:
            s = s + add_mask                                         # f32 mask
        m = jnp.max(s, axis=-1, keepdims=True)
        e = jnp.exp(s - m)
        p = e / jnp.sum(e, axis=-1, keepdims=True)                   # exact f32 softmax

        ctx = jnp.einsum("gqk,gkd->gqd", p.astype(compute_dtype), vg,
                         preferred_element_type=jnp.float32)         # (NB*H, Lq, dh)
        ctx = merge_heads(ctx, Lq)                                   # (NB*Lq, D)

        attn = None
        if need_weights:
            attn = p.reshape(NB, H, Lq, L_k).sum(axis=1) * jnp.float32(1.0 / H)
        return ctx, attn

    # ---- residual stream stays f32, batch folded into rows ----
    x = q_ref[...].reshape(NB * Lq, D)

    # ---- self attention (pre-norm + residual), fused QKV projection ----
    xn = layer_norm(x, ln1_g, ln1_b)
    qkv = matmul(xn, w_qkv, b_qkv)                                   # (NB*Lq, 3D)
    ctx, sa = attention(qkv[:, :D], qkv[:, D:2 * D], qkv[:, 2 * D:], Lq)
    x = x + matmul(ctx, w_so, b_so)
    if need_weights:
        sa_ref[...] = sa.reshape(NB, 1, Lq * Lq)                     # lane-dense store

    # ---- cross attention (only when layer_idx % cross_attention_freq == 0) ----
    if do_cross:
        Lv = vl_ref.shape[1]
        vl = vl_ref[...].reshape(NB * Lv, D)
        # additive key-padding mask, broadcast over heads -> (NB*H, 1, Lv)
        add_mask = jnp.broadcast_to(mask_ref[...][:, None], (NB, H, 1, Lv))
        add_mask = add_mask.reshape(NB * H, 1, Lv)
        xn = layer_norm(x, ln2_g, ln2_b)
        qc = matmul(xn, w_cq, b_cq)                                  # (NB*Lq, D)
        kv = matmul(vl, w_ckv, b_ckv)                                # (NB*Lv, 2D)
        ctx, ca = attention(qc, kv[:, :D], kv[:, D:], Lv, add_mask)
        x = x + matmul(ctx, w_co, b_co)
        if need_weights:
            ca_ref[...] = ca.reshape(NB, 1, Lq * Lv)                 # lane-dense store

    # ---- feed-forward (pre-norm + residual), exact (erf) GELU in f32 ----
    xn = layer_norm(x, ln3_g, ln3_b)
    h = matmul(xn, w_f1, b_f1)
    h = 0.5 * h * (1.0 + jax.lax.erf(h * jnp.float32(1.0 / math.sqrt(2.0))))
    x = x + matmul(h, w_f2, b_f2)
    out_ref[...] = x.reshape(NB, Lq, D)


# --------------------------------- wrapper ------------------------------------

def _const_spec(arr, single_buffer):
    """Whole-array weight spec, resident across grid steps, single-buffered."""
    index_map = lambda g, _n=arr.ndim: (0,) * _n
    if single_buffer:
        try:
            return pl.BlockSpec(arr.shape, index_map, pipeline_mode=pl.Buffered(1))
        except Exception:
            pass                            # older API without pipeline_mode
    return pl.BlockSpec(arr.shape, index_map)


def _choose_batch_block(B, Lq, Lv, D, H, do_cross, act_budget_bytes=24 << 20):
    """Pick the per-grid-step batch block from a VMEM activation budget."""
    per_item = 4 * Lq * (3 * D + 4 * D + 3 * D)          # qkv + ffn hidden + ctx slabs
    per_item += 4 * H * Lq * Lq                          # self-attn scores
    if do_cross:
        per_item += 4 * (3 * D * Lv) + 4 * H * Lq * Lv   # vl + cross KV + cross scores
    nb = max(1, int(act_budget_bytes // max(per_item, 1)))
    nb = min(nb, max(1, B // 2))            # keep >=2 grid steps (v7x dual TensorCore)
    while B % nb:
        nb -= 1
    return nb


def qformer_layer(query_tokens, vl_tokens, vl_mask, params, *,
                  num_heads=8, layer_idx=0, cross_attention_freq=2,
                  batch_block=None, compute_dtype=jnp.bfloat16,
                  return_attn_weights=True, single_buffer_weights=True,
                  vmem_limit_bytes=48 * 1024 * 1024):
    B, Lq, D = query_tokens.shape
    _, Lv, _ = vl_tokens.shape
    assert D % num_heads == 0
    do_cross = (layer_idx % cross_attention_freq == 0)

    NB = batch_block if batch_block is not None else _choose_batch_block(
        B, Lq, Lv, D, num_heads, do_cross)
    assert B % NB == 0
    grid = (B // NB,)

    f32 = jnp.float32
    cd = compute_dtype

    # One-time XLA-side weight prep: transpose to (in, out), cast to compute dtype.
    wT = lambda w: jnp.asarray(w).T.astype(cd)
    bias = lambda b: jnp.asarray(b).reshape(1, -1).astype(f32)
    gamma = lambda g: jnp.asarray(g).reshape(1, -1).astype(f32)

    weights = [gamma(params["ln1_g"]), gamma(params["ln1_b"]),
               wT(params["sa_w_in"]), bias(params["sa_b_in"]),
               wT(params["sa_w_out"]), bias(params["sa_b_out"])]
    if do_cross:
        ca_w_in = jnp.asarray(params["ca_w_in"])
        ca_b_in = jnp.asarray(params["ca_b_in"]).reshape(1, -1)
        weights += [gamma(params["ln2_g"]), gamma(params["ln2_b"]),
                    wT(ca_w_in[:D]), bias(ca_b_in[:, :D]),          # Q projection
                    wT(ca_w_in[D:]), bias(ca_b_in[:, D:]),          # fused KV projection
                    wT(params["ca_w_out"]), bias(params["ca_b_out"])]
    weights += [gamma(params["ln3_g"]), gamma(params["ln3_b"]),
                wT(params["ff_w1"]), bias(params["ff_b1"]),
                wT(params["ff_w2"]), bias(params["ff_b2"])]

    data = [query_tokens.astype(f32)]
    data_specs = [pl.BlockSpec((NB, Lq, D), lambda g: (g, 0, 0))]
    if do_cross:
        # key_padding_mask = ~vl_mask -> padded keys get -1e30 before softmax.
        # TODO(synk): fully key-masked rows give a uniform softmax here; PyTorch
        # would produce NaN in that degenerate case.
        add_mask = jnp.where(vl_mask, 0.0, -1e30).astype(f32).reshape(B, 1, Lv)
        data += [vl_tokens.astype(f32), add_mask]
        data_specs += [pl.BlockSpec((NB, Lv, D), lambda g: (g, 0, 0)),
                       pl.BlockSpec((NB, 1, Lv), lambda g: (g, 0, 0))]

    out_shape = [jax.ShapeDtypeStruct((B, Lq, D), f32)]
    out_specs = [pl.BlockSpec((NB, Lq, D), lambda g: (g, 0, 0))]
    if return_attn_weights:
        out_shape += [jax.ShapeDtypeStruct((B, 1, Lq * Lq), f32)]
        out_specs += [pl.BlockSpec((NB, 1, Lq * Lq), lambda g: (g, 0, 0))]
        if do_cross:
            out_shape += [jax.ShapeDtypeStruct((B, 1, Lq * Lv), f32)]
            out_specs += [pl.BlockSpec((NB, 1, Lq * Lv), lambda g: (g, 0, 0))]

    in_specs = data_specs + [_const_spec(w, single_buffer_weights) for w in weights]

    kernel = partial(qformer_layer_kernel, num_heads=num_heads, do_cross=do_cross,
                     need_weights=return_attn_weights, compute_dtype=cd)
    res = pl.pallas_call(
        kernel,
        out_shape=tuple(out_shape),
        grid_spec=pltpu.PrefetchScalarGridSpec(
            num_scalar_prefetch=0, grid=grid,
            in_specs=in_specs, out_specs=tuple(out_specs)),
        compiler_params=pltpu.CompilerParams(
            dimension_semantics=("parallel",),
            vmem_limit_bytes=vmem_limit_bytes),
    )(*data, *weights)

    out = res[0]
    sa = ca = None
    if return_attn_weights:
        sa = res[1].reshape(B, Lq, Lq)
        if do_cross:
            ca = res[2].reshape(B, Lq, Lv)
    return out, {"self_attn_weights": sa, "cross_attn_weights": ca}


# ------------------------------ params & reference ----------------------------

def init_params(key, D):
    ks = jax.random.split(key, 10)
    r = lambda k, shape, s=0.1: s * jax.random.normal(k, shape, jnp.float32)
    return {
        "ln1_g": jnp.ones((1, D), jnp.float32), "ln1_b": jnp.zeros((1, D), jnp.float32),
        "sa_w_in": r(ks[0], (3 * D, D)), "sa_b_in": r(ks[1], (1, 3 * D), 0.02),
        "sa_w_out": r(ks[2], (D, D)), "sa_b_out": r(ks[3], (1, D), 0.02),
        "ln2_g": jnp.ones((1, D), jnp.float32), "ln2_b": jnp.zeros((1, D), jnp.float32),
        "ca_w_in": r(ks[4], (3 * D, D)), "ca_b_in": r(ks[5], (1, 3 * D), 0.02),
        "ca_w_out": r(ks[6], (D, D)), "ca_b_out": r(ks[7], (1, D), 0.02),
        "ln3_g": jnp.ones((1, D), jnp.float32), "ln3_b": jnp.zeros((1, D), jnp.float32),
        "ff_w1": r(ks[8], (4 * D, D)), "ff_b1": jnp.zeros((1, 4 * D), jnp.float32),
        "ff_w2": r(ks[9], (D, 4 * D)), "ff_b2": jnp.zeros((1, D), jnp.float32),
    }


def ref_forward(q, vl, vl_mask, params, num_heads, do_cross,
                compute_dtype=jnp.float32):
    """Pure-JAX reference (PyTorch eval-mode semantics) with the same matmul
    dtype policy as the kernel: operands in compute_dtype, f32 accumulation,
    LayerNorm / softmax / GELU / residuals in f32."""
    B, Lq, D = q.shape
    H, dh = num_heads, D // num_heads
    cd = compute_dtype

    def mm(a, w, b):                       # a (..., K) f32, w (O, K) torch layout
        out = jnp.einsum("...k,ok->...o", a.astype(cd), w.astype(cd),
                         preferred_element_type=jnp.float32)
        return out + b[0]

    def ln(x, g, b):
        m = x.mean(-1, keepdims=True)
        v = ((x - m) ** 2).mean(-1, keepdims=True)
        return (x - m) / jnp.sqrt(v + 1e-5) * g[0] + b[0]

    def mha(xq, xkv, wi, bi, wo, bo, add_mask=None):
        Lk = xkv.shape[1]
        qq = mm(xq, wi[:D], bi[:, :D]) * (1.0 / math.sqrt(dh))
        kk = mm(xkv, wi[D:2 * D], bi[:, D:2 * D])
        vv = mm(xkv, wi[2 * D:], bi[:, 2 * D:])
        qq = qq.reshape(B, Lq, H, dh).transpose(0, 2, 1, 3).astype(cd)
        kk = kk.reshape(B, Lk, H, dh).transpose(0, 2, 1, 3).astype(cd)
        vv = vv.reshape(B, Lk, H, dh).transpose(0, 2, 1, 3).astype(cd)
        s = jnp.einsum("bhqd,bhkd->bhqk", qq, kk,
                       preferred_element_type=jnp.float32)
        if add_mask is not None:
            s = s + add_mask[:, None, None, :]
        p = jax.nn.softmax(s, -1)
        o = jnp.einsum("bhqk,bhkd->bhqd", p.astype(cd), vv,
                       preferred_element_type=jnp.float32)
        o = o.transpose(0, 2, 1, 3).reshape(B, Lq, D)
        return mm(o, wo, bo), p.mean(1)

    x = q.astype(jnp.float32)
    xn = ln(x, params["ln1_g"], params["ln1_b"])
    sa_out, sa_w = mha(xn, xn, params["sa_w_in"], params["sa_b_in"],
                       params["sa_w_out"], params["sa_b_out"])
    x = x + sa_out

    ca_w = None
    if do_cross:
        add_mask = jnp.where(vl_mask, 0.0, -1e30).astype(jnp.float32)
        xn = ln(x, params["ln2_g"], params["ln2_b"])
        ca_out, ca_w = mha(xn, vl.astype(jnp.float32),
                           params["ca_w_in"], params["ca_b_in"],
                           params["ca_w_out"], params["ca_b_out"], add_mask)
        x = x + ca_out

    xn = ln(x, params["ln3_g"], params["ln3_b"])
    h = mm(xn, params["ff_w1"], params["ff_b1"])
    h = 0.5 * h * (1.0 + jax.lax.erf(h / math.sqrt(2.0)))
    x = x + mm(h, params["ff_w2"], params["ff_b2"])
    return x, {"self_attn_weights": sa_w, "cross_attn_weights": ca_w}


# ------------------------------------ main -------------------------------------

if __name__ == "__main__":
    B, Lq, Lv, D, H = 2, 8, 16, 64, 8
    key = jax.random.PRNGKey(0)
    kq, kv, kp = jax.random.split(key, 3)

    query_tokens = jax.random.normal(kq, (B, Lq, D), jnp.float32)
    vl_tokens = jax.random.normal(kv, (B, Lv, D), jnp.float32)
    vl_mask = jnp.ones((B, Lv), dtype=bool).at[1, 12:].set(False)
    params = init_params(kp, D)

    # --- 1) exact-math check (f32 MXU operands), cross-attention layer ---
    out, attn = qformer_layer(query_tokens, vl_tokens, vl_mask, params,
                              num_heads=H, layer_idx=0, cross_attention_freq=2,
                              compute_dtype=jnp.float32)
    out = jax.block_until_ready(out)
    ref_out, ref_attn = ref_forward(query_tokens, vl_tokens, vl_mask, params, H, True)
    assert np.allclose(np.asarray(out), np.asarray(ref_out), rtol=2e-3, atol=2e-3)
    assert np.allclose(np.asarray(attn["self_attn_weights"]),
                       np.asarray(ref_attn["self_attn_weights"]), rtol=2e-3, atol=2e-3)
    assert np.allclose(np.asarray(attn["cross_attn_weights"]),
                       np.asarray(ref_attn["cross_attn_weights"]), rtol=2e-3, atol=2e-3)

    # --- 2) exact-math check, layer without cross-attention ---
    out2, attn2 = qformer_layer(query_tokens, vl_tokens, vl_mask, params,
                                num_heads=H, layer_idx=1, cross_attention_freq=2,
                                compute_dtype=jnp.float32)
    out2 = jax.block_until_ready(out2)
    ref_out2, ref_attn2 = ref_forward(query_tokens, vl_tokens, vl_mask, params, H, False)
    assert np.allclose(np.asarray(out2), np.asarray(ref_out2), rtol=2e-3, atol=2e-3)
    assert np.allclose(np.asarray(attn2["self_attn_weights"]),
                       np.asarray(ref_attn2["self_attn_weights"]), rtol=2e-3, atol=2e-3)
    assert attn2["cross_attn_weights"] is None

    # --- 3) production path: bf16 MXU operands, no attn-weight outputs ---
    out3, attn3 = qformer_layer(query_tokens, vl_tokens, vl_mask, params,
                                num_heads=H, layer_idx=0, cross_attention_freq=2,
                                return_attn_weights=False)           # bf16 default
    out3 = jax.block_until_ready(out3)
    ref_out3, _ = ref_forward(query_tokens, vl_tokens, vl_mask, params, H, True,
                              compute_dtype=jnp.bfloat16)
    assert attn3["self_attn_weights"] is None
    assert attn3["cross_attn_weights"] is None
    assert np.allclose(np.asarray(out3), np.asarray(ref_out3), rtol=5e-3, atol=5e-3)

    print("KERNEL_OK")
</pallas_src>

<mosaic_0001>
module attributes {stable_mosaic.version = 11 : i64} {
  func.func @qformer_layer_kernel(%arg0: i32, %arg1: memref<1x8x64xf32, #tpu.memory_space<vmem>>, %arg2: memref<1x16x64xf32, #tpu.memory_space<vmem>>, %arg3: memref<1x1x16xf32, #tpu.memory_space<vmem>>, %arg4: memref<1x64xf32, #tpu.memory_space<vmem>>, %arg5: memref<1x64xf32, #tpu.memory_space<vmem>>, %arg6: memref<64x192xf32, #tpu.memory_space<vmem>>, %arg7: memref<1x192xf32, #tpu.memory_space<vmem>>, %arg8: memref<64x64xf32, #tpu.memory_space<vmem>>, %arg9: memref<1x64xf32, #tpu.memory_space<vmem>>, %arg10: memref<1x64xf32, #tpu.memory_space<vmem>>, %arg11: memref<1x64xf32, #tpu.memory_space<vmem>>, %arg12: memref<64x64xf32, #tpu.memory_space<vmem>>, %arg13: memref<1x64xf32, #tpu.memory_space<vmem>>, %arg14: memref<64x128xf32, #tpu.memory_space<vmem>>, %arg15: memref<1x128xf32, #tpu.memory_space<vmem>>, %arg16: memref<64x64xf32, #tpu.memory_space<vmem>>, %arg17: memref<1x64xf32, #tpu.memory_space<vmem>>, %arg18: memref<1x64xf32, #tpu.memory_space<vmem>>, %arg19: memref<1x64xf32, #tpu.memory_space<vmem>>, %arg20: memref<64x256xf32, #tpu.memory_space<vmem>>, %arg21: memref<1x256xf32, #tpu.memory_space<vmem>>, %arg22: memref<256x64xf32, #tpu.memory_space<vmem>>, %arg23: memref<1x64xf32, #tpu.memory_space<vmem>>, %arg24: memref<1x8x64xf32, #tpu.memory_space<vmem>>, %arg25: memref<1x1x64xf32, #tpu.memory_space<vmem>>, %arg26: memref<1x1x128xf32, #tpu.memory_space<vmem>>) attributes {dimension_semantics = [#tpu.dimension_semantics<parallel>], iteration_bounds = array<i64: 2>, scalar_prefetch = 0 : i64, scratch_operands = 0 : i64, tpu.core_type = #tpu.core_type<tc>, window_params = [{transform_indices = @transform_0, window_bounds = array<i64: 1, 8, 64>}, {transform_indices = @transform_1, window_bounds = array<i64: 1, 16, 64>}, {transform_indices = @transform_2, window_bounds = array<i64: 1, 1, 16>}, {pipeline_mode = #tpu.pipeline_mode<synchronous>, transform_indices = @transform_3, window_bounds = array<i64: 1, 64>}, {pipeline_mode = #tpu.pipeline_mode<synchronous>, transform_indices = @transform_4, window_bounds = array<i64: 1, 64>}, {pipeline_mode = #tpu.pipeline_mode<synchronous>, transform_indices = @transform_5, window_bounds = array<i64: 64, 192>}, {pipeline_mode = #tpu.pipeline_mode<synchronous>, transform_indices = @transform_6, window_bounds = array<i64: 1, 192>}, {pipeline_mode = #tpu.pipeline_mode<synchronous>, transform_indices = @transform_7, window_bounds = array<i64: 64, 64>}, {pipeline_mode = #tpu.pipeline_mode<synchronous>, transform_indices = @transform_8, window_bounds = array<i64: 1, 64>}, {pipeline_mode = #tpu.pipeline_mode<synchronous>, transform_indices = @transform_9, window_bounds = array<i64: 1, 64>}, {pipeline_mode = #tpu.pipeline_mode<synchronous>, transform_indices = @transform_10, window_bounds = array<i64: 1, 64>}, {pipeline_mode = #tpu.pipeline_mode<synchronous>, transform_indices = @transform_11, window_bounds = array<i64: 64, 64>}, {pipeline_mode = #tpu.pipeline_mode<synchronous>, transform_indices = @transform_12, window_bounds = array<i64: 1, 64>}, {pipeline_mode = #tpu.pipeline_mode<synchronous>, transform_indices = @transform_13, window_bounds = array<i64: 64, 128>}, {pipeline_mode = #tpu.pipeline_mode<synchronous>, transform_indices = @transform_14, window_bounds = array<i64: 1, 128>}, {pipeline_mode = #tpu.pipeline_mode<synchronous>, transform_indices = @transform_15, window_bounds = array<i64: 64, 64>}, {pipeline_mode = #tpu.pipeline_mode<synchronous>, transform_indices = @transform_16, window_bounds = array<i64: 1, 64>}, {pipeline_mode = #tpu.pipeline_mode<synchronous>, transform_indices = @transform_17, window_bounds = array<i64: 1, 64>}, {pipeline_mode = #tpu.pipeline_mode<synchronous>, transform_indices = @transform_18, window_bounds = array<i64: 1, 64>}, {pipeline_mode = #tpu.pipeline_mode<synchronous>, transform_indices = @transform_19, window_bounds = array<i64: 64, 256>}, {pipeline_mode = #tpu.pipeline_mode<synchronous>, transform_indices = @transform_20, window_bounds = array<i64: 1, 256>}, {pipeline_mode = #tpu.pipeline_mode<synchronous>, transform_indices = @transform_21, window_bounds = array<i64: 256, 64>}, {pipeline_mode = #tpu.pipeline_mode<synchronous>, transform_indices = @transform_22, window_bounds = array<i64: 1, 64>}, {transform_indices = @transform_23, window_bounds = array<i64: 1, 8, 64>}, {transform_indices = @transform_24, window_bounds = array<i64: 1, 1, 64>}, {transform_indices = @transform_25, window_bounds = array<i64: 1, 1, 128>}]} {
    %c0 = arith.constant 0 : index
    %c0_0 = arith.constant 0 : index
    %c0_1 = arith.constant 0 : index
    %0 = vector.load %arg1[%c0, %c0_0, %c0_1] : memref<1x8x64xf32, #tpu.memory_space<vmem>>, vector<1x8x64xf32>
    %1 = vector.shape_cast %0 : vector<1x8x64xf32> to vector<8x64xf32>
    %cst = arith.constant dense<0.000000e+00> : vector<8xf32>
    %2 = vector.multi_reduction <add>, %1, %cst [1] : vector<8x64xf32> to vector<8xf32>
    %3 = vector.shape_cast %2 : vector<8xf32> to vector<8x1xf32>
    %cst_2 = arith.constant 6.400000e+01 : f32
    %4 = vector.broadcast %cst_2 : f32 to vector<8x1xf32>
    %5 = arith.divf %3, %4 : vector<8x1xf32>
    %6 = arith.mulf %1, %1 : vector<8x64xf32>
    %cst_3 = arith.constant dense<0.000000e+00> : vector<8xf32>
    %7 = vector.multi_reduction <add>, %6, %cst_3 [1] : vector<8x64xf32> to vector<8xf32>
    %8 = vector.shape_cast %7 : vector<8xf32> to vector<8x1xf32>
    %cst_4 = arith.constant 6.400000e+01 : f32
    %9 = vector.broadcast %cst_4 : f32 to vector<8x1xf32>
    %10 = arith.divf %8, %9 : vector<8x1xf32>
    %11 = arith.mulf %5, %5 : vector<8x1xf32>
    %12 = arith.subf %10, %11 : vector<8x1xf32>
    %cst_5 = arith.constant 0.000000e+00 : f32
    %13 = vector.broadcast %cst_5 : f32 to vector<8x1xf32>
    %14 = arith.maximumf %12, %13 : vector<8x1xf32>
    %cst_6 = arith.constant 9.99999974E-6 : f32
    %15 = vector.broadcast %cst_6 : f32 to vector<8x1xf32>
    %16 = arith.addf %14, %15 : vector<8x1xf32>
    %17 = math.rsqrt %16 : vector<8x1xf32>
    %18 = vector.broadcast %5 : vector<8x1xf32> to vector<8x64xf32>
    %19 = arith.subf %1, %18 : vector<8x64xf32>
    %20 = vector.broadcast %17 : vector<8x1xf32> to vector<8x64xf32>
    %21 = arith.mulf %19, %20 : vector<8x64xf32>
    %c0_7 = arith.constant 0 : index
    %c0_8 = arith.constant 0 : index
    %22 = vector.load %arg4[%c0_7, %c0_8] : memref<1x64xf32, #tpu.memory_space<vmem>>, vector<1x64xf32>
    %23 = vector.broadcast %22 : vector<1x64xf32> to vector<8x64xf32>
    %24 = arith.mulf %21, %23 : vector<8x64xf32>
    %c0_9 = arith.constant 0 : index
    %c0_10 = arith.constant 0 : index
    %25 = vector.load %arg5[%c0_9, %c0_10] : memref<1x64xf32, #tpu.memory_space<vmem>>, vector<1x64xf32>
    %26 = vector.broadcast %25 : vector<1x64xf32> to vector<8x64xf32>
    %27 = arith.addf %24, %26 : vector<8x64xf32>
    %c0_11 = arith.constant 0 : index
    %c0_12 = arith.constant 0 : index
    %28 = vector.load %arg6[%c0_11, %c0_12] : memref<64x192xf32, #tpu.memory_space<vmem>>, vector<64x192xf32>
    %cst_13 = arith.constant dense<0.000000e+00> : vector<8x192xf32>
    %29 = tpu.matmul %27, %28, %cst_13 {dimension_numbers = #tpu.dot_dimension_numbers<[1], [0], [0], [1], [0, 0, 1, 1], [], []>} : vector<8x64xf32>, vector<64x192xf32>, vector<8x192xf32> -> vector<8x192xf32>
    %c0_14 = arith.constant 0 : index
    %c0_15 = arith.constant 0 : index
    %30 = vector.load %arg7[%c0_14, %c0_15] : memref<1x192xf32, #tpu.memory_space<vmem>>, vector<1x192xf32>
    %31 = vector.broadcast %30 : vector<1x192xf32> to vector<8x192xf32>
    %32 = arith.addf %29, %31 : vector<8x192xf32>
    %33 = vector.extract_strided_slice %32 {offsets = [0, 0], sizes = [8, 64], strides = [1, 1]} : vector<8x192xf32> to vector<8x64xf32>
    %34 = vector.extract_strided_slice %32 {offsets = [0, 64], sizes = [8, 64], strides = [1, 1]} : vector<8x192xf32> to vector<8x64xf32>
    %35 = vector.extract_strided_slice %32 {offsets = [0, 128], sizes = [8, 64], strides = [1, 1]} : vector<8x192xf32> to vector<8x64xf32>
    %cst_16 = arith.constant 0.353553385 : f32
    %36 = vector.broadcast %cst_16 : f32 to vector<8x64xf32>
    %37 = arith.mulf %33, %36 : vector<8x64xf32>
    %38 = vector.shape_cast %37 : vector<8x64xf32> to vector<1x8x8x8xf32>
    %39 = tpu.transpose %38, [0, 2, 1, 3] : vector<1x8x8x8xf32> -> vector<1x8x8x8xf32>
    %40 = vector.shape_cast %39 : vector<1x8x8x8xf32> to vector<8x8x8xf32>
    %41 = vector.shape_cast %34 : vector<8x64xf32> to vector<1x8x8x8xf32>
    %42 = tpu.transpose %41, [0, 2, 1, 3] : vector<1x8x8x8xf32> -> vector<1x8x8x8xf32>
    %43 = vector.shape_cast %42 : vector<1x8x8x8xf32> to vector<8x8x8xf32>
    %44 = vector.shape_cast %35 : vector<8x64xf32> to vector<1x8x8x8xf32>
    %45 = tpu.transpose %44, [0, 2, 1, 3] : vector<1x8x8x8xf32> -> vector<1x8x8x8xf32>
    %46 = vector.shape_cast %45 : vector<1x8x8x8xf32> to vector<8x8x8xf32>
    "tpu.trace_start"() <{level = 10 : i32, message = "gqd,gkd->gqk"}> : () -> ()
    %cst_17 = arith.constant dense<0.000000e+00> : vector<8x8x8xf32>
    %47 = tpu.matmul %40, %43, %cst_17 {dimension_numbers = #tpu.dot_dimension_numbers<[2], [2], [1], [1], [0, 0, 0, 1, 1, 1], [0], [0]>} : vector<8x8x8xf32>, vector<8x8x8xf32>, vector<8x8x8xf32> -> vector<8x8x8xf32>
    "tpu.trace_stop"() : () -> ()
    %cst_18 = arith.constant dense<0xFF800000> : vector<8x8xf32>
    %48 = vector.multi_reduction <maximumf>, %47, %cst_18 [2] : vector<8x8x8xf32> to vector<8x8xf32>
    %49 = vector.shape_cast %48 : vector<8x8xf32> to vector<8x8x1xf32>
    %50 = vector.broadcast %49 : vector<8x8x1xf32> to vector<8x8x8xf32>
    %51 = arith.subf %47, %50 : vector<8x8x8xf32>
    %52 = math.exp %51 : vector<8x8x8xf32>
    %cst_19 = arith.constant dense<0.000000e+00> : vector<8x8xf32>
    %53 = vector.multi_reduction <add>, %52, %cst_19 [2] : vector<8x8x8xf32> to vector<8x8xf32>
    %54 = vector.shape_cast %53 : vector<8x8xf32> to vector<8x8x1xf32>
    %55 = vector.broadcast %54 : vector<8x8x1xf32> to vector<8x8x8xf32>
    %56 = arith.divf %52, %55 : vector<8x8x8xf32>
    "tpu.trace_start"() <{level = 10 : i32, message = "gqk,gkd->gqd"}> : () -> ()
    %cst_20 = arith.constant dense<0.000000e+00> : vector<8x8x8xf32>
    %57 = tpu.matmul %56, %46, %cst_20 {dimension_numbers = #tpu.dot_dimension_numbers<[2], [1], [1], [2], [0, 0, 0, 1, 1, 2], [0], [0]>} : vector<8x8x8xf32>, vector<8x8x8xf32>, vector<8x8x8xf32> -> vector<8x8x8xf32>
    "tpu.trace_stop"() : () -> ()
    %58 = vector.shape_cast %57 : vector<8x8x8xf32> to vector<1x8x8x8xf32>
    %59 = tpu.transpose %58, [0, 2, 1, 3] : vector<1x8x8x8xf32> -> vector<1x8x8x8xf32>
    %60 = vector.shape_cast %59 : vector<1x8x8x8xf32> to vector<8x64xf32>
    %61 = vector.shape_cast %56 : vector<8x8x8xf32> to vector<1x8x8x8xf32>
    %cst_21 = arith.constant dense<0.000000e+00> : vector<1x8x8xf32>
    %62 = vector.multi_reduction <add>, %61, %cst_21 [1] : vector<1x8x8x8xf32> to vector<1x8x8xf32>
    %cst_22 = arith.constant 1.250000e-01 : f32
    %63 = vector.broadcast %cst_22 : f32 to vector<1x8x8xf32>
    %64 = arith.mulf %62, %63 : vector<1x8x8xf32>
    %c0_23 = arith.constant 0 : index
    %c0_24 = arith.constant 0 : index
    %65 = vector.load %arg8[%c0_23, %c0_24] : memref<64x64xf32, #tpu.memory_space<vmem>>, vector<64x64xf32>
    %cst_25 = arith.constant dense<0.000000e+00> : vector<8x64xf32>
    %66 = tpu.matmul %60, %65, %cst_25 {dimension_numbers = #tpu.dot_dimension_numbers<[1], [0], [0], [1], [0, 0, 1, 1], [], []>} : vector<8x64xf32>, vector<64x64xf32>, vector<8x64xf32> -> vector<8x64xf32>
    %c0_26 = arith.constant 0 : index
    %c0_27 = arith.constant 0 : index
    %67 = vector.load %arg9[%c0_26, %c0_27] : memref<1x64xf32, #tpu.memory_space<vmem>>, vector<1x64xf32>
    %68 = vector.broadcast %67 : vector<1x64xf32> to vector<8x64xf32>
    %69 = arith.addf %66, %68 : vector<8x64xf32>
    %70 = arith.addf %1, %69 : vector<8x64xf32>
    %71 = vector.shape_cast %64 : vector<1x8x8xf32> to vector<1x1x64xf32>
    %c0_28 = arith.constant 0 : index
    %c0_29 = arith.constant 0 : index
    %c0_30 = arith.constant 0 : index
    %72 = vector.load %arg25[%c0_28, %c0_29, %c0_30] : memref<1x1x64xf32, #tpu.memory_space<vmem>>, vector<1x1x64xf32>
    tpu.vector_store %arg25[%c0_28, %c0_29, %c0_30], %71 {strides = array<i32>} : memref<1x1x64xf32, #tpu.memory_space<vmem>>, vector<1x1x64xf32>,
    %c0_31 = arith.constant 0 : index
    %c0_32 = arith.constant 0 : index
    %c0_33 = arith.constant 0 : index
    %73 = vector.load %arg2[%c0_31, %c0_32, %c0_33] : memref<1x16x64xf32, #tpu.memory_space<vmem>>, vector<1x16x64xf32>
    %74 = vector.shape_cast %73 : vector<1x16x64xf32> to vector<16x64xf32>
    %c0_34 = arith.constant 0 : index
    %c0_35 = arith.constant 0 : index
    %c0_36 = arith.constant 0 : index
    %75 = vector.load %arg3[%c0_34, %c0_35, %c0_36] : memref<1x1x16xf32, #tpu.memory_space<vmem>>, vector<1x1x16xf32>
    %76 = vector.shape_cast %75 : vector<1x1x16xf32> to vector<1x1x1x16xf32>
    %77 = vector.shape_cast %76 : vector<1x1x1x16xf32> to vector<1x1x1x16xf32>
    %78 = vector.broadcast %77 : vector<1x1x1x16xf32> to vector<1x8x1x16xf32>
    %79 = vector.shape_cast %78 : vector<1x8x1x16xf32> to vector<8x1x16xf32>
    %cst_37 = arith.constant dense<0.000000e+00> : vector<8xf32>
    %80 = vector.multi_reduction <add>, %70, %cst_37 [1] : vector<8x64xf32> to vector<8xf32>
    %81 = vector.shape_cast %80 : vector<8xf32> to vector<8x1xf32>
    %cst_38 = arith.constant 6.400000e+01 : f32
    %82 = vector.broadcast %cst_38 : f32 to vector<8x1xf32>
    %83 = arith.divf %81, %82 : vector<8x1xf32>
    %84 = arith.mulf %70, %70 : vector<8x64xf32>
    %cst_39 = arith.constant dense<0.000000e+00> : vector<8xf32>
    %85 = vector.multi_reduction <add>, %84, %cst_39 [1] : vector<8x64xf32> to vector<8xf32>
    %86 = vector.shape_cast %85 : vector<8xf32> to vector<8x1xf32>
    %cst_40 = arith.constant 6.400000e+01 : f32
    %87 = vector.broadcast %cst_40 : f32 to vector<8x1xf32>
    %88 = arith.divf %86, %87 : vector<8x1xf32>
    %89 = arith.mulf %83, %83 : vector<8x1xf32>
    %90 = arith.subf %88, %89 : vector<8x1xf32>
    %cst_41 = arith.constant 0.000000e+00 : f32
    %91 = vector.broadcast %cst_41 : f32 to vector<8x1xf32>
    %92 = arith.maximumf %90, %91 : vector<8x1xf32>
    %cst_42 = arith.constant 9.99999974E-6 : f32
    %93 = vector.broadcast %cst_42 : f32 to vector<8x1xf32>
    %94 = arith.addf %92, %93 : vector<8x1xf32>
    %95 = math.rsqrt %94 : vector<8x1xf32>
    %96 = vector.broadcast %83 : vector<8x1xf32> to vector<8x64xf32>
    %97 = arith.subf %70, %96 : vector<8x64xf32>
    %98 = vector.broadcast %95 : vector<8x1xf32> to vector<8x64xf32>
    %99 = arith.mulf %97, %98 : vector<8x64xf32>
    %c0_43 = arith.constant 0 : index
    %c0_44 = arith.constant 0 : index
    %100 = vector.load %arg10[%c0_43, %c0_44] : memref<1x64xf32, #tpu.memory_space<vmem>>, vector<1x64xf32>
    %101 = vector.broadcast %100 : vector<1x64xf32> to vector<8x64xf32>
    %102 = arith.mulf %99, %101 : vector<8x64xf32>
    %c0_45 = arith.constant 0 : index
    %c0_46 = arith.constant 0 : index
    %103 = vector.load %arg11[%c0_45, %c0_46] : memref<1x64xf32, #tpu.memory_space<vmem>>, vector<1x64xf32>
    %104 = vector.broadcast %103 : vector<1x64xf32> to vector<8x64xf32>
    %105 = arith.addf %102, %104 : vector<8x64xf32>
    %c0_47 = arith.constant 0 : index
    %c0_48 = arith.constant 0 : index
    %106 = vector.load %arg12[%c0_47, %c0_48] : memref<64x64xf32, #tpu.memory_space<vmem>>, vector<64x64xf32>
    %cst_49 = arith.constant dense<0.000000e+00> : vector<8x64xf32>
    %107 = tpu.matmul %105, %106, %cst_49 {dimension_numbers = #tpu.dot_dimension_numbers<[1], [0], [0], [1], [0, 0, 1, 1], [], []>} : vector<8x64xf32>, vector<64x64xf32>, vector<8x64xf32> -> vector<8x64xf32>
    %c0_50 = arith.constant 0 : index
    %c0_51 = arith.constant 0 : index
    %108 = vector.load %arg13[%c0_50, %c0_51] : memref<1x64xf32, #tpu.memory_space<vmem>>, vector<1x64xf32>
    %109 = vector.broadcast %108 : vector<1x64xf32> to vector<8x64xf32>
    %110 = arith.addf %107, %109 : vector<8x64xf32>
    %c0_52 = arith.constant 0 : index
    %c0_53 = arith.constant 0 : index
    %111 = vector.load %arg14[%c0_52, %c0_53] : memref<64x128xf32, #tpu.memory_space<vmem>>, vector<64x128xf32>
    %cst_54 = arith.constant dense<0.000000e+00> : vector<16x128xf32>
    %112 = tpu.matmul %74, %111, %cst_54 {dimension_numbers = #tpu.dot_dimension_numbers<[1], [0], [0], [1], [0, 0, 1, 1], [], []>} : vector<16x64xf32>, vector<64x128xf32>, vector<16x128xf32> -> vector<16x128xf32>
    %c0_55 = arith.constant 0 : index
    %c0_56 = arith.constant 0 : index
    %113 = vector.load %arg15[%c0_55, %c0_56] : memref<1x128xf32, #tpu.memory_space<vmem>>, vector<1x128xf32>
    %114 = vector.broadcast %113 : vector<1x128xf32> to vector<16x128xf32>
    %115 = arith.addf %112, %114 : vector<16x128xf32>
    %116 = vector.extract_strided_slice %115 {offsets = [0, 0], sizes = [16, 64], strides = [1, 1]} : vector<16x128xf32> to vector<16x64xf32>
    %117 = vector.extract_strided_slice %115 {offsets = [0, 64], sizes = [16, 64], strides = [1, 1]} : vector<16x128xf32> to vector<16x64xf32>
    %cst_57 = arith.constant 0.353553385 : f32
    %118 = vector.broadcast %cst_57 : f32 to vector<8x64xf32>
    %119 = arith.mulf %110, %118 : vector<8x64xf32>
    %120 = vector.shape_cast %119 : vector<8x64xf32> to vector<1x8x8x8xf32>
    %121 = tpu.transpose %120, [0, 2, 1, 3] : vector<1x8x8x8xf32> -> vector<1x8x8x8xf32>
    %122 = vector.shape_cast %121 : vector<1x8x8x8xf32> to vector<8x8x8xf32>
    %123 = vector.shape_cast %116 : vector<16x64xf32> to vector<1x16x8x8xf32>
    %124 = tpu.transpose %123, [0, 2, 1, 3] : vector<1x16x8x8xf32> -> vector<1x8x16x8xf32>
    %125 = vector.shape_cast %124 : vector<1x8x16x8xf32> to vector<8x16x8xf32>
    %126 = vector.shape_cast %117 : vector<16x64xf32> to vector<1x16x8x8xf32>
    %127 = tpu.transpose %126, [0, 2, 1, 3] : vector<1x16x8x8xf32> -> vector<1x8x16x8xf32>
    %128 = vector.shape_cast %127 : vector<1x8x16x8xf32> to vector<8x16x8xf32>
    "tpu.trace_start"() <{level = 10 : i32, message = "gqd,gkd->gqk"}> : () -> ()
    %cst_58 = arith.constant dense<0.000000e+00> : vector<8x8x16xf32>
    %129 = tpu.matmul %122, %125, %cst_58 {dimension_numbers = #tpu.dot_dimension_numbers<[2], [2], [1], [1], [0, 0, 0, 1, 1, 1], [0], [0]>} : vector<8x8x8xf32>, vector<8x16x8xf32>, vector<8x8x16xf32> -> vector<8x8x16xf32>
    "tpu.trace_stop"() : () -> ()
    %130 = vector.broadcast %79 : vector<8x1x16xf32> to vector<8x8x16xf32>
    %131 = arith.addf %129, %130 : vector<8x8x16xf32>
    %cst_59 = arith.constant dense<0xFF800000> : vector<8x8xf32>
    %132 = vector.multi_reduction <maximumf>, %131, %cst_59 [2] : vector<8x8x16xf32> to vector<8x8xf32>
    %133 = vector.shape_cast %132 : vector<8x8xf32> to vector<8x8x1xf32>
    %134 = vector.broadcast %133 : vector<8x8x1xf32> to vector<8x8x16xf32>
    %135 = arith.subf %131, %134 : vector<8x8x16xf32>
    %136 = math.exp %135 : vector<8x8x16xf32>
    %cst_60 = arith.constant dense<0.000000e+00> : vector<8x8xf32>
    %137 = vector.multi_reduction <add>, %136, %cst_60 [2] : vector<8x8x16xf32> to vector<8x8xf32>
    %138 = vector.shape_cast %137 : vector<8x8xf32> to vector<8x8x1xf32>
    %139 = vector.broadcast %138 : vector<8x8x1xf32> to vector<8x8x16xf32>
    %140 = arith.divf %136, %139 : vector<8x8x16xf32>
    "tpu.trace_start"() <{level = 10 : i32, message = "gqk,gkd->gqd"}> : () -> ()
    %cst_61 = arith.constant dense<0.000000e+00> : vector<8x8x8xf32>
    %141 = tpu.matmul %140, %128, %cst_61 {dimension_numbers = #tpu.dot_dimension_numbers<[2], [1], [1], [2], [0, 0, 0, 1, 1, 2], [0], [0]>} : vector<8x8x16xf32>, vector<8x16x8xf32>, vector<8x8x8xf32> -> vector<8x8x8xf32>
    "tpu.trace_stop"() : () -> ()
    %142 = vector.shape_cast %141 : vector<8x8x8xf32> to vector<1x8x8x8xf32>
    %143 = tpu.transpose %142, [0, 2, 1, 3] : vector<1x8x8x8xf32> -> vector<1x8x8x8xf32>
    %144 = vector.shape_cast %143 : vector<1x8x8x8xf32> to vector<8x64xf32>
    %145 = vector.shape_cast %140 : vector<8x8x16xf32> to vector<1x8x8x16xf32>
    %cst_62 = arith.constant dense<0.000000e+00> : vector<1x8x16xf32>
    %146 = vector.multi_reduction <add>, %145, %cst_62 [1] : vector<1x8x8x16xf32> to vector<1x8x16xf32>
    %cst_63 = arith.constant 1.250000e-01 : f32
    %147 = vector.broadcast %cst_63 : f32 to vector<1x8x16xf32>
    %148 = arith.mulf %146, %147 : vector<1x8x16xf32>
    %c0_64 = arith.constant 0 : index
    %c0_65 = arith.constant 0 : index
    %149 = vector.load %arg16[%c0_64, %c0_65] : memref<64x64xf32, #tpu.memory_space<vmem>>, vector<64x64xf32>
    %cst_66 = arith.constant dense<0.000000e+00> : vector<8x64xf32>
    %150 = tpu.matmul %144, %149, %cst_66 {dimension_numbers = #tpu.dot_dimension_numbers<[1], [0], [0], [1], [0, 0, 1, 1], [], []>} : vector<8x64xf32>, vector<64x64xf32>, vector<8x64xf32> -> vector<8x64xf32>
    %c0_67 = arith.constant 0 : index
    %c0_68 = arith.constant 0 : index
    %151 = vector.load %arg17[%c0_67, %c0_68] : memref<1x64xf32, #tpu.memory_space<vmem>>, vector<1x64xf32>
    %152 = vector.broadcast %151 : vector<1x64xf32> to vector<8x64xf32>
    %153 = arith.addf %150, %152 : vector<8x64xf32>
    %154 = arith.addf %70, %153 : vector<8x64xf32>
    %155 = vector.shape_cast %148 : vector<1x8x16xf32> to vector<1x1x128xf32>
    %c0_69 = arith.constant 0 : index
    %c0_70 = arith.constant 0 : index
    %c0_71 = arith.constant 0 : index
    %156 = vector.load %arg26[%c0_69, %c0_70, %c0_71] : memref<1x1x128xf32, #tpu.memory_space<vmem>>, vector<1x1x128xf32>
    tpu.vector_store %arg26[%c0_69, %c0_70, %c0_71], %155 {strides = array<i32>} : memref<1x1x128xf32, #tpu.memory_space<vmem>>, vector<1x1x128xf32>,
    %cst_72 = arith.constant dense<0.000000e+00> : vector<8xf32>
    %157 = vector.multi_reduction <add>, %154, %cst_72 [1] : vector<8x64xf32> to vector<8xf32>
    %158 = vector.shape_cast %157 : vector<8xf32> to vector<8x1xf32>
    %cst_73 = arith.constant 6.400000e+01 : f32
    %159 = vector.broadcast %cst_73 : f32 to vector<8x1xf32>
    %160 = arith.divf %158, %159 : vector<8x1xf32>
    %161 = arith.mulf %154, %154 : vector<8x64xf32>
    %cst_74 = arith.constant dense<0.000000e+00> : vector<8xf32>
    %162 = vector.multi_reduction <add>, %161, %cst_74 [1] : vector<8x64xf32> to vector<8xf32>
    %163 = vector.shape_cast %162 : vector<8xf32> to vector<8x1xf32>
    %cst_75 = arith.constant 6.400000e+01 : f32
    %164 = vector.broadcast %cst_75 : f32 to vector<8x1xf32>
    %165 = arith.divf %163, %164 : vector<8x1xf32>
    %166 = arith.mulf %160, %160 : vector<8x1xf32>
    %167 = arith.subf %165, %166 : vector<8x1xf32>
    %cst_76 = arith.constant 0.000000e+00 : f32
    %168 = vector.broadcast %cst_76 : f32 to vector<8x1xf32>
    %169 = arith.maximumf %167, %168 : vector<8x1xf32>
    %cst_77 = arith.constant 9.99999974E-6 : f32
    %170 = vector.broadcast %cst_77 : f32 to vector<8x1xf32>
    %171 = arith.addf %169, %170 : vector<8x1xf32>
    %172 = math.rsqrt %171 : vector<8x1xf32>
    %173 = vector.broadcast %160 : vector<8x1xf32> to vector<8x64xf32>
    %174 = arith.subf %154, %173 : vector<8x64xf32>
    %175 = vector.broadcast %172 : vector<8x1xf32> to vector<8x64xf32>
    %176 = arith.mulf %174, %175 : vector<8x64xf32>
    %c0_78 = arith.constant 0 : index
    %c0_79 = arith.constant 0 : index
    %177 = vector.load %arg18[%c0_78, %c0_79] : memref<1x64xf32, #tpu.memory_space<vmem>>, vector<1x64xf32>
    %178 = vector.broadcast %177 : vector<1x64xf32> to vector<8x64xf32>
    %179 = arith.mulf %176, %178 : vector<8x64xf32>
    %c0_80 = arith.constant 0 : index
    %c0_81 = arith.constant 0 : index
    %180 = vector.load %arg19[%c0_80, %c0_81] : memref<1x64xf32, #tpu.memory_space<vmem>>, vector<1x64xf32>
    %181 = vector.broadcast %180 : vector<1x64xf32> to vector<8x64xf32>
    %182 = arith.addf %179, %181 : vector<8x64xf32>
    %c0_82 = arith.constant 0 : index
    %c0_83 = arith.constant 0 : index
    %183 = vector.load %arg20[%c0_82, %c0_83] : memref<64x256xf32, #tpu.memory_space<vmem>>, vector<64x256xf32>
    %cst_84 = arith.constant dense<0.000000e+00> : vector<8x256xf32>
    %184 = tpu.matmul %182, %183, %cst_84 {dimension_numbers = #tpu.dot_dimension_numbers<[1], [0], [0], [1], [0, 0, 1, 1], [], []>} : vector<8x64xf32>, vector<64x256xf32>, vector<8x256xf32> -> vector<8x256xf32>
    %c0_85 = arith.constant 0 : index
    %c0_86 = arith.constant 0 : index
    %185 = vector.load %arg21[%c0_85, %c0_86] : memref<1x256xf32, #tpu.memory_space<vmem>>, vector<1x256xf32>
    %186 = vector.broadcast %185 : vector<1x256xf32> to vector<8x256xf32>
    %187 = arith.addf %184, %186 : vector<8x256xf32>
    %cst_87 = arith.constant 5.000000e-01 : f32
    %188 = vector.broadcast %cst_87 : f32 to vector<8x256xf32>
    %189 = arith.mulf %188, %187 : vector<8x256xf32>
    %cst_88 = arith.constant 0.707106769 : f32
    %190 = vector.broadcast %cst_88 : f32 to vector<8x256xf32>
    %191 = arith.mulf %187, %190 : vector<8x256xf32>
    %192 = math.erf %191 : vector<8x256xf32>
    %cst_89 = arith.constant 1.000000e+00 : f32
    %193 = vector.broadcast %cst_89 : f32 to vector<8x256xf32>
    %194 = arith.addf %193, %192 : vector<8x256xf32>
    %195 = arith.mulf %189, %194 : vector<8x256xf32>
    %c0_90 = arith.constant 0 : index
    %c0_91 = arith.constant 0 : index
    %196 = vector.load %arg22[%c0_90, %c0_91] : memref<256x64xf32, #tpu.memory_space<vmem>>, vector<256x64xf32>
    %cst_92 = arith.constant dense<0.000000e+00> : vector<8x64xf32>
    %197 = tpu.matmul %195, %196, %cst_92 {dimension_numbers = #tpu.dot_dimension_numbers<[1], [0], [0], [1], [0, 0, 1, 1], [], []>} : vector<8x256xf32>, vector<256x64xf32>, vector<8x64xf32> -> vector<8x64xf32>
    %c0_93 = arith.constant 0 : index
    %c0_94 = arith.constant 0 : index
    %198 = vector.load %arg23[%c0_93, %c0_94] : memref<1x64xf32, #tpu.memory_space<vmem>>, vector<1x64xf32>
    %199 = vector.broadcast %198 : vector<1x64xf32> to vector<8x64xf32>
    %200 = arith.addf %197, %199 : vector<8x64xf32>
    %201 = arith.addf %154, %200 : vector<8x64xf32>
    %202 = vector.shape_cast %201 : vector<8x64xf32> to vector<1x8x64xf32>
    %c0_95 = arith.constant 0 : index
    %c0_96 = arith.constant 0 : index
    %c0_97 = arith.constant 0 : index
    %203 = vector.load %arg24[%c0_95, %c0_96, %c0_97] : memref<1x8x64xf32, #tpu.memory_space<vmem>>, vector<1x8x64xf32>
    tpu.vector_store %arg24[%c0_95, %c0_96, %c0_97], %202 {strides = array<i32>} : memref<1x8x64xf32, #tpu.memory_space<vmem>>, vector<1x8x64xf32>,
    return
  }
  func.func @transform_0(%arg0: i32) -> (i32, i32, i32) {
    %c0_i32 = arith.constant 0 : i32
    %c0_i32_0 = arith.constant 0 : i32
    %c0_i32_1 = arith.constant 0 : i32
    return %arg0, %c0_i32, %c0_i32_0 : i32, i32, i32
  }
  func.func @transform_1(%arg0: i32) -> (i32, i32, i32) {
    %c0_i32 = arith.constant 0 : i32
    %c0_i32_0 = arith.constant 0 : i32
    %c0_i32_1 = arith.constant 0 : i32
    return %arg0, %c0_i32, %c0_i32_0 : i32, i32, i32
  }
  func.func @transform_2(%arg0: i32) -> (i32, i32, i32) {
    %c0_i32 = arith.constant 0 : i32
    %c0_i32_0 = arith.constant 0 : i32
    %c0_i32_1 = arith.constant 0 : i32
    return %arg0, %c0_i32, %c0_i32_0 : i32, i32, i32
  }
  func.func @transform_3(%arg0: i32) -> (i32, i32) {
    %c0_i32 = arith.constant 0 : i32
    %c0_i32_0 = arith.constant 0 : i32
    %c0_i32_1 = arith.constant 0 : i32
    return %c0_i32, %c0_i32_0 : i32, i32
  }
  func.func @transform_4(%arg0: i32) -> (i32, i32) {
    %c0_i32 = arith.constant 0 : i32
    %c0_i32_0 = arith.constant 0 : i32
    %c0_i32_1 = arith.constant 0 : i32
    return %c0_i32, %c0_i32_0 : i32, i32
  }
  func.func @transform_5(%arg0: i32) -> (i32, i32) {
    %c0_i32 = arith.constant 0 : i32
    %c0_i32_0 = arith.constant 0 : i32
    %c0_i32_1 = arith.constant 0 : i32
    return %c0_i32, %c0_i32_0 : i32, i32
  }
  func.func @transform_6(%arg0: i32) -> (i32, i32) {
    %c0_i32 = arith.constant 0 : i32
    %c0_i32_0 = arith.constant 0 : i32
    %c0_i32_1 = arith.constant 0 : i32
    return %c0_i32, %c0_i32_0 : i32, i32
  }
  func.func @transform_7(%arg0: i32) -> (i32, i32) {
    %c0_i32 = arith.constant 0 : i32
    %c0_i32_0 = arith.constant 0 : i32
    %c0_i32_1 = arith.constant 0 : i32
    return %c0_i32, %c0_i32_0 : i32, i32
  }
  func.func @transform_8(%arg0: i32) -> (i32, i32) {
    %c0_i32 = arith.constant 0 : i32
    %c0_i32_0 = arith.constant 0 : i32
    %c0_i32_1 = arith.constant 0 : i32
    return %c0_i32, %c0_i32_0 : i32, i32
  }
  func.func @transform_9(%arg0: i32) -> (i32, i32) {
    %c0_i32 = arith.constant 0 : i32
    %c0_i32_0 = arith.constant 0 : i32
    %c0_i32_1 = arith.constant 0 : i32
    return %c0_i32, %c0_i32_0 : i32, i32
  }
  func.func @transform_10(%arg0: i32) -> (i32, i32) {
    %c0_i32 = arith.constant 0 : i32
    %c0_i32_0 = arith.constant 0 : i32
    %c0_i32_1 = arith.constant 0 : i32
    return %c0_i32, %c0_i32_0 : i32, i32
  }
  func.func @transform_11(%arg0: i32) -> (i32, i32) {
    %c0_i32 = arith.constant 0 : i32
    %c0_i32_0 = arith.constant 0 : i32
    %c0_i32_1 = arith.constant 0 : i32
    return %c0_i32, %c0_i32_0 : i32, i32
  }
  func.func @transform_12(%arg0: i32) -> (i32, i32) {
    %c0_i32 = arith.constant 0 : i32
    %c0_i32_0 = arith.constant 0 : i32
    %c0_i32_1 = arith.constant 0 : i32
    return %c0_i32, %c0_i32_0 : i32, i32
  }
  func.func @transform_13(%arg0: i32) -> (i32, i32) {
    %c0_i32 = arith.constant 0 : i32
    %c0_i32_0 = arith.constant 0 : i32
    %c0_i32_1 = arith.constant 0 : i32
    return %c0_i32, %c0_i32_0 : i32, i32
  }
  func.func @transform_14(%arg0: i32) -> (i32, i32) {
    %c0_i32 = arith.constant 0 : i32
    %c0_i32_0 = arith.constant 0 : i32
    %c0_i32_1 = arith.constant 0 : i32
    return %c0_i32, %c0_i32_0 : i32, i32
  }
  func.func @transform_15(%arg0: i32) -> (i32, i32) {
    %c0_i32 = arith.constant 0 : i32
    %c0_i32_0 = arith.constant 0 : i32
    %c0_i32_1 = arith.constant 0 : i32
    return %c0_i32, %c0_i32_0 : i32, i32
  }
  func.func @transform_16(%arg0: i32) -> (i32, i32) {
    %c0_i32 = arith.constant 0 : i32
    %c0_i32_0 = arith.constant 0 : i32
    %c0_i32_1 = arith.constant 0 : i32
    return %c0_i32, %c0_i32_0 : i32, i32
  }
  func.func @transform_17(%arg0: i32) -> (i32, i32) {
    %c0_i32 = arith.constant 0 : i32
    %c0_i32_0 = arith.constant 0 : i32
    %c0_i32_1 = arith.constant 0 : i32
    return %c0_i32, %c0_i32_0 : i32, i32
  }
  func.func @transform_18(%arg0: i32) -> (i32, i32) {
    %c0_i32 = arith.constant 0 : i32
    %c0_i32_0 = arith.constant 0 : i32
    %c0_i32_1 = arith.constant 0 : i32
    return %c0_i32, %c0_i32_0 : i32, i32
  }
  func.func @transform_19(%arg0: i32) -> (i32, i32) {
    %c0_i32 = arith.constant 0 : i32
    %c0_i32_0 = arith.constant 0 : i32
    %c0_i32_1 = arith.constant 0 : i32
    return %c0_i32, %c0_i32_0 : i32, i32
  }
  func.func @transform_20(%arg0: i32) -> (i32, i32) {
    %c0_i32 = arith.constant 0 : i32
    %c0_i32_0 = arith.constant 0 : i32
    %c0_i32_1 = arith.constant 0 : i32
    return %c0_i32, %c0_i32_0 : i32, i32
  }
  func.func @transform_21(%arg0: i32) -> (i32, i32) {
    %c0_i32 = arith.constant 0 : i32
    %c0_i32_0 = arith.constant 0 : i32
    %c0_i32_1 = arith.constant 0 : i32
    return %c0_i32, %c0_i32_0 : i32, i32
  }
  func.func @transform_22(%arg0: i32) -> (i32, i32) {
    %c0_i32 = arith.constant 0 : i32
    %c0_i32_0 = arith.constant 0 : i32
    %c0_i32_1 = arith.constant 0 : i32
    return %c0_i32, %c0_i32_0 : i32, i32
  }
  func.func @transform_23(%arg0: i32) -> (i32, i32, i32) {
    %c0_i32 = arith.constant 0 : i32
    %c0_i32_0 = arith.constant 0 : i32
    %c0_i32_1 = arith.constant 0 : i32
    return %arg0, %c0_i32, %c0_i32_0 : i32, i32, i32
  }
  func.func @transform_24(%arg0: i32) -> (i32, i32, i32) {
    %c0_i32 = arith.constant 0 : i32
    %c0_i32_0 = arith.constant 0 : i32
    %c0_i32_1 = arith.constant 0 : i32
    return %arg0, %c0_i32, %c0_i32_0 : i32, i32, i32
  }
  func.func @transform_25(%arg0: i32) -> (i32, i32, i32) {
    %c0_i32 = arith.constant 0 : i32
    %c0_i32_0 = arith.constant 0 : i32
    %c0_i32_1 = arith.constant 0 : i32
    return %arg0, %c0_i32, %c0_i32_0 : i32, i32, i32
  }
}

</mosaic_0001>

<bundles_post_ra>
// kernel: tpu_custom_call.1
= control target key start
LH: loop header
LB: loop body
LE: loop exit
PB: predicated region body
PF: predicated region fallthrough
CT: control target
= control target key end

     0   :  { %s10771_s0 = inlined_call_operand.hbm [shape: f32[2,8,64], index: 0, kind: input, shape index: {}]   ;;  %s10772_s1 = inlined_call_operand.hbm [shape: f32[2,16,64], index: 1, kind: input, shape index: {}]   ;;  %s10773_s2 = inlined_call_operand.hbm [shape: f32[2,1,16], index: 2, kind: input, shape index: {}]   ;;  %s10774_s3 = inlined_call_operand.vmem [shape: f32[1,64], index: 3, kind: input, shape index: {}]   ;;  %s10775_s4 = inlined_call_operand.hbm [shape: f32[1,64], index: 4, kind: input, shape index: {}]   ;;  %s10776_s5 = inlined_call_operand.vmem [shape: f32[64,192], index: 5, kind: input, shape index: {}]   ;;  %s10777_s6 = inlined_call_operand.vmem [shape: f32[1,192], index: 6, kind: input, shape index: {}]   ;;  %s10778_s7 = inlined_call_operand.vmem [shape: f32[64,64], index: 7, kind: input, shape index: {}]   ;;  %s10779_s8 = inlined_call_operand.vmem [shape: f32[1,64], index: 8, kind: input, shape index: {}]   ;;  %s10780_s9 = inlined_call_operand.vmem [shape: f32[1,64], index: 9, kind: input, shape index: {}]   ;;  %s10781_s10 = inlined_call_operand.vmem [shape: f32[1,64], index: 10, kind: input, shape index: {}]   ;;  %s10782_s11 = inlined_call_operand.vmem [shape: f32[64,64], index: 11, kind: input, shape index: {}]   ;;  %s10783_s12 = inlined_call_operand.vmem [shape: f32[1,64], index: 12, kind: input, shape index: {}]   ;;  %s10784_s13 = inlined_call_operand.hbm [shape: f32[64,128], index: 13, kind: input, shape index: {}]   ;;  %s10785_s14 = inlined_call_operand.vmem [shape: f32[1,128], index: 14, kind: input, shape index: {}]   ;;  %s10786_s15 = inlined_call_operand.hbm [shape: f32[64,64], index: 15, kind: input, shape index: {}]   ;;  %s10787_s16 = inlined_call_operand.vmem [shape: f32[1,64], index: 16, kind: input, shape index: {}]   ;;  %s10788_s17 = inlined_call_operand.vmem [shape: f32[1,64], index: 17, kind: input, shape index: {}]   ;;  %s10789_s18 = inlined_call_operand.vmem [shape: f32[1,64], index: 18, kind: input, shape index: {}]   ;;  %s10790_s19 = inlined_call_operand.vmem [shape: f32[64,256], index: 19, kind: input, shape index: {}]   ;;  %s10791_s20 = inlined_call_operand.vmem [shape: f32[1,256], index: 20, kind: input, shape index: {}]   ;;  %s10792_s21 = inlined_call_operand.vmem [shape: f32[256,64], index: 21, kind: input, shape index: {}]   ;;  %s10793_s22 = inlined_call_operand.vmem [shape: f32[1,64], index: 22, kind: input, shape index: {}]   ;;  %s10794_s23 = inlined_call_operand.hbm [shape: f32[2,8,64], index: 23, kind: output, shape index: {0}]   ;;  %s10795_s24 = inlined_call_operand.hbm [shape: f32[2,1,64], index: 24, kind: output, shape index: {1}]   ;;  %s10796_s25 = inlined_call_operand.hbm [shape: f32[2,1,128], index: 25, kind: output, shape index: {2}]  }
   0x1   :  { %10838 = sst [smem:[#allocation30_spill]] %s10771_s0 }
   0x2   :  { %10839 = sst [smem:[#allocation31_spill]] %s10772_s1 }
   0x3   :  { %10840 = sst [smem:[#allocation32_spill]] %s10773_s2 }
   0x4   :  { %10841 = sst [smem:[#allocation33_spill]] %s10774_s3 }
   0x5   :  { %10842 = sst [smem:[#allocation34_spill]] %s10775_s4 }
   0x6   :  { %10843 = sst [smem:[#allocation35_spill]] %s10776_s5 }
   0x7   :  { %10844 = sst [smem:[#allocation36_spill]] %s10777_s6 }
   0x8   :  { %10845 = sst [smem:[#allocation37_spill]] %s10778_s7 }
   0x9   :  { %10846 = sst [smem:[#allocation38_spill]] %s10779_s8 }
   0xa   :  { %10847 = sst [smem:[#allocation39_spill]] %s10780_s9 }
   0xb   :  { %10848 = sst [smem:[#allocation40_spill]] %s10784_s13 }
   0xc   :  { %10849 = sst [smem:[#allocation41_spill]] %s10786_s15 }
   0xd   :  { %10850 = sst [smem:[#allocation42_spill]] %s10788_s17 }
   0xe   :  { %10851 = sst [smem:[#allocation43_spill]] %s10789_s18 }
   0xf   :  { %10852 = sst [smem:[#allocation44_spill]] %s10791_s20 }
  0x10   :  { %10853 = sst [smem:[#allocation45_spill]] %s10793_s22 }
  0x11   :  { %10854 = sst [smem:[#allocation46_spill]] %s10794_s23 }
  0x12   :  { %10855 = sst [smem:[#allocation47_spill]] %s10795_s24 }
  0x13   :  { %10856 = sst [smem:[#allocation48_spill]] %s10796_s25 }
  0x14   :  { %31 = vsyncpa [#allocation3], 0 }
  0x15   :  { %33 = vsyncpa [#allocation3 + $0x1], 0 }
  0x16   :  { %34 = vsyncpa [#allocation6], 0 }
  0x17   :  { %36 = vsyncpa [#allocation6 + $0x1], 0 }
  0x18   :  { %37 = vsyncpa [#allocation9], 0 }
  0x19   :  { %38 = vsyncpa [#allocation12], 0 }
  0x1a   :  { %39 = vsyncpa [#allocation4], 0 }
  0x1b   :  { %41 = vsyncpa [#allocation4 + $0x1], 0 }
  0x1c   :  { %42 = vsyncpa [#allocation15], 0 }
  0x1d   :  { %44 = vsyncpa [#allocation15 + $0x1], 0  ;;  %s8980_s29 = smov 0   ;;  %s8982_s2 = smov 0  }
  0x1e   :  { %s8984_s6 = smov 0   ;;  %s8986_s30 = smov 0  }
  0x1f LB: > { %10857 = sst [smem:[#allocation23_spill]] %s8806_s29  ;;  %s9001_s7 = sadd.s32 4294967295, %s8818_s30   ;;  %s8818_s30 = sphi %s8986_s30, %s10916_s30   ;;  %s8814_s6 = sphi %s8984_s6, %s10918_s6   ;;  %s8810_s2 = sphi %s8982_s2, %s10920_s2   ;;  %s8806_s29 = sphi %s8980_s29, %s10919_s29  }
  0x20   : > { %10858 = sst [smem:[#allocation24_spill]] %s8814_s6  ;;  %s10802_s3 = sadd.s32 4294967294, %s8818_s30  }
  0x21   : > { %10859 = sst [smem:[#allocation25_spill]] %s8818_s30  ;;  %s9005_s26 = sadd.s32 1, %s8818_s30  }
  0x22   : > { %10860 = sst [smem:[#allocation26_spill]] %s9005_s26  ;;  %s57_s1 = sadd.s32 1, %s8814_s6 }
  0x23   : > { %s54_s8 = ssub.s32 %s8818_s30, %s9005_s26  ;;  %p64_p0 = scmp.ne.s32.totalorder %s8814_s6, %s8810_s2 }
  0x24   : > { %p55_p1 = scmp.eq.s32.totalorder %s54_s8, 0  ;;  %p65_p2 = scmp.eq.s32.totalorder %s8818_s30, 0 }
  0x25   : > { %p70_p3 = scmp.ne.s32.totalorder %s8810_s2, %s8806_s29  ;;  %p10806_p4 = scmp.eq.s32.totalorder %s9001_s7, 0 }
  0x26   : > { %s9017_s27 = scalar_select %p55_p1, %s8814_s6, %s57_s1  }
  0x27   : > { %p9019_p5 = por %p65_p2, %p64_p0  ;;  %p9025_p6 = por %p10806_p4, %p70_p3 }
  0x28   : > { %10861 = sst [smem:[#allocation27_spill]] %s9017_s27  ;;  %p566_p7 = scmp.eq.s32.totalorder %s9001_s7, 1 }
  0x29   : > { %s10863_s28 = scalar_select %p9025_p6, 1, 0 }
  0x2a   : > { %p572_p8 = scmp.eq.s32.totalorder %s10802_s3, 1  ;;  %p7731_p9 = scmp.ge.s32.totalorder %s8818_s30, 1 }
  0x2b   : > { %p631_p10 = scmp.lt.s32.totalorder %s8818_s30, 3  ;;  %p9034_p11 = por %p566_p7, %p64_p0 }
  0x2c   : > { %p9038_p12 = por %p572_p8, %p70_p3  ;;  %s8820_s1 = smov [#allocation8]  }
  0x2d   : > { %s10864_s9 = scalar_select %p9034_p11, 1, 0 }
  0x2e   : > { %s10866_s5 = scalar_select %p9038_p12, 1, 0 }
  0x2f   : > { %10865 = sst [smem:[#allocation28_spill]] %s10864_s9  ;;  %p9042_p13 = pnand %p7731_p9, %p631_p10 }
  0x30   : > { %10867 = sst [smem:[#allocation29_spill]] %s10866_s5  ;;  %s647_s8 = sshll.u32 %s8820_s1, 4  ;;  %s648_s8 = int_to_ptr.vmem [resolvable:$true] %s647_s8 }
  0x31   : > { %s10868_s0 = scalar_select %p9042_p13, 1, 0 }
  0x32   : > { %p8355_p2 = pneg %p9042_p13  ;;  %p8388_p3 = scmp.lt.s32.totalorder %s8818_s30, 2 }
  0x33   : > { %s9057_s27 = sand.u32 1, %s8814_s6   ;;  %s750_s26 = sand.u32 1, %s8818_s30  }
  0x34   : > { %p9051_p0 = pnand %p8355_p2, %p10806_p4  ;;  %s8535_s5 = scalar_lea.vmem %s648_s8, 16 }
  0x35   : > { %p8536_p8 = scmp.ne.s32.totalorder %s648_s8, %s8535_s5  ;;  %s8542_s1 = scalar_lea.vmem %s648_s8, 32 }
  0x36   : > { %s10869_s3 = scalar_select %p9051_p0, 1, 0 }
  0x37   : > { %p10814_p7 = pneg %p9051_p0  ;;  %p8543_p1 = scmp.lt.s32.totalorder %s648_s8, %s648_s8 }
  0x38   : > { %p8544_p2 = scmp.lt.s32.totalorder %s8542_s1, %s8535_s5 }
  0x39   : > { %p8538_p9 = pnand %p8536_p8, %p10814_p7 }
  0x3a   : > { %p8545_p4 = por %p8544_p2, %p8543_p1 }
  0x3b   : > { %p8539_p10 = pneg %p8538_p9 }
  0x3d   : > { %p8546_p12 = pnand %p8545_p4, %p8539_p10 }
  0x3f   : > { %8549 = shalt.err (!%p8546_p12)
}
  0x40   : > { %s10870_s23 = sld [smem:[#allocation34_spill]]  ;;  %p9074_p8 = pnand %p8388_p3, %p9019_p5 }
  0x41   : > { %s7738_s5 = sshll.u32 %s9057_s27, 4  ;;  %s7910_s1 = sshll.u32 %s8818_s30, 8 }
  0x42   : > { %s10872_s9 = sld [smem:[#allocation31_spill]]  ;;  %s754_s29 = scalar_lea.vmem [#allocation5], %s7738_s5 }
  0x43   : > { %s761_s6 = sshll.u32 %s754_s29, 4  ;;  %p9093_p5 = pneg %p9074_p8  ;;  %s9085_s6 = int_to_ptr.vmem [resolvable:$true] %s761_s6 }
  0x46   : > { %8358 = dma.hbm_to_vmem [thread:$0]  (!%p9051_p0), %s10870_s23, 16, %s648_s8, [#allocation9]  }
  0x47   : > { %s9087_s23 = scalar_lea.sflag [#allocation6], %s750_s26 }
  0x48   : > { %s9083_s20 = scalar_lea.hbm %s10872_s9, %s7910_s1  ;;  %s8555_s5 = scalar_lea.hbm %s10872_s9, 512 }
  0x49   : > { %s8550_s4 = scalar_lea.hbm %s9083_s20, 256  ;;  %p8556_p3 = scmp.lt.s32.totalorder %s9083_s20, %s10872_s9 }
  0x4a   : > { %p8551_p4 = scmp.ne.s32.totalorder %s9083_s20, %s8550_s4  ;;  %p8557_p9 = scmp.lt.s32.totalorder %s8555_s5, %s8550_s4 }
  0x4c   : > { %p8553_p12 = pnand %p9093_p5, %p8551_p4  ;;  %p8558_p10 = por %p8557_p9, %p8556_p3 }
  0x4e   : > { %p8554_p1 = pneg %p8553_p12 }
  0x50   : > { %p8559_p2 = pnand %p8558_p10, %p8554_p1 }
  0x52   : > { %8562 = shalt.err (!%p8559_p2)
}
  0x53   : > { %s8563_s26 = scalar_lea.vmem %s9085_s6, 256  ;;  %s8821_s18 = smov [#allocation5]  }
  0x54   : > { %p8564_p7 = scmp.ne.s32.totalorder %s9085_s6, %s8563_s26  ;;  %s8568_s24 = sshll.u32 %s8821_s18, 4  ;;  %s8569_s24 = int_to_ptr.vmem [resolvable:$false] %s8568_s24 }
  0x55   : > { %s8570_s25 = scalar_lea.vmem %s8569_s24, 512  ;;  %p8571_p11 = scmp.lt.s32.totalorder %s9085_s6, %s8569_s24 }
  0x56   : > { %p8566_p4 = pnand %p8564_p7, %p9093_p5  ;;  %p8572_p6 = scmp.lt.s32.totalorder %s8570_s25, %s8563_s26 }
  0x58   : > { %p8567_p12 = pneg %p8566_p4  ;;  %p8573_p13 = por %p8572_p6, %p8571_p11 }
  0x5a   : > { %p8574_p0 = pnand %p8573_p13, %p8567_p12 }
  0x5c   : > { %8577 = shalt.err (!%p8574_p0)
}
  0x5d   : > { %s8822_s4 = smov 128   ;;  %s8823_s5 = smov 8  }
  0x5e   : > { %8371 = dma.hbm_to_vmem [thread:$0]  (!%p9074_p8), %s9083_s20, 256, %s9085_s6, %s9087_s23, %s8822_s4, %s8822_s4, %s8823_s5  }
  0x5f   : > { %s8824_s18 = smov [#allocation10]   ;;  %s8825_s29 = smov [#allocation11]  }
  0x60   : > { %s681_s1 = sshll.u32 %s8824_s18, 4  ;;  %s697_s26 = sshll.u32 %s8825_s29, 4  ;;  %s682_s1 = int_to_ptr.vmem [resolvable:$true] %s681_s1  ;;  %s698_s26 = int_to_ptr.vmem [resolvable:$true] %s697_s26 }
  0x61   : > { %s8589_s24 = scalar_lea.vmem %s682_s1, 1024  ;;  %p10874_p11 = scmp.ne.s32.totalorder %s10869_s3, 0 }
  0x62   : > { %p8590_p6 = scmp.ne.s32.totalorder %s682_s1, %s8589_s24  ;;  %p8597_p1 = scmp.lt.s32.totalorder %s682_s1, %s682_s1 }
  0x63   : > { %p10875_p13 = pneg %p10874_p11  ;;  %p8598_p3 = scmp.lt.s32.totalorder %s8589_s24, %s8589_s24 }
  0x65   : > { %p8592_p0 = pnand %p8590_p6, %p10875_p13  ;;  %p8599_p9 = por %p8598_p3, %p8597_p1 }
  0x67   : > { %p8593_p7 = pneg %p8592_p0 }
  0x69   : > { %p8600_p10 = pnand %p8599_p9, %p8593_p7 }
  0x6b   : > { %8603 = shalt.err (!%p8600_p10)
}
  0x6c   : > { %s10876_s13 = sld [smem:[#allocation40_spill]]  ;;  %s8615_s25 = scalar_lea.vmem %s698_s26, 1024 }
  0x6d   : > { %p8616_p2 = scmp.ne.s32.totalorder %s698_s26, %s8615_s25  ;;  %p10877_p4 = pmov %p10875_p13 }
  0x6e   : > { %p8623_p13 = scmp.lt.s32.totalorder %s698_s26, %s698_s26  ;;  %p8624_p0 = scmp.lt.s32.totalorder %s8615_s25, %s8615_s25 }
  0x6f   : > { %p8618_p12 = pnand %p8616_p2, %p10877_p4 }
  0x70   : > { %p8625_p7 = por %p8624_p0, %p8623_p13 }
  0x71   : > { %p8619_p6 = pneg %p8618_p12 }
  0x72   : > { %8361 = dma.hbm_to_vmem [thread:$0]  (!%p10874_p11), %s10876_s13, 1024, %s682_s1, [#allocation9], %s8822_s4, %s8822_s4, %s8823_s5  }
  0x73   : > { %p8626_p1 = pnand %p8625_p7, %p8619_p6 }
  0x75   : > { %8629 = shalt.err (!%p8626_p1)
}
  0x76   : > { %s10878_s15 = sld [smem:[#allocation41_spill]]  ;;  %s7736_s1 = sshll.u32 %s9057_s27, 3 }
  0x77   : > { %s7737_s24 = sshll.u32 %s8818_s30, 7  ;;  %s10879_s25 = sld [smem:[#allocation30_spill]] }
  0x78   : > { %s736_s3 = scalar_lea.vmem [#allocation2], %s7736_s1  ;;  %s7741_s18 = sshll.u32 %s8818_s30, 4 }
  0x79   : > { %s743_s13 = sshll.u32 %s736_s3, 4  ;;  %s733_s29 = scalar_lea.sflag [#allocation3], %s9057_s27  ;;  %s744_s13 = int_to_ptr.vmem [resolvable:$true] %s743_s13 }
  0x7c   : > { %8364 = dma.hbm_to_vmem [thread:$0]  (!%p10874_p11), %s10878_s15, 1024, %s698_s26, [#allocation12], %s8822_s4, %s8822_s4, %s8823_s5  }
  0x7d   : > { %s9146_s9 = scalar_lea.hbm %s10879_s25, %s7737_s24  ;;  %s8635_s26 = scalar_lea.hbm %s10879_s25, 256 }
  0x7e   : > { %s8630_s17 = scalar_lea.hbm %s9146_s9, 128  ;;  %p8636_p10 = scmp.lt.s32.totalorder %s9146_s9, %s10879_s25 }
  0x7f   : > { %p8631_p3 = scmp.ne.s32.totalorder %s9146_s9, %s8630_s17  ;;  %p8637_p2 = scmp.lt.s32.totalorder %s8635_s26, %s8630_s17 }
  0x81   : > { %p8633_p9 = pnand %p8631_p3, %p9093_p5  ;;  %p8638_p4 = por %p8637_p2, %p8636_p10 }
  0x83   : > { %p8634_p11 = pneg %p8633_p9 }
  0x85   : > { %p8639_p12 = pnand %p8638_p4, %p8634_p11 }
  0x87   : > { %8642 = shalt.err (!%p8639_p12)
}
  0x88   : > { %s8643_s1 = scalar_lea.vmem %s744_s13, 128  ;;  %s8826_s6 = smov [#allocation2]  }
  0x89   : > { %p8644_p6 = scmp.ne.s32.totalorder %s744_s13, %s8643_s1  ;;  %s8648_s3 = sshll.u32 %s8826_s6, 4  ;;  %s8649_s3 = int_to_ptr.vmem [resolvable:$false] %s8648_s3 }
  0x8a   : > { %s8650_s15 = scalar_lea.vmem %s8649_s3, 256  ;;  %p8651_p7 = scmp.lt.s32.totalorder %s744_s13, %s8649_s3 }
  0x8b   : > { %p8646_p13 = pnand %p8644_p6, %p9093_p5  ;;  %p8652_p1 = scmp.lt.s32.totalorder %s8650_s15, %s8643_s1 }
  0x8d   : > { %p8647_p0 = pneg %p8646_p13  ;;  %p8653_p3 = por %p8652_p1, %p8651_p7 }
  0x8f   : > { %p8654_p9 = pnand %p8653_p3, %p8647_p0 }
  0x91   : > { %8657 = shalt.err (!%p8654_p9)
}
  0x92   : > { %8368 = dma.hbm_to_vmem [thread:$0]  (!%p9074_p8), %s9146_s9, 128, %s744_s13, %s733_s29  }
  0x93   : > { %s10880_s5 = sld [smem:[#allocation32_spill]]  ;;  %s774_s20 = scalar_lea.vmem [#allocation7], %s9057_s27 }
  0x94   : > { %s781_s24 = sshll.u32 %s774_s20, 4  ;;  %s782_s24 = int_to_ptr.vmem [resolvable:$true] %s781_s24 }
  0x99   : > { %s779_s26 = scalar_lea.hbm %s10880_s5, %s7741_s18  ;;  %s8663_s3 = scalar_lea.hbm %s10880_s5, 32 }
  0x9a   : > { %s8658_s6 = scalar_lea.hbm %s779_s26, 16  ;;  %p8664_p4 = scmp.lt.s32.totalorder %s779_s26, %s10880_s5 }
  0x9b   : > { %p8659_p11 = scmp.ne.s32.totalorder %s779_s26, %s8658_s6  ;;  %p8665_p12 = scmp.lt.s32.totalorder %s8663_s3, %s8658_s6 }
  0x9d   : > { %p8661_p10 = pnand %p8659_p11, %p9093_p5  ;;  %p8666_p6 = por %p8665_p12, %p8664_p4 }
  0x9f   : > { %p8662_p2 = pneg %p8661_p10 }
  0xa1   : > { %p8667_p13 = pnand %p8666_p6, %p8662_p2 }
  0xa3   : > { %8670 = shalt.err (!%p8667_p13)
}
  0xa4   : > { %s8671_s13 = scalar_lea.vmem %s782_s24, 16  ;;  %s8827_s27 = smov [#allocation7]  }
  0xa5   : > { %p8672_p0 = scmp.ne.s32.totalorder %s782_s24, %s8671_s13  ;;  %s8676_s9 = sshll.u32 %s8827_s27, 4  ;;  %s8677_s9 = int_to_ptr.vmem [resolvable:$false] %s8676_s9 }
  0xa6   : > { %s8678_s18 = scalar_lea.vmem %s8677_s9, 32  ;;  %p8679_p3 = scmp.lt.s32.totalorder %s782_s24, %s8677_s9 }
  0xa7   : > { %p8674_p7 = pnand %p8672_p0, %p9093_p5  ;;  %p8680_p9 = scmp.lt.s32.totalorder %s8678_s18, %s8671_s13 }
  0xa9   : > { %p8675_p1 = pneg %p8674_p7  ;;  %p8681_p11 = por %p8680_p9, %p8679_p3 }
  0xab   : > { %p8682_p10 = pnand %p8681_p11, %p8675_p1 }
  0xad   : > { %8685 = shalt.err (!%p8682_p10)
}
  0xae   : > { %8374 = dma.hbm_to_vmem [thread:$0]  (!%p9074_p8), %s779_s26, 16, %s782_s24, %s9087_s23  }
  0xaf   : > { %p10881_p2 = scmp.ne.s32.totalorder %s10868_s0, 0 }
  0xb0   : > { %s9186_s30 = sand.u32 (!%p10881_p2), 1, %s8810_s2   ;;  %p10882_p5 = scmp.ne.s32.totalorder (!%p10881_p2), %s10863_s28, 0 }
  0xb1   : > { %790 = sbr.rel (%p10881_p2) target bundleno = 4121 (0x1019), region = 112  ;;  %s10824_s8 = sshll.u32 (!%p10881_p2), %s9186_s30, 3 }
  0xb2   : > { %s793_s25 = scalar_lea.sflag (!%p10881_p2), [#allocation3], %s9186_s30  ;;  %s9192_s29 = scalar_lea.vmem (!%p10881_p2), [#allocation2], %s10824_s8 }
  0xb6   : > { %8781 = dma.done.wait (%p10882_p5), %s793_s25, 128  }
  0xb7   : > { %8783 = vsyncadd (%p10882_p5), %s793_s25, 4294967168  ;;  %s10825_s22 = sand.u32 1, %s9001_s7   ;;  %s7744_s0 = sshll.u32 %s9186_s30, 4 }
  0xb8   : > { %s802_s23 = scalar_lea.sflag [#allocation6], %s10825_s22  ;;  %s9202_s17 = scalar_lea.vmem [#allocation5], %s7744_s0 }
  0xb9   : > { %8785 = dma.done.wait (%p10882_p5), %s802_s23, 272  }
  0xba   : > { %8787 = vsyncadd (%p10882_p5), %s802_s23, 4294967024  ;;  %s813_s4 = scalar_lea.vmem [#allocation7], %s9186_s30  ;;  %p10883_p8 = scmp.eq.s32.totalorder %s9001_s7, 0 }
  0xbc   : > { %8789 = dma.done.wait (%p10883_p8), [#allocation9], 1040   ;;  %p10884_p4 = pmov %p10883_p8 }
  0xbe   : > { %8791 = vsyncadd (%p10884_p4), [#allocation9], 4294966256  ;;  %p10885_p12 = pmov %p10884_p4 }
  0xbf   : > { %p10886_p6 = pmov %p10884_p4 }
  0xc0   : > { %8793 = dma.done.wait (%p10885_p12), [#allocation12], 1024  }
  0xc1   : > { %8795 = vsyncadd (%p10886_p6), [#allocation12], 4294966272  ;;  %vm910_vm0 = vcmask 523264   ;;  %v909_v0 = vld [vmem:[%s9192_s29] sm:$0xff]  ;;  %s10887_s20 = sld [smem:[#allocation35_spill]]  ;;  %v8828_v8 = vmov 0.0   ;;  %v962_v36 = vlaneseq }
  0xc2   : > { %v911_v1 = vsel %vm910_vm0, %v909_v0, 0.0  ;;  %v916_v2 = vmul.f32 %v909_v0, %v909_v0  ;;  %1039 = vmatprep.mubr.f32.mxu1 %v8828_v8  ;;  %8083 = vmatprep.subr.mxu0 %v8828_v8  ;;  %s10888_s3 = sld [smem:[#allocation33_spill]]  ;;  %v7750_v33 = vld [vmem:[#allocation8] ss:$0 sm:$0xff]  ;;  %s8829_s18 = smov 104   ;;  %vm8837_vm1 = vmmov 0  }
  0xc3   : > { %912 = vadd.xlane.f32.xlu0 %v911_v1  ;;  %v9275_v37 = vshrl.u32 %v962_v36, 7  ;;  %s10889_s9 = sld [smem:[#allocation36_spill]]  ;;  %s8830_s25 = smov 120   ;;  %8085 = vmatprep.mubr.msk.f32.mxu0 %vm8837_vm1, %v8828_v8  ;;  %v8838_v51 = vmov 1983009808   ;;  %vm1946_vm2 = vcmask 64512  }
  0xc4   : > { %v917_v3 = vsel %vm910_vm0, %v916_v2, 0.0  ;;  %s8831_s0 = smov 112   ;;  %s8832_s23 = smov 96   ;;  %v1072_v52 = vunpack.c.l.s4 %v8838_v51  ;;  %v8839_v54 = vmov 1934713408   ;;  %vm3528_vm3 = vcmask 130048  }
  0xc5   : > { %v964_v38 = vsub.s32 0, %v9275_v37  ;;  %s8833_s28 = smov 88   ;;  %s8834_s26 = smov 80   ;;  %v1136_v55 = vunpack.c.l.s4 %v8839_v54  ;;  %vm3530_vm4 = vcmask 195584   ;;  %vm3532_vm5 = vcmask 261120  }
  0xc6   : > { %s8835_s24 = smov 72   ;;  %s8836_s6 = smov 64   ;;  %v1073_v56 = vunpack.c.0.s8 %v1072_v52  ;;  %vm3534_vm6 = vcmask 326656   ;;  %vm3536_vm7 = vcmask 392192   ;;  %vm3538_vm8 = vcmask 457728  }
  0xc7   : > { %918 = vadd.xlane.f32.xlu0 %v917_v3  ;;  %v959_v4 = vld [vmem:[%s10887_s20 + $0x78] sm:$0xff]  ;;  %v958_v5 = vld [vmem:[%s10887_s20 + $0x70] sm:$0xff]  ;;  %v957_v6 = vld [vmem:[%s10887_s20 + $0x68] sm:$0xff]  ;;  %v1137_v59 = vunpack.c.0.s8 %v1136_v55  ;;  %s8840_s27 = smov 16   ;;  %s10834_s15 = smov 24   ;;  %vm7228_vm9 = vcmask 654336  }
  0xc8   : > { %991 = vmatprep.subr.mxu1 %v959_v4  ;;  %v956_v7 = vld [vmem:[%s10887_s20 + $0x60] sm:$0xff]  ;;  %v955_v9 = vld [vmem:[%s10887_s20 + $0x58] sm:$0xff]  ;;  %v954_v10 = vld [vmem:[%s10887_s20 + $0x50] sm:$0xff]  ;;  %v9322_v60 = vsub.s32 %v1073_v56, %v9275_v37  ;;  %s10832_s8 = smov 40   ;;  %s10830_s13 = smov 32   ;;  %vm3729_vm10 = vcmask 516096  }
  0xc9   : > { %992 = vmatpush1.msra.mxu1 %v958_v5  ;;  %v953_v11 = vld [vmem:[%s10887_s20 + $0x48] sm:$0xff]  ;;  %v952_v12 = vld [vmem:[%s10887_s20 + $0x40] sm:$0xff]  ;;  %v951_v13 = vld [vmem:[%s10887_s20 + $0x38] sm:$0xff]  ;;  %v9325_v3 = vsub.s32 %v1137_v59, %v9275_v37  ;;  %s10828_s22 = smov 56   ;;  %s10826_s1 = smov 48   ;;  %vm7230_vm11 = vcmask 785408  }
  0xca   : > { %993 = vmatprep.subr.mxu1 %v957_v6  ;;  %v950_v14 = vld [vmem:[%s10887_s20 + $0x30] sm:$0xff]  ;;  %v949_v15 = vld [vmem:[%s10887_s20 + $0x28] sm:$0xff]  ;;  %v948_v16 = vld [vmem:[%s10887_s20 + $0x20] sm:$0xff]  ;;  %vm7232_vm12 = vcmask 916480  }
  0xcb   : > { %994 = vmatpush1.msra.mxu1 %v956_v7  ;;  %v947_v17 = vld [vmem:[%s10887_s20 + $0x18] sm:$0xff]  ;;  %v946_v18 = vld [vmem:[%s10887_s20 + $0x10] sm:$0xff]  ;;  %v945_v19 = vld [vmem:[%s10887_s20 + $0x8] sm:$0xff] }
  0xcc   : > { %995 = vmatprep.subr.mxu1 %v955_v9  ;;  %v944_v20 = vld [vmem:[%s10887_s20] sm:$0xff] }
  0xcd   : > { %996 = vmatpush1.msra.mxu1 %v954_v10  ;;  %v7749_v31 = vld [vmem:[%s10888_s3] ss:$0 sm:$0xff]  ;;  %s10890_s3 = sld [smem:[#allocation37_spill]] }
  0xce   : > { %997 = vmatprep.subr.mxu1 %v953_v11  ;;  %v9281_v39 = vld [vmem:[%s10889_s9] sm:$0x3]  ;;  %s10836_s9 = smov 8  }
  0xcf   : > { %998 = vmatpush1.msra.mxu1 %v952_v12  ;;  %v965_v40 = vrot.slane %v9281_v39, %v964_v38 }
  0xd0   : > { %999 = vmatprep.subr.mxu1 %v951_v13 }
  0xd1   : > { %1000 = vmatpush1.msra.mxu1 %v950_v14 }
  0xd2   : > { %1001 = vmatprep.subr.mxu1 %v949_v15 }
  0xd3   : > { %1002 = vmatpush1.msra.mxu1 %v948_v16 }
  0xd4   : > { %1003 = vmatprep.subr.mxu1 %v947_v17 }
  0xd5   : > { %1004 = vmatpush1.msra.mxu1 %v946_v18 }
  0xd6   : > { %1005 = vmatprep.subr.mxu1 %v945_v19 }
  0xd7   : > { %1006 = vmatpush1.msra.mxu1 %v944_v20 }
  0xd8   : > { %8063 = vmatprep.subr.mxu1 %v8828_v8 }
 0x14c   : > { %v913_v21 = vpop.xlane.xlu0 %912 }
 0x14d   : > { %v915_v22 = vmul.f32 0.015625, %v913_v21 }
 0x14f   : > { %v921_v24 = vmul.f32 %v915_v22, %v915_v22  ;;  %v926_v29 = vsub.f32 %v909_v0, %v915_v22 }
 0x150   : > { %v919_v23 = vpop.xlane.xlu0 %918 }
 0x151   : > { %v920_v25 = vmul.f32 0.015625, %v919_v23 }
 0x153   : > { %v922_v26 = vsub.f32 %v920_v25, %v921_v24 }
 0x155   : > { %v923_v27 = vmax.f32 %v922_v26, 0.0 }
 0x157   : > { %v924_v28 = vadd.f32 1e-05, %v923_v27 }
 0x159   : > { %8449 = vrsqrt.f32 %v924_v28 }
 0x166   : > { %v8450_v30 = vpop.eup %8449 }
 0x167   : > { %v927_v32 = vmul.f32 %v8450_v30, %v926_v29 }
 0x169   : > { %v935_v34 = vmul.f32 %v7749_v31, %v927_v32 }
 0x16b   : > { %v943_v35 = vadd.f32 %v7750_v33, %v935_v34 }
 0x16d   : > { %7751 = vmatmul.mubr.msk.f32.vlgmr.msra.gmra.mxu1 %vm910_vm0, %v943_v35 }
 0x16e   : > { %8065 = vmatprep.mubr.msk.f32.mxu1 %vm8837_vm1, %v8828_v8 }
 0x22d   : > { %v1041_v41 = vpop.f32.mrf.mxu1 }
 0x22e   : > { %v1042_v42 = vadd.f32 %v1041_v41, %v965_v40 }
 0x230   : > { %1346 = vrot.lane.b32.xlu0 %v1042_v42, %s8829_s18  ;;  %1342 = vrot.lane.b32.xlu1 %v1042_v42, %s8830_s25  ;;  %v9288_v43 = vmul.f32 0.35355338, %v1042_v42 }
 0x234   : > { %1344 = vrot.lane.b32.xlu1 %v1042_v42, %s8831_s0  ;;  %1048 = vrot.lane.b32.xlu0 %v9288_v43, %s8830_s25 }
 0x238   : > { %1348 = vrot.lane.b32.xlu1 %v1042_v42, %s8832_s23 }
 0x23c   : > { %1350 = vrot.lane.b32.xlu1 %v1042_v42, %s8833_s28 }
 0x240   : > { %1352 = vrot.lane.b32.xlu1 %v1042_v42, %s8834_s26 }
 0x244   : > { %1354 = vrot.lane.b32.xlu1 %v1042_v42, %s8835_s24 }
 0x248   : > { %1356 = vrot.lane.b32.xlu1 %v1042_v42, %s8836_s6 }
 0x2a2   : > { %v1343_v44 = vpop.permute.xlu1 %1342  ;;  %v1347_v45 = vpop.permute.xlu0 %1346 }
 0x2a3   : > { %1358 = vrot.lane.b32.xlu1 %v1343_v44, %s8836_s6 }
 0x2a6   : > { %v1345_v46 = vpop.permute.xlu1 %1344  ;;  %v1049_v57 = vpop.permute.xlu0 %1048 }
 0x2a7   : > { %1362 = vrot.lane.b32.xlu1 %v1347_v45, %s8836_s6  ;;  %1360 = vrot.lane.b32.xlu0 %v1345_v46, %s8836_s6 }
 0x2aa   : > { %v1349_v47 = vpop.permute.xlu1 %1348 }
 0x2ab   : > { %1051 = vrot.lane.b32.xlu1 %v9288_v43, %s8831_s0  ;;  %1054 = vrot.lane.b32.xlu0 %v9288_v43, %s8829_s18 }
 0x2ae   : > { %v1351_v48 = vpop.permute.xlu1 %1350 }
 0x2af   : > { %1057 = vrot.lane.b32.xlu1 %v9288_v43, %s8832_s23  ;;  %1060 = vrot.lane.b32.xlu0 %v9288_v43, %s8833_s28 }
 0x2b2   : > { %v1353_v49 = vpop.permute.xlu1 %1352 }
 0x2b3   : > { %1364 = vrot.lane.b32.xlu1 %v1349_v47, %s8836_s6  ;;  %1366 = vrot.lane.b32.xlu0 %v1351_v48, %s8836_s6 }
 0x2b6   : > { %v1355_v50 = vpop.permute.xlu1 %1354 }
 0x2b7   : > { %1368 = vrot.lane.b32.xlu1 %v1353_v49, %s8836_s6  ;;  %1370 = vrot.lane.b32.xlu0 %v1355_v50, %s8836_s6 }
 0x2ba   : > { %v1357_v53 = vpop.permute.xlu1 %1356 }
 0x2bb   : > { %1063 = vrot.lane.b32.xlu1 %v9288_v43, %s8834_s26  ;;  %1066 = vrot.lane.b32.xlu0 %v9288_v43, %s8835_s24 }
 0x315   : > { %v1359_v58 = vpop.permute.xlu1 %1358 }
 0x319   : > { %v1363_v61 = vpop.permute.xlu1 %1362  ;;  %v1361_v62 = vpop.permute.xlu0 %1360 }
 0x31a   : > { %v1396_v63 = vcombine.low %v1359_v58, %v1363_v61  ;;  %v1397_v0 = vcombine.high %v1359_v58, %v1363_v61  ;;  %v1380_v1 = vcombine.low %v1357_v53, %v1361_v62  ;;  %v1381_v2 = vcombine.high %v1357_v53, %v1361_v62 }
 0x31c   : > { %v1404_v4 = vrot.slane %v1396_v63, %v9322_v60  ;;  %v1411_v5 = vrot.slane %v1397_v0, %v9322_v60  ;;  %v1388_v6 = vrot.slane %v1380_v1, %v9322_v60  ;;  %v1395_v7 = vrot.slane %v1381_v2, %v9322_v60 }
 0x31d   : > { %v1052_v9 = vpop.permute.xlu1 %1051  ;;  %v1055_v10 = vpop.permute.xlu0 %1054 }
 0x31e   : > { %v1444_v11 = vcombine.low %v1388_v6, %v1404_v4  ;;  %v1445_v12 = vcombine.high %v1388_v6, %v1404_v4  ;;  %v1460_v13 = vcombine.low %v1395_v7, %v1411_v5  ;;  %v1461_v14 = vcombine.high %v1395_v7, %v1411_v5 }
 0x31f   : > { %v1069_v15 = vcombine.low %v9288_v43, %v1052_v9  ;;  %v1070_v16 = vcombine.high %v9288_v43, %v1052_v9  ;;  %v1085_v17 = vcombine.low %v1049_v57, %v1055_v10  ;;  %v1086_v18 = vcombine.high %v1049_v57, %v1055_v10 }
 0x320   : > { %v1452_v19 = vrot.slane %v1444_v11, %v9325_v3  ;;  %v1459_v20 = vrot.slane %v1445_v12, %v9325_v3  ;;  %v1468_v21 = vrot.slane %v1460_v13, %v9325_v3  ;;  %v1475_v22 = vrot.slane %v1461_v14, %v9325_v3 }
 0x321   : > { %v1077_v23 = vrot.slane %v1069_v15, %v9322_v60  ;;  %v1084_v24 = vrot.slane %v1070_v16, %v9322_v60  ;;  %v1093_v25 = vrot.slane %v1085_v17, %v9322_v60  ;;  %v1100_v26 = vrot.slane %v1086_v18, %v9322_v60  ;;  %v9341_v27 = vpop.permute.xlu1 %1057  ;;  %v9343_v28 = vpop.permute.xlu0 %1060 }
 0x322   : > { %v7760_v29 = vcombine.low %v1452_v19, %v1459_v20  ;;  %v7762_v30 = vcombine.high %v1452_v19, %v1459_v20  ;;  %v7764_v31 = vcombine.low %v1468_v21, %v1475_v22  ;;  %v7766_v32 = vcombine.high %v1468_v21, %v1475_v22 }
 0x323   : > { %v1133_v33 = vcombine.low %v1077_v23, %v1093_v25  ;;  %v1134_v34 = vcombine.high %v1077_v23, %v1093_v25  ;;  %v1149_v35 = vcombine.low %v1084_v24, %v1100_v26  ;;  %v1150_v36 = vcombine.high %v1084_v24, %v1100_v26 }
 0x324   : > { %v1524_v40 = vrot.slane %v7760_v29, %v9322_v60  ;;  %v1540_v41 = vrot.slane %v7762_v30, %v9322_v60  ;;  %v1556_v42 = vrot.slane %v7764_v31, %v9322_v60  ;;  %v1572_v43 = vrot.slane %v7766_v32, %v9322_v60 }
 0x325   : > { %v1141_v44 = vrot.slane %v1133_v33, %v9325_v3  ;;  %v1148_v45 = vrot.slane %v1134_v34, %v9325_v3  ;;  %v1157_v46 = vrot.slane %v1149_v35, %v9325_v3  ;;  %v1164_v47 = vrot.slane %v1150_v36, %v9325_v3  ;;  %v1365_v48 = vpop.permute.xlu1 %1364  ;;  %v1367_v49 = vpop.permute.xlu0 %1366 }
 0x326   : > { %v1580_v50 = vcombine.low %v1524_v40, %v1540_v41  ;;  %v1581_v51 = vcombine.high %v1524_v40, %v1540_v41  ;;  %v1612_v52 = vcombine.low %v1556_v42, %v1572_v43  ;;  %v1613_v57 = vcombine.high %v1556_v42, %v1572_v43 }
 0x327   : > { %v7752_v53 = vcombine.low %v1141_v44, %v1148_v45  ;;  %v7754_v54 = vcombine.high %v1141_v44, %v1148_v45  ;;  %v7756_v55 = vcombine.low %v1157_v46, %v1164_v47  ;;  %v7758_v56 = vcombine.high %v1157_v46, %v1164_v47 }
 0x328   : > { %v9354_v58 = vrot.slane %v1580_v50, %v9325_v3  ;;  %v9357_v59 = vrot.slane %v1612_v52, %v9325_v3  ;;  %v9376_v11 = vrot.slane %v1581_v51, %v9325_v3  ;;  %v9387_v21 = vrot.slane %v1613_v57, %v9325_v3 }
 0x329   : > { %v9360_v61 = vrot.slane %v7752_v53, %v9322_v60  ;;  %v9363_v62 = vrot.slane %v7754_v54, %v9322_v60  ;;  %v9366_v63 = vrot.slane %v7756_v55, %v9322_v60  ;;  %v9369_v0 = vrot.slane %v7758_v56, %v9322_v60  ;;  %v1369_v1 = vpop.permute.xlu1 %1368  ;;  %v1371_v2 = vpop.permute.xlu0 %1370 }
 0x32a   : > { %v1412_v4 = vcombine.low %v1365_v48, %v1369_v1  ;;  %v1413_v5 = vcombine.high %v1365_v48, %v1369_v1  ;;  %v1428_v6 = vcombine.low %v1367_v49, %v1371_v2  ;;  %v1429_v7 = vcombine.high %v1367_v49, %v1371_v2 }
 0x32b   : > { %v1269_v9 = vcombine.low %v9360_v61, %v9363_v62  ;;  %v1301_v10 = vcombine.low %v9366_v63, %v9369_v0  ;;  %v1644_v16 = vcombine.low %v9354_v58, %v9357_v59  ;;  %v1302_v42 = vcombine.high %v9366_v63, %v9369_v0 }
 0x32c   : > { %v1420_v12 = vrot.slane %v1412_v4, %v9322_v60  ;;  %v1427_v13 = vrot.slane %v1413_v5, %v9322_v60  ;;  %v1436_v14 = vrot.slane %v1428_v6, %v9322_v60  ;;  %v1443_v15 = vrot.slane %v1429_v7, %v9322_v60 }
 0x32d   : > { %v1064_v17 = vpop.permute.xlu1 %1063  ;;  %v1067_v18 = vpop.permute.xlu0 %1066  ;;  %v1277_v19 = vrot.slane %v1269_v9, %v9325_v3  ;;  %v1309_v20 = vrot.slane %v1301_v10, %v9325_v3  ;;  %8064 = vmatpush3.xpose.msk.msra.mxu1 %vm1946_vm2, %v1644_v16  ;;  %v1645_v52 = vcombine.high %v9354_v58, %v9357_v59  ;;  %v1316_v59 = vrot.slane %v1302_v42, %v9325_v3 }
 0x32e   : > { %v1476_v22 = vcombine.low %v1420_v12, %v1436_v14  ;;  %v1477_v23 = vcombine.high %v1420_v12, %v1436_v14  ;;  %v1492_v24 = vcombine.low %v1427_v13, %v1443_v15  ;;  %v1493_v25 = vcombine.high %v1427_v13, %v1443_v15  ;;  %8068 = vmatprep.subr.mxu1 %v8828_v8  ;;  %v1043_v42 = vpop.f32.mrf.mxu1 }
 0x32f   : > { %v1101_v26 = vcombine.low %v9341_v27, %v1064_v17  ;;  %v1102_v29 = vcombine.high %v9341_v27, %v1064_v17  ;;  %v1117_v30 = vcombine.low %v9343_v28, %v1067_v18  ;;  %v1118_v31 = vcombine.high %v9343_v28, %v1067_v18 }
 0x330   : > { %v1484_v32 = vrot.slane %v1476_v22, %v9325_v3  ;;  %v1491_v33 = vrot.slane %v1477_v23, %v9325_v3  ;;  %v1500_v34 = vrot.slane %v1492_v24, %v9325_v3  ;;  %v1507_v35 = vrot.slane %v1493_v25, %v9325_v3 }
 0x331   : > { %v1109_v36 = vrot.slane %v1101_v26, %v9322_v60  ;;  %v1116_v40 = vrot.slane %v1102_v29, %v9322_v60  ;;  %v1125_v27 = vrot.slane %v1117_v30, %v9322_v60  ;;  %v1132_v41 = vrot.slane %v1118_v31, %v9322_v60 }
 0x332   : > { %v1270_v28 = vcombine.high %v9360_v61, %v9363_v62  ;;  %v7761_v43 = vcombine.low %v1484_v32, %v1491_v33  ;;  %v7763_v44 = vcombine.high %v1484_v32, %v1491_v33  ;;  %v7765_v49 = vcombine.low %v1500_v34, %v1507_v35 }
 0x333   : > { %v1165_v45 = vcombine.low %v1109_v36, %v1125_v27  ;;  %v1166_v46 = vcombine.high %v1109_v36, %v1125_v27  ;;  %v1181_v47 = vcombine.low %v1116_v40, %v1132_v41  ;;  %v1182_v48 = vcombine.high %v1116_v40, %v1132_v41 }
 0x334   : > { %v7767_v50 = vcombine.high %v1500_v34, %v1507_v35  ;;  %v1333_v51 = vcombine.low %v1277_v19, %v1309_v20  ;;  %v1334_v57 = vcombine.high %v1277_v19, %v1309_v20  ;;  %v1531_v61 = vrot.slane %v7761_v43, %v9322_v60 }
 0x335   : > { %v1173_v53 = vrot.slane %v1165_v45, %v9325_v3  ;;  %v1180_v54 = vrot.slane %v1166_v46, %v9325_v3  ;;  %v1189_v55 = vrot.slane %v1181_v47, %v9325_v3  ;;  %v1196_v56 = vrot.slane %v1182_v48, %v9325_v3 }
 0x336   : > { %8066 = vmatmul.mubr.msk.f32.vlgmr.msra.gmra.mxu1 %vm1946_vm2, %v1333_v51  ;;  %v1547_v62 = vrot.slane %v7763_v44, %v9322_v60  ;;  %v1284_v58 = vrot.slane %v1270_v28, %v9325_v3  ;;  %v1563_v4 = vrot.slane %v7765_v49, %v9322_v60  ;;  %v1646_v5 = vcombine.low %v9376_v11, %v9387_v21 }
 0x337   : > { %v7753_v63 = vcombine.low %v1173_v53, %v1180_v54  ;;  %v7755_v0 = vcombine.high %v1173_v53, %v1180_v54  ;;  %v7757_v1 = vcombine.low %v1189_v55, %v1196_v56  ;;  %v7759_v2 = vcombine.high %v1189_v55, %v1196_v56  ;;  %8069 = vmatpush3.xpose.msk.msra.mxu1 %vm1946_vm2, %v1645_v52 }
 0x338   : > { %8070 = vmatprep.mubr.msk.f32.mxu1 %vm8837_vm1, %v8828_v8  ;;  %8073 = vmatprep.subr.mxu1 %v8828_v8  ;;  %v1579_v6 = vrot.slane %v7767_v50, %v9322_v60  ;;  %v1596_v7 = vcombine.low %v1531_v61, %v1547_v62  ;;  %v1597_v10 = vcombine.high %v1531_v61, %v1547_v62  ;;  %v968_v49 = vsub.s32 1, %v9275_v37 }
 0x339   : > { %v1220_v9 = vrot.slane %v7753_v63, %v9322_v60  ;;  %v1236_v12 = vrot.slane %v7755_v0, %v9322_v60  ;;  %v1252_v13 = vrot.slane %v7757_v1, %v9322_v60  ;;  %v1268_v14 = vrot.slane %v7759_v2, %v9322_v60 }
 0x33a   : > { %8071 = vmatmul.mubr.msk.f32.vlgmr.msra.gmra.mxu1 %vm1946_vm2, %v1334_v57  ;;  %v1604_v15 = vrot.slane %v1596_v7, %v9325_v3  ;;  %v1628_v16 = vcombine.low %v1563_v4, %v1579_v6  ;;  %v1629_v17 = vcombine.high %v1563_v4, %v1579_v6  ;;  %v1335_v18 = vcombine.low %v1284_v58, %v1316_v59 }
 0x33b   : > { %8074 = vmatpush3.xpose.msk.msra.mxu1 %vm1946_vm2, %v1646_v5  ;;  %8075 = vmatprep.mubr.msk.f32.mxu1 %vm8837_vm1, %v8828_v8  ;;  %v1285_v19 = vcombine.low %v1220_v9, %v1236_v12  ;;  %v1317_v20 = vcombine.low %v1252_v13, %v1268_v14  ;;  %v1647_v22 = vcombine.high %v9376_v11, %v9387_v21 }
 0x33c   : > { %8078 = vmatprep.subr.mxu1 %v8828_v8  ;;  %v1636_v23 = vrot.slane %v1628_v16, %v9325_v3  ;;  %v1286_v24 = vcombine.high %v1220_v9, %v1236_v12  ;;  %v1318_v26 = vcombine.high %v1252_v13, %v1268_v14  ;;  %v1611_v30 = vrot.slane %v1597_v10, %v9325_v3 }
 0x33d   : > { %v1293_v25 = vrot.slane %v1285_v19, %v9325_v3  ;;  %v1325_v29 = vrot.slane %v1317_v20, %v9325_v3  ;;  %v1643_v11 = vrot.slane %v1629_v17, %v9325_v3  ;;  %v1336_v21 = vcombine.high %v1284_v58, %v1316_v59 }
 0x33e   : > { %8076 = vmatmul.mubr.msk.f32.vlgmr.msra.gmra.mxu1 %vm1946_vm2, %v1335_v18  ;;  %v1648_v31 = vcombine.low %v1604_v15, %v1636_v23  ;;  %v1649_v32 = vcombine.high %v1604_v15, %v1636_v23  ;;  %v1300_v35 = vrot.slane %v1286_v24, %v9325_v3  ;;  %v1332_v36 = vrot.slane %v1318_v26, %v9325_v3 }
 0x33f   : > { %8079 = vmatpush3.xpose.msk.msra.mxu1 %vm1946_vm2, %v1647_v22  ;;  %8080 = vmatprep.mubr.msk.f32.mxu1 %vm8837_vm1, %v8828_v8  ;;  %v1337_v33 = vcombine.low %v1293_v25, %v1325_v29  ;;  %v1338_v34 = vcombine.high %v1293_v25, %v1325_v29  ;;  %v1650_v40 = vcombine.low %v1611_v30, %v1643_v11 }
 0x340   : > { %8088 = vmatprep.subr.mxu1 %v8828_v8  ;;  %8084 = vmatpush3.xpose.msk.msra.mxu0 %vm1946_vm2, %v1648_v31  ;;  %v1651_v27 = vcombine.high %v1611_v30, %v1643_v11  ;;  %v1339_v41 = vcombine.low %v1300_v35, %v1332_v36  ;;  %v1340_v28 = vcombine.high %v1300_v35, %v1332_v36 }
 0x341   : > { %8093 = vmatprep.subr.mxu0 %v8828_v8  ;;  %v969_v52 = vrot.slane %v9281_v39, %v968_v49 }
 0x342   : > { %8081 = vmatmul.mubr.msk.f32.vlgmr.msra.gmra.mxu1 %vm1946_vm2, %v1336_v21 }
 0x343   : > { %8089 = vmatpush3.xpose.msk.msra.mxu1 %vm1946_vm2, %v1649_v32  ;;  %8090 = vmatprep.mubr.msk.f32.mxu1 %vm8837_vm1, %v8828_v8  ;;  %v9483_v61 = vadd.f32 %v1043_v42, %v969_v52 }
 0x344   : > { %8098 = vmatprep.subr.mxu1 %v8828_v8  ;;  %8086 = vmatmul.mubr.msk.f32.vlgmr.msra.gmra.mxu0 %vm1946_vm2, %v1337_v33 }
 0x345   : > { %8094 = vmatpush3.xpose.msk.msra.mxu0 %vm1946_vm2, %v1650_v40  ;;  %8095 = vmatprep.mubr.msk.f32.mxu0 %vm8837_vm1, %v8828_v8 }
 0x346   : > { %8091 = vmatmul.mubr.msk.f32.vlgmr.msra.gmra.mxu1 %vm1946_vm2, %v1338_v34  ;;  %8103 = vmatprep.subr.mxu0 %v8828_v8 }
 0x347   : > { %8099 = vmatpush3.xpose.msk.msra.mxu1 %vm1946_vm2, %v1651_v27  ;;  %8100 = vmatprep.mubr.msk.f32.mxu1 %vm8837_vm1, %v8828_v8 }
 0x348   : > { %8096 = vmatmul.mubr.msk.f32.vlgmr.msra.gmra.mxu0 %vm1946_vm2, %v1339_v41  ;;  %8108 = vmatprep.subr.mxu1 %v8828_v8 }
 0x349   : > { %8105 = vmatprep.mubr.msk.f32.mxu0 %vm8837_vm1, %v8828_v8 }
 0x34a   : > { %8101 = vmatmul.mubr.msk.f32.vlgmr.msra.gmra.mxu1 %vm1946_vm2, %v1340_v28 }
 0x34b   : > { %8110 = vmatprep.mubr.msk.f32.mxu1 %vm8837_vm1, %v8828_v8 }
 0x3f6   : > { %v2019_v43 = vpop.f32.mrf.mxu1 }
 0x3f7   : > { %v2555_v44 = vsel %vm1946_vm2, %v2019_v43, -inf }
 0x3f8   : > { %2556 = vmax.xlane.f32.xlu1 %v2555_v44  ;;  %v8067_v45 = vpop.f32.mrf.mxu1 }
 0x3fa   : > { %v2095_v46 = vpop.f32.mrf.mxu1 }
 0x3fb   : > { %v2558_v0 = vsel %vm1946_vm2, %v2095_v46, -inf }
 0x3fc   : > { %v8072_v47 = vpop.f32.mrf.mxu1 }
 0x3fe   : > { %v2171_v48 = vpop.f32.mrf.mxu1 }
 0x3ff   : > { %v2561_v58 = vsel %vm1946_vm2, %v2171_v48, -inf }
 0x400   : > { %v8077_v50 = vpop.f32.mrf.mxu1 }
 0x402   : > { %v9475_v51 = vpop.f32.mrf.mxu1 }
 0x403   : > { %v2564_v4 = vsel %vm1946_vm2, %v9475_v51, -inf }
 0x404   : > { %v8082_v53 = vpop.f32.mrf.mxu1  ;;  %v2323_v54 = vpop.f32.mrf.mxu0 }
 0x405   : > { %v2567_v55 = vsel %vm1946_vm2, %v2323_v54, -inf }
 0x406   : > { %v9481_v56 = vpop.f32.mrf.mxu1  ;;  %2568 = vmax.xlane.f32.xlu0 %v2567_v55  ;;  %v8087_v57 = vpop.f32.mrf.mxu0 }
 0x407   : > { %v2570_v5 = vsel %vm1946_vm2, %v9481_v56, -inf }
 0x408   : > { %v8092_v62 = vpop.f32.mrf.mxu1  ;;  %v2475_v63 = vpop.f32.mrf.mxu0 }
 0x409   : > { %1656 = vrot.lane.b32.xlu1 %v9483_v61, %s8831_s0  ;;  %v2573_v59 = vsel %vm1946_vm2, %v2475_v63, -inf }
 0x40a   : > { %v9488_v1 = vpop.f32.mrf.mxu1  ;;  %2559 = vmax.xlane.f32.xlu0 %v2558_v0  ;;  %v8097_v39 = vpop.f32.mrf.mxu0 }
 0x40b   : > { %v2576_v6 = vsel %vm1946_vm2, %v9488_v1, -inf }
 0x40c   : > { %v8102_v2 = vpop.f32.mrf.mxu1 }
 0x40d   : > { %1659 = vrot.lane.b32.xlu1 %v9483_v61, %s8829_s18 }
 0x40e   : > { %2562 = vmax.xlane.f32.xlu0 %v2561_v58 }
 0x412   : > { %2574 = vmax.xlane.f32.xlu0 %v2573_v59 }
 0x428   : > { %1653 = vrot.lane.b32.xlu0 %v9483_v61, %s8830_s25 }
 0x42c   : > { %1662 = vrot.lane.b32.xlu0 %v9483_v61, %s8832_s23 }
 0x431   : > { %2565 = vmax.xlane.f32.xlu1 %v2564_v4 }
 0x435   : > { %2571 = vmax.xlane.f32.xlu1 %v2570_v5 }
 0x439   : > { %2577 = vmax.xlane.f32.xlu1 %v2576_v6 }
 0x44a   : > { %1665 = vrot.lane.b32.xlu1 %v9483_v61, %s8833_s28 }
 0x481   : > { %v2557_v7 = vpop.xlane.xlu1 %2556 }
 0x482   : > { %v2579_v9 = vsub.f32 %v2019_v43, %v2557_v7 }
 0x484   : > { %v2587_v10 = vmul.f32 1.442695, %v2579_v9 }
 0x485   : > { %v1657_v22 = vpop.permute.xlu1 %1656 }
 0x486   : > { %8451 = vpow2.f32 %v2587_v10  ;;  %v1674_v26 = vcombine.low %v9483_v61, %v1657_v22  ;;  %v1675_v29 = vcombine.high %v9483_v61, %v1657_v22 }
 0x488   : > { %v1682_v35 = vrot.slane %v1674_v26, %v9322_v60  ;;  %v1689_v36 = vrot.slane %v1675_v29, %v9322_v60 }
 0x489   : > { %v1660_v32 = vpop.permute.xlu1 %1659 }
 0x48f   : > { %v2569_v12 = vpop.xlane.xlu0 %2568 }
 0x490   : > { %v2583_v13 = vsub.f32 %v2323_v54, %v2569_v12 }
 0x492   : > { %v2595_v14 = vmul.f32 1.442695, %v2583_v13 }
 0x493   : > { %v9506_v15 = vpop.eup %8451  ;;  %v2560_v16 = vpop.xlane.xlu0 %2559 }
 0x494   : > { %8453 = vpow2.f32 %v2595_v14  ;;  %v2580_v17 = vsub.f32 %v2095_v46, %v2560_v16  ;;  %v2603_v18 = vsel %vm1946_vm2, %v9506_v15, 0.0 }
 0x495   : > { %2604 = vadd.xlane.f32.xlu0 %v2603_v18 }
 0x496   : > { %v2589_v19 = vmul.f32 1.442695, %v2580_v17 }
 0x497   : > { %v2563_v20 = vpop.xlane.xlu0 %2562 }
 0x498   : > { %8455 = vpow2.f32 %v2589_v19  ;;  %v2581_v23 = vsub.f32 %v2171_v48, %v2563_v20 }
 0x49a   : > { %v2591_v30 = vmul.f32 1.442695, %v2581_v23 }
 0x49b   : > { %v2575_v24 = vpop.xlane.xlu0 %2574 }
 0x49c   : > { %v2585_v25 = vsub.f32 %v2475_v63, %v2575_v24 }
 0x49e   : > { %v2599_v31 = vmul.f32 1.442695, %v2585_v25 }
 0x49f   : > { %v1654_v11 = vpop.permute.xlu0 %1653 }
 0x4a0   : > { %8457 = vpow2.f32 %v2599_v31  ;;  %v1690_v21 = vcombine.low %v1654_v11, %v1660_v32  ;;  %v1691_v33 = vcombine.high %v1654_v11, %v1660_v32 }
 0x4a1   : > { %v9512_v34 = vpop.eup %8453  ;;  %8459 = vpow2.f32 %v2591_v30 }
 0x4a2   : > { %v1698_v40 = vrot.slane %v1690_v21, %v9322_v60  ;;  %v1705_v27 = vrot.slane %v1691_v33, %v9322_v60  ;;  %v2615_v41 = vsel %vm1946_vm2, %v9512_v34, 0.0 }
 0x4a3   : > { %2616 = vadd.xlane.f32.xlu0 %v2615_v41  ;;  %v1663_v33 = vpop.permute.xlu0 %1662 }
 0x4a4   : > { %v1738_v28 = vcombine.low %v1682_v35, %v1698_v40  ;;  %v1739_v42 = vcombine.high %v1682_v35, %v1698_v40  ;;  %v1754_v43 = vcombine.low %v1689_v36, %v1705_v27  ;;  %v1755_v44 = vcombine.high %v1689_v36, %v1705_v27 }
 0x4a5   : > { %v9520_v45 = vpop.eup %8455 }
 0x4a6   : > { %v1746_v46 = vrot.slane %v1738_v28, %v9325_v3  ;;  %v1753_v47 = vrot.slane %v1739_v42, %v9325_v3  ;;  %v1762_v48 = vrot.slane %v1754_v43, %v9325_v3  ;;  %v1769_v50 = vrot.slane %v1755_v44, %v9325_v3 }
 0x4a7   : > { %v2606_v52 = vsel %vm1946_vm2, %v9520_v45, 0.0 }
 0x4a8   : > { %v7768_v53 = vcombine.low %v1746_v46, %v1753_v47  ;;  %v7770_v54 = vcombine.high %v1746_v46, %v1753_v47  ;;  %v7772_v55 = vcombine.low %v1762_v48, %v1769_v50  ;;  %v7774_v57 = vcombine.high %v1762_v48, %v1769_v50  ;;  %2607 = vadd.xlane.f32.xlu1 %v2606_v52 }
 0x4aa   : > { %v1818_v62 = vrot.slane %v7768_v53, %v9322_v60  ;;  %v1834_v63 = vrot.slane %v7770_v54, %v9322_v60  ;;  %v1850_v0 = vrot.slane %v7772_v55, %v9322_v60  ;;  %v1866_v39 = vrot.slane %v7774_v57, %v9322_v60 }
 0x4ac   : > { %v1874_v2 = vcombine.low %v1818_v62, %v1834_v63  ;;  %v1906_v58 = vcombine.low %v1850_v0, %v1866_v39  ;;  %v1875_v59 = vcombine.high %v1818_v62, %v1834_v63  ;;  %v1907_v4 = vcombine.high %v1850_v0, %v1866_v39 }
 0x4ad   : > { %v9532_v5 = vpop.eup %8457 }
 0x4ae   : > { %v2621_v6 = vsel %vm1946_vm2, %v9532_v5, 0.0  ;;  %v1882_v7 = vrot.slane %v1874_v2, %v9325_v3  ;;  %v1914_v9 = vrot.slane %v1906_v58, %v9325_v3  ;;  %v1889_v10 = vrot.slane %v1875_v59, %v9325_v3  ;;  %v8460_v12 = vpop.eup %8459 }
 0x4af   : > { %2622 = vadd.xlane.f32.xlu0 %v2621_v6  ;;  %v1921_v13 = vrot.slane %v1907_v4, %v9325_v3  ;;  %v2609_v19 = vsel %vm1946_vm2, %v8460_v12, 0.0 }
 0x4b0   : > { %v1938_v14 = vcombine.low %v1882_v7, %v1914_v9  ;;  %v1939_v16 = vcombine.high %v1882_v7, %v1914_v9 }
 0x4b1   : > { %v1940_v17 = vcombine.low %v1889_v10, %v1921_v13  ;;  %v1941_v18 = vcombine.high %v1889_v10, %v1921_v13 }
 0x4b2   : > { %8104 = vmatpush3.msra.mxu0 %v1938_v14  ;;  %8109 = vmatpush3.msra.mxu1 %v1939_v16 }
 0x4b3   : > { %2610 = vadd.xlane.f32.xlu0 %v2609_v19  ;;  %8113 = vmatprep.subr.mxu0 %v8828_v8 }
 0x4b4   : > { %8118 = vmatprep.subr.mxu1 %v8828_v8 }
 0x4ba   : > { %v2566_v20 = vpop.xlane.xlu1 %2565 }
 0x4bb   : > { %v2582_v22 = vsub.f32 %v9475_v51, %v2566_v20 }
 0x4bd   : > { %v2593_v23 = vmul.f32 1.442695, %v2582_v22 }
 0x4be   : > { %v2572_v24 = vpop.xlane.xlu1 %2571 }
 0x4bf   : > { %8461 = vpow2.f32 %v2593_v23  ;;  %v2584_v25 = vsub.f32 %v9481_v56, %v2572_v24 }
 0x4c1   : > { %v2597_v26 = vmul.f32 1.442695, %v2584_v25 }
 0x4c2   : > { %v2578_v29 = vpop.xlane.xlu1 %2577 }
 0x4c3   : > { %8463 = vpow2.f32 %v2597_v26  ;;  %v2586_v30 = vsub.f32 %v9488_v1, %v2578_v29 }
 0x4c5   : > { %v2601_v31 = vmul.f32 1.442695, %v2586_v30 }
 0x4c6   : > { %v1666_v40 = vpop.permute.xlu1 %1665 }
 0x4c7   : > { %8465 = vpow2.f32 %v2601_v31 }
 0x4c9   : > { %1668 = vrot.lane.b32.xlu0 %v9483_v61, %s8834_s26 }
 0x4cc   : > { %v8462_v32 = vpop.eup %8461 }
 0x4cd   : > { %v2612_v11 = vsel %vm1946_vm2, %v8462_v32, 0.0 }
 0x4ce   : > { %2613 = vadd.xlane.f32.xlu1 %v2612_v11 }
 0x4d0   : > { %v9549_v51 = vpop.eup %8463 }
 0x4d1   : > { %v2618_v21 = vsel %vm1946_vm2, %v9549_v51, 0.0 }
 0x4d2   : > { %2619 = vadd.xlane.f32.xlu1 %v2618_v21 }
 0x4d4   : > { %v9553_v56 = vpop.eup %8465 }
 0x4d5   : > { %v2624_v1 = vsel %vm1946_vm2, %v9553_v56, 0.0 }
 0x4d6   : > { %2625 = vadd.xlane.f32.xlu1 %v2624_v1 }
 0x4e7   : > { %1671 = vrot.lane.b32.xlu1 %v9483_v61, %s8835_s24 }
 0x51e   : > { %v2605_v35 = vpop.xlane.xlu0 %2604 }
 0x51f   : > { %8467 = vrcp.f32 %v2605_v35 }
 0x52c   : > { %v8468_v36 = vpop.eup %8467  ;;  %v2617_v28 = vpop.xlane.xlu0 %2616 }
 0x52d   : > { %v2628_v27 = vmul.f32 %v8468_v36, %v9506_v15 }
 0x52f   : > { %8106 = vmatmul.mubr.msk.f32.vlgmr.msra.gmra.mxu0 %vm1946_vm2, %v2628_v27  ;;  %v3540_v46 = vsel %vm1946_vm2, %v2628_v27, 0.0 }
 0x530   : > { %8114 = vmatpush3.msra.mxu0 %v1940_v17  ;;  %8115 = vmatprep.mubr.msk.f32.mxu0 %vm8837_vm1, %v8828_v8 }
 0x531   : > { %v2608_v41 = vpop.xlane.xlu1 %2607  ;;  %8123 = vmatprep.subr.mxu0 %v8828_v8 }
 0x532   : > { %8469 = vrcp.f32 %v2608_v41 }
 0x538   : > { %v2623_v42 = vpop.xlane.xlu0 %2622 }
 0x53c   : > { %v2611_v61 = vpop.xlane.xlu0 %2610 }
 0x53d   : > { %8471 = vrcp.f32 %v2611_v61 }
 0x53e   : > { %8473 = vrcp.f32 %v2617_v28 }
 0x53f   : > { %v8470_v43 = vpop.eup %8469 }
 0x540   : > { %v2630_v44 = vmul.f32 %v8470_v43, %v9520_v45  ;;  %v1669_v55 = vpop.permute.xlu0 %1668 }
 0x541   : > { %v1706_v62 = vcombine.low %v1663_v33, %v1669_v55  ;;  %v1707_v63 = vcombine.high %v1663_v33, %v1669_v55 }
 0x542   : > { %8111 = vmatmul.mubr.msk.f32.vlgmr.msra.gmra.mxu1 %vm1946_vm2, %v2630_v44  ;;  %v3541_v15 = vsel %vm1946_vm2, %v2630_v44, 0.0 }
 0x543   : > { %v3542_v47 = vadd.f32 %v3541_v15, %v3540_v46  ;;  %8119 = vmatpush3.msra.mxu1 %v1941_v18  ;;  %8120 = vmatprep.mubr.msk.f32.mxu1 %vm8837_vm1, %v8828_v8  ;;  %v1714_v4 = vrot.slane %v1706_v62, %v9322_v60  ;;  %v1721_v6 = vrot.slane %v1707_v63, %v9322_v60 }
 0x544   : > { %8128 = vmatprep.subr.mxu1 %v8828_v8 }
 0x54a   : > { %v8472_v48 = vpop.eup %8471 }
 0x54b   : > { %v2632_v50 = vmul.f32 %v8472_v48, %v8460_v12  ;;  %v8474_v39 = vpop.eup %8473 }
 0x54c   : > { %v2636_v12 = vmul.f32 %v8474_v39, %v9512_v34 }
 0x54d   : > { %8116 = vmatmul.mubr.msk.f32.vlgmr.msra.gmra.mxu0 %vm1946_vm2, %v2632_v50  ;;  %v3543_v52 = vsel %vm1946_vm2, %v2632_v50, 0.0 }
 0x54e   : > { %v3544_v45 = vadd.f32 %v3543_v52, %v3542_v47  ;;  %8125 = vmatprep.mubr.msk.f32.mxu0 %vm8837_vm1, %v8828_v8  ;;  %v3547_v26 = vsel %vm1946_vm2, %v2636_v12, 0.0 }
 0x557   : > { %v2614_v53 = vpop.xlane.xlu1 %2613 }
 0x558   : > { %8475 = vrcp.f32 %v2614_v53 }
 0x559   : > { %8477 = vrcp.f32 %v2623_v42 }
 0x55b   : > { %v2620_v54 = vpop.xlane.xlu1 %2619 }
 0x55c   : > { %8479 = vrcp.f32 %v2620_v54 }
 0x55f   : > { %v2626_v57 = vpop.xlane.xlu1 %2625 }
 0x560   : > { %8481 = vrcp.f32 %v2626_v57 }
 0x563   : > { %v1672_v0 = vpop.permute.xlu1 %1671 }
 0x564   : > { %v1722_v2 = vcombine.low %v1666_v40, %v1672_v0  ;;  %v1723_v58 = vcombine.high %v1666_v40, %v1672_v0 }
 0x565   : > { %v8476_v59 = vpop.eup %8475 }
 0x566   : > { %v1730_v7 = vrot.slane %v1722_v2, %v9322_v60  ;;  %v1737_v9 = vrot.slane %v1723_v58, %v9322_v60  ;;  %v2634_v10 = vmul.f32 %v8476_v59, %v8462_v32  ;;  %v8478_v13 = vpop.eup %8477 }
 0x567   : > { %v2640_v30 = vmul.f32 %v8478_v13, %v9532_v5 }
 0x568   : > { %v1770_v14 = vcombine.low %v1714_v4, %v1730_v7  ;;  %v1771_v16 = vcombine.high %v1714_v4, %v1730_v7  ;;  %v1786_v17 = vcombine.low %v1721_v6, %v1737_v9  ;;  %v1787_v18 = vcombine.high %v1721_v6, %v1737_v9  ;;  %8121 = vmatmul.mubr.msk.f32.vlgmr.msra.gmra.mxu1 %vm1946_vm2, %v2634_v10 }
 0x569   : > { %v8480_v19 = vpop.eup %8479  ;;  %v3545_v20 = vsel %vm1946_vm2, %v2634_v10, 0.0  ;;  %8130 = vmatprep.mubr.msk.f32.mxu1 %vm8837_vm1, %v8828_v8 }
 0x56a   : > { %v1778_v22 = vrot.slane %v1770_v14, %v9325_v3  ;;  %v1785_v23 = vrot.slane %v1771_v16, %v9325_v3  ;;  %v1794_v24 = vrot.slane %v1786_v17, %v9325_v3  ;;  %v1801_v34 = vrot.slane %v1787_v18, %v9325_v3 }
 0x56b   : > { %v3546_v25 = vadd.f32 %v3545_v20, %v3544_v45  ;;  %v2638_v29 = vmul.f32 %v8480_v19, %v9549_v51  ;;  %v3551_v51 = vsel %vm1946_vm2, %v2640_v30, 0.0 }
 0x56c   : > { %v7769_v31 = vcombine.low %v1778_v22, %v1785_v23  ;;  %v7771_v32 = vcombine.high %v1778_v22, %v1785_v23  ;;  %v7773_v11 = vcombine.low %v1794_v24, %v1801_v34  ;;  %v7775_v21 = vcombine.high %v1794_v24, %v1801_v34 }
 0x56d   : > { %v8482_v1 = vpop.eup %8481  ;;  %v3548_v33 = vadd.f32 %v3547_v26, %v3546_v25  ;;  %v3549_v35 = vsel %vm1946_vm2, %v2638_v29, 0.0 }
 0x56e   : > { %v1825_v36 = vrot.slane %v7769_v31, %v9322_v60  ;;  %v1841_v40 = vrot.slane %v7771_v32, %v9322_v60  ;;  %v1857_v27 = vrot.slane %v7773_v11, %v9322_v60  ;;  %v1873_v41 = vrot.slane %v7775_v21, %v9322_v60  ;;  %v3562_v31 = vld [vmem:[%s10890_s3 + $0x30] sm:$0xff] }
 0x56f   : > { %v3550_v28 = vadd.f32 %v3549_v35, %v3548_v33  ;;  %v2642_v5 = vmul.f32 %v8482_v1, %v9553_v56  ;;  %v3561_v33 = vld [vmem:[%s10890_s3 + $0x28] sm:$0xff] }
 0x570   : > { %v1890_v42 = vcombine.low %v1825_v36, %v1841_v40  ;;  %v1922_v61 = vcombine.low %v1857_v27, %v1873_v41  ;;  %v1891_v43 = vcombine.high %v1825_v36, %v1841_v40  ;;  %v1923_v44 = vcombine.high %v1857_v27, %v1873_v41  ;;  %v3560_v41 = vld [vmem:[%s10890_s3 + $0x20] sm:$0xff] }
 0x571   : > { %v3552_v46 = vadd.f32 %v3551_v51, %v3550_v28  ;;  %v3553_v15 = vsel %vm1946_vm2, %v2642_v5, 0.0 }
 0x572   : > { %v1898_v47 = vrot.slane %v1890_v42, %v9325_v3  ;;  %v1930_v48 = vrot.slane %v1922_v61, %v9325_v3  ;;  %v1905_v50 = vrot.slane %v1891_v43, %v9325_v3  ;;  %v1937_v52 = vrot.slane %v1923_v44, %v9325_v3 }
 0x573   : > { %v9603_v45 = vadd.f32 %v3553_v15, %v3552_v46 }
 0x574   : > { %v1942_v53 = vcombine.low %v1898_v47, %v1930_v48  ;;  %v1943_v54 = vcombine.high %v1898_v47, %v1930_v48  ;;  %v1944_v56 = vcombine.low %v1905_v50, %v1937_v52  ;;  %v1945_v55 = vcombine.high %v1905_v50, %v1937_v52  ;;  %v3559_v50 = vld [vmem:[%s10890_s3 + $0x18] sm:$0xff] }
 0x576   : > { %8124 = vmatpush3.msra.mxu0 %v1942_v53  ;;  %8129 = vmatpush3.msra.mxu1 %v1943_v54 }
 0x577   : > { %8126 = vmatmul.mubr.msk.f32.vlgmr.msra.gmra.mxu0 %vm1946_vm2, %v2636_v12  ;;  %8131 = vmatmul.mubr.msk.f32.vlgmr.msra.gmra.mxu1 %vm1946_vm2, %v2638_v29 }
 0x578   : > { %8133 = vmatprep.subr.mxu0 %v8828_v8  ;;  %8138 = vmatprep.subr.mxu1 %v8828_v8 }
 0x579   : > { %8134 = vmatpush3.msra.mxu0 %v1944_v56  ;;  %8139 = vmatpush3.msra.mxu1 %v1945_v55 }
 0x57a   : > { %8135 = vmatprep.mubr.msk.f32.mxu0 %vm8837_vm1, %v8828_v8  ;;  %8140 = vmatprep.mubr.msk.f32.mxu1 %vm8837_vm1, %v8828_v8 }
 0x57b   : > { %8136 = vmatmul.mubr.msk.f32.vlgmr.msra.gmra.mxu0 %vm1946_vm2, %v2640_v30  ;;  %8141 = vmatmul.mubr.msk.f32.vlgmr.msra.gmra.mxu1 %vm1946_vm2, %v2642_v5  ;;  %v3563_v30 = vld [vmem:[%s10890_s3 + $0x38] sm:$0xff] }
 0x57c   : > { %8143 = vmatprep.subr.mxu0 %v8828_v8  ;;  %8159 = vmatprep.mubr.msk.f32.mxu0 %vm8837_vm1, %v8828_v8 }
 0x57d   : > { %8162 = vmatprep.subr.mxu1 %v8828_v8  ;;  %8178 = vmatprep.mubr.msk.f32.mxu1 %vm8837_vm1, %v8828_v8 }
 0x57e   : > { %8144 = vmatpush3.msra.mxu0 %v3563_v30 }
 0x57f   : > { %8145 = vmatprep.subr.mxu0 %v8828_v8 }
 0x580   : > { %8146 = vmatpush3.msra.mxu0 %v3562_v31 }
 0x581   : > { %8147 = vmatprep.subr.mxu0 %v8828_v8 }
 0x582   : > { %8148 = vmatpush3.msra.mxu0 %v3561_v33 }
 0x583   : > { %8149 = vmatprep.subr.mxu0 %v8828_v8 }
 0x584   : > { %8150 = vmatpush3.msra.mxu0 %v3560_v41 }
 0x585   : > { %8151 = vmatprep.subr.mxu0 %v8828_v8 }
 0x586   : > { %8152 = vmatpush3.msra.mxu0 %v3559_v50 }
 0x587   : > { %8153 = vmatprep.subr.mxu0 %v8828_v8 }
 0x5ef   : > { %v2712_v57 = vpop.f32.mrf.mxu0 }
 0x5f1   : > { %v8107_v62 = vpop.f32.mrf.mxu0 }
 0x602   : > { %v2785_v63 = vpop.f32.mrf.mxu1 }
 0x604   : > { %v8112_v0 = vpop.f32.mrf.mxu1 }
 0x60d   : > { %v2858_v39 = vpop.f32.mrf.mxu0 }
 0x60e   : > { %v3227_v58 = vcombine.low %v2712_v57, %v2858_v39  ;;  %v3228_v59 = vcombine.high %v2712_v57, %v2858_v39 }
 0x60f   : > { %v8117_v2 = vpop.f32.mrf.mxu0 }
 0x610   : > { %v3235_v10 = vrot.slane %v3227_v58, %v9322_v60  ;;  %v3242_v12 = vrot.slane %v3228_v59, %v9322_v60 }
 0x628   : > { %v2931_v4 = vpop.f32.mrf.mxu1 }
 0x629   : > { %v3243_v6 = vcombine.low %v2785_v63, %v2931_v4  ;;  %v3244_v7 = vcombine.high %v2785_v63, %v2931_v4 }
 0x62a   : > { %v8122_v9 = vpop.f32.mrf.mxu1 }
 0x62b   : > { %v3251_v13 = vrot.slane %v3243_v6, %v9322_v60  ;;  %v3258_v14 = vrot.slane %v3244_v7, %v9322_v60 }
 0x62d   : > { %v3291_v16 = vcombine.low %v3235_v10, %v3251_v13  ;;  %v3292_v17 = vcombine.high %v3235_v10, %v3251_v13  ;;  %v3307_v18 = vcombine.low %v3242_v12, %v3258_v14  ;;  %v3308_v19 = vcombine.high %v3242_v12, %v3258_v14  ;;  %v3558_v10 = vld [vmem:[%s10890_s3 + $0x10] sm:$0xff]  ;;  %v3557_v12 = vld [vmem:[%s10890_s3 + $0x8] sm:$0xff] }
 0x62e   : > { %8154 = vmatpush3.msra.mxu0 %v3558_v10 }
 0x62f   : > { %v3299_v20 = vrot.slane %v3291_v16, %v9325_v3  ;;  %v3306_v22 = vrot.slane %v3292_v17, %v9325_v3  ;;  %v3315_v23 = vrot.slane %v3307_v18, %v9325_v3  ;;  %v3322_v24 = vrot.slane %v3308_v19, %v9325_v3  ;;  %8155 = vmatprep.subr.mxu0 %v8828_v8 }
 0x630   : > { %8156 = vmatpush3.msra.mxu0 %v3557_v12 }
 0x631   : > { %v7800_v34 = vcombine.low %v3299_v20, %v3306_v22  ;;  %v7802_v25 = vcombine.high %v3299_v20, %v3306_v22  ;;  %v7804_v26 = vcombine.low %v3315_v23, %v3322_v24  ;;  %v7806_v29 = vcombine.high %v3315_v23, %v3322_v24  ;;  %8157 = vmatprep.subr.mxu0 %v8828_v8 }
 0x633   : > { %v3371_v32 = vrot.slane %v7800_v34, %v9322_v60  ;;  %v3387_v11 = vrot.slane %v7802_v25, %v9322_v60  ;;  %v3403_v21 = vrot.slane %v7804_v26, %v9322_v60  ;;  %v3419_v1 = vrot.slane %v7806_v29, %v9322_v60  ;;  %v3556_v26 = vld [vmem:[%s10890_s3] sm:$0xff] }
 0x634   : > { %8158 = vmatpush3.msra.mxu0 %v3556_v26 }
 0x635   : > { %v3428_v35 = vcombine.high %v3371_v32, %v3387_v11  ;;  %v3460_v36 = vcombine.high %v3403_v21, %v3419_v1  ;;  %v3427_v40 = vcombine.low %v3371_v32, %v3387_v11  ;;  %v3459_v27 = vcombine.low %v3403_v21, %v3419_v1 }
 0x637   : > { %v3004_v28 = vpop.f32.mrf.mxu0  ;;  %v3077_v51 = vpop.f32.mrf.mxu1  ;;  %v3442_v5 = vrot.slane %v3428_v35, %v9325_v3  ;;  %v3474_v42 = vrot.slane %v3460_v36, %v9325_v3  ;;  %v9650_v61 = vrot.slane %v3427_v40, %v9325_v3  ;;  %v9653_v43 = vrot.slane %v3459_v27, %v9325_v3 }
 0x639   : > { %v8127_v44 = vpop.f32.mrf.mxu0  ;;  %v8132_v46 = vpop.f32.mrf.mxu1  ;;  %v3493_v15 = vcombine.low %v3442_v5, %v3474_v42  ;;  %v3492_v47 = vcombine.high %v9650_v61, %v9653_v43  ;;  %v3491_v48 = vcombine.low %v9650_v61, %v9653_v43  ;;  %v3494_v0 = vcombine.high %v3442_v5, %v3474_v42 }
 0x63b   : > { %v3223_v52 = vpop.f32.mrf.mxu1  ;;  %3504 = vrot.lane.b32.xlu1 %v3493_v15, %s8840_s27  ;;  %3500 = vrot.lane.b32.xlu0 %v3492_v47, %s10836_s9  ;;  %v3150_v53 = vpop.f32.mrf.mxu0 }
 0x63c   : > { %v3275_v54 = vcombine.low %v3077_v51, %v3223_v52  ;;  %v3276_v56 = vcombine.high %v3077_v51, %v3223_v52  ;;  %v3259_v55 = vcombine.low %v3004_v28, %v3150_v53  ;;  %v3260_v57 = vcombine.high %v3004_v28, %v3150_v53  ;;  %v3861_v53 = vld [vmem:[#allocation10 + $0x38] sm:$0xff] }
 0x63d   : > { %v8137_v62 = vpop.f32.mrf.mxu0  ;;  %v8142_v63 = vpop.f32.mrf.mxu1  ;;  %8181 = vmatprep.subr.mxu0 %v3861_v53 }
 0x63e   : > { %v3283_v39 = vrot.slane %v3275_v54, %v9322_v60  ;;  %v3290_v2 = vrot.slane %v3276_v56, %v9322_v60  ;;  %v3267_v58 = vrot.slane %v3259_v55, %v9322_v60  ;;  %v3274_v59 = vrot.slane %v3260_v57, %v9322_v60  ;;  %v3860_v54 = vld [vmem:[#allocation10 + $0x30] sm:$0xff]  ;;  %v3859_v56 = vld [vmem:[#allocation10 + $0x28] sm:$0xff]  ;;  %v3858_v57 = vld [vmem:[#allocation10 + $0x20] sm:$0xff] }
 0x63f   : > { %3508 = vrot.lane.b32.xlu0 %v3494_v0, %s10834_s15  ;;  %v3731_v55 = vld [vmem:[%s9202_s17] sm:$0xff] }
 0x640   : > { %v3323_v4 = vcombine.low %v3267_v58, %v3283_v39  ;;  %v3324_v6 = vcombine.high %v3267_v58, %v3283_v39  ;;  %v3339_v7 = vcombine.low %v3274_v59, %v3290_v2  ;;  %v3340_v9 = vcombine.high %v3274_v59, %v3290_v2  ;;  %v3857_v62 = vld [vmem:[#allocation10 + $0x18] sm:$0xff]  ;;  %v3856_v63 = vld [vmem:[#allocation10 + $0x10] sm:$0xff]  ;;  %v3855_v0 = vld [vmem:[#allocation10 + $0x8] sm:$0xff] }
 0x641   : > { %v3854_v39 = vld [vmem:[#allocation10] sm:$0xff] }
 0x642   : > { %v3331_v13 = vrot.slane %v3323_v4, %v9325_v3  ;;  %v3338_v14 = vrot.slane %v3324_v6, %v9325_v3  ;;  %v3347_v16 = vrot.slane %v3339_v7, %v9325_v3  ;;  %v3354_v17 = vrot.slane %v3340_v9, %v9325_v3  ;;  %v3732_v2 = vld [vmem:[%s9202_s17 + $0x8] sm:$0xff]  ;;  %s10898_s17 = smov 48  }
 0x643   : > { %v8523_v7 = vld [vmem:[%s9192_s29] sm:$0xff]  ;;  %s10892_s29 = sld [smem:[#allocation39_spill]] }
 0x644   : > { %v7801_v18 = vcombine.low %v3331_v13, %v3338_v14  ;;  %v7803_v19 = vcombine.high %v3331_v13, %v3338_v14  ;;  %v7805_v20 = vcombine.low %v3347_v16, %v3354_v17  ;;  %v7807_v22 = vcombine.high %v3347_v16, %v3354_v17  ;;  %v3773_v14 = vld [vmem:[%s10782_s11 + $0x38] sm:$0xff]  ;;  %v3772_v16 = vld [vmem:[%s10782_s11 + $0x30] sm:$0xff]  ;;  %v3771_v17 = vld [vmem:[%s10782_s11 + $0x28] sm:$0xff] }
 0x645   : > { %8163 = vmatpush3.msra.mxu1 %v3773_v14 }
 0x646   : > { %v3378_v23 = vrot.slane %v7801_v18, %v9322_v60  ;;  %v3394_v24 = vrot.slane %v7803_v19, %v9322_v60  ;;  %v3410_v34 = vrot.slane %v7805_v20, %v9322_v60  ;;  %v3426_v25 = vrot.slane %v7807_v22, %v9322_v60  ;;  %8164 = vmatprep.subr.mxu1 %v8828_v8  ;;  %v3770_v18 = vld [vmem:[%s10782_s11 + $0x20] sm:$0xff]  ;;  %v3769_v19 = vld [vmem:[%s10782_s11 + $0x18] sm:$0xff]  ;;  %v3768_v20 = vld [vmem:[%s10782_s11 + $0x10] sm:$0xff] }
 0x647   : > { %8165 = vmatpush3.msra.mxu1 %v3772_v16  ;;  %v3767_v22 = vld [vmem:[%s10782_s11 + $0x8] sm:$0xff] }
 0x648   : > { %v3443_v29 = vcombine.low %v3378_v23, %v3394_v24  ;;  %v3475_v30 = vcombine.low %v3410_v34, %v3426_v25  ;;  %v3444_v31 = vcombine.high %v3378_v23, %v3394_v24  ;;  %v3476_v32 = vcombine.high %v3410_v34, %v3426_v25  ;;  %8166 = vmatprep.subr.mxu1 %v8828_v8  ;;  %v3766_v23 = vld [vmem:[%s10782_s11] sm:$0xff] }
 0x649   : > { %8167 = vmatpush3.msra.mxu1 %v3771_v17  ;;  %v7814_v24 = vld [vmem:[%s10785_s14] ss:$0 sm:$0xff] }
 0x64a   : > { %v3451_v11 = vrot.slane %v3443_v29, %v9325_v3  ;;  %v3483_v21 = vrot.slane %v3475_v30, %v9325_v3  ;;  %v3458_v35 = vrot.slane %v3444_v31, %v9325_v3  ;;  %v3490_v36 = vrot.slane %v3476_v32, %v9325_v3  ;;  %8168 = vmatprep.subr.mxu1 %v8828_v8 }
 0x64b   : > { %8169 = vmatpush3.msra.mxu1 %v3770_v18 }
 0x64c   : > { %v3496_v1 = vcombine.high %v3451_v11, %v3483_v21  ;;  %v3495_v33 = vcombine.low %v3451_v11, %v3483_v21  ;;  %v3498_v40 = vcombine.high %v3458_v35, %v3490_v36  ;;  %v3497_v27 = vcombine.low %v3458_v35, %v3490_v36  ;;  %8170 = vmatprep.subr.mxu1 %v8828_v8 }
 0x64d   : > { %8171 = vmatpush3.msra.mxu1 %v3769_v19 }
 0x64e   : > { %3516 = vrot.lane.b32.xlu0 %v3496_v1, %s10832_s8  ;;  %3512 = vrot.lane.b32.xlu1 %v3495_v33, %s10830_s13  ;;  %s10891_s13 = sld [smem:[#allocation38_spill]]  ;;  %s7906_s8 = sshll.u32 %s9001_s7, 4 }
 0x64f   : > { %8172 = vmatprep.subr.mxu1 %v8828_v8 }
 0x650   : > { %8173 = vmatpush3.msra.mxu1 %v3768_v20 }
 0x651   : > { %8174 = vmatprep.subr.mxu1 %v8828_v8 }
 0x652   : > { %3524 = vrot.lane.b32.xlu0 %v3498_v40, %s10828_s22  ;;  %3520 = vrot.lane.b32.xlu1 %v3497_v27, %s10826_s1  ;;  %v7810_v27 = vld [vmem:[%s10892_s29] ss:$0 sm:$0xff]  ;;  %s10900_s22 = sld [smem:[#allocation43_spill]]  ;;  %s908_s29 = scalar_lea.vmem [#allocation16], %s9186_s30 }
 0x653   : > { %8175 = vmatpush3.msra.mxu1 %v3767_v22 }
 0x654   : > { %v7808_v58 = vld [vmem:[%s10891_s13] ss:$0 sm:$0xff]  ;;  %8176 = vmatprep.subr.mxu1 %v8828_v8 }
 0x655   : > { %8177 = vmatpush3.msra.mxu1 %v3766_v23 }
 0x656   : > { %8200 = vmatprep.subr.mxu1 %v8828_v8 }
 0x6ad   : > { %v3501_v41 = vpop.permute.xlu0 %3500  ;;  %v3505_v28 = vpop.permute.xlu1 %3504 }
 0x6ae   : > { %v3527_v51 = vsel %vm1946_vm2, %v3491_v48, %v3501_v41 }
 0x6af   : > { %v3529_v42 = vsel %vm3528_vm3, %v3527_v51, %v3505_v28  ;;  %v7811_v28 = vld [vmem:[%s10781_s10] ss:$0 sm:$0xff] }
 0x6b1   : > { %v3509_v5 = vpop.permute.xlu0 %3508 }
 0x6b2   : > { %v3531_v44 = vsel %vm3530_vm4, %v3529_v42, %v3509_v5 }
 0x6c0   : > { %v3517_v46 = vpop.permute.xlu0 %3516  ;;  %v3513_v15 = vpop.permute.xlu1 %3512 }
 0x6c1   : > { %v3533_v47 = vsel %vm3532_vm5, %v3531_v44, %v3513_v15 }
 0x6c2   : > { %v3535_v61 = vsel %vm3534_vm6, %v3533_v47, %v3517_v46 }
 0x6c4   : > { %v3525_v50 = vpop.permute.xlu0 %3524  ;;  %v3521_v43 = vpop.permute.xlu1 %3520 }
 0x6c5   : > { %v3537_v48 = vsel %vm3536_vm7, %v3535_v61, %v3521_v43 }
 0x6c6   : > { %v3539_v52 = vsel %vm3538_vm8, %v3537_v48, %v3525_v50 }
 0x6c7   : > { %8160 = vmatmul.mubr.msk.f32.vlgmr.msra.gmra.mxu0 %vm910_vm0, %v3539_v52 }
 0x6c8   : > { %8182 = vmatpush3.msra.mxu0 %v3861_v53  ;;  %8197 = vmatprep.mubr.msk.f32.mxu0 %vm910_vm0, %v3731_v55 }
 0x6c9   : > { %8183 = vmatprep.subr.mxu0 %v3860_v54 }
 0x6ca   : > { %8184 = vmatpush3.msra.mxu0 %v3860_v54 }
 0x6cb   : > { %8185 = vmatprep.subr.mxu0 %v3859_v56 }
 0x6cc   : > { %8186 = vmatpush3.msra.mxu0 %v3859_v56 }
 0x6cd   : > { %8187 = vmatprep.subr.mxu0 %v3858_v57 }
 0x6ce   : > { %8188 = vmatpush3.msra.mxu0 %v3858_v57 }
 0x6cf   : > { %8189 = vmatprep.subr.mxu0 %v3857_v62 }
 0x6d0   : > { %8190 = vmatpush3.msra.mxu0 %v3857_v62 }
 0x6d1   : > { %8191 = vmatprep.subr.mxu0 %v3856_v63 }
 0x6d2   : > { %8192 = vmatpush3.msra.mxu0 %v3856_v63 }
 0x6d3   : > { %8193 = vmatprep.subr.mxu0 %v3855_v0 }
 0x6d4   : > { %8194 = vmatpush3.msra.mxu0 %v3855_v0 }
 0x6d5   : > { %8195 = vmatprep.subr.mxu0 %v3854_v39 }
 0x6d6   : > { %8196 = vmatpush3.msra.mxu0 %v3854_v39 }
 0x6d7   : > { %8198 = vmatmul.mubr.msk.f32.vlgmr.msra.gmra.mxu0 %vm910_vm0, %v3732_v2  ;;  %8214 = vmatprep.subr.mxu0 %v8828_v8 }
 0x6d8   : > { %8218 = vmatprep.mubr.msk.f32.mxu0 %vm8837_vm1, %v8828_v8 }
 0x787   : > { %v3640_v59 = vpop.f32.mrf.mxu0 }
 0x788   : > { %v3641_v4 = vadd.f32 %v7808_v58, %v3640_v59 }
 0x789   : > { %v8161_v6 = vpop.f32.mrf.mxu0 }
 0x78a   : > { %v9721_v9 = vadd.f32 %v8523_v7, %v3641_v4 }
 0x78c   : > { %v3734_v10 = vsel %vm910_vm0, %v9721_v9, 0.0  ;;  %v3738_v12 = vmul.f32 %v9721_v9, %v9721_v9 }
 0x78d   : > { %3735 = vadd.xlane.f32.xlu1 %v3734_v10 }
 0x78e   : > { %v3739_v13 = vsel %vm910_vm0, %v3738_v12, 0.0 }
 0x78f   : > { %3740 = vadd.xlane.f32.xlu0 %v3739_v13 }
 0x797   : > { %v8199_v34 = vpop.f32.mrf.mxu0 }
 0x798   : > { %v9763_v25 = vadd.f32 %v8199_v34, %v7814_v24 }
 0x799   : > { %v3941_v26 = vpop.f32.mrf.mxu0 }
 0x79a   : > { %v9769_v29 = vadd.f32 %v7814_v24, %v3941_v26 }
 0x79e   : > { %4255 = vrot.lane.b32.xlu1 %v9763_v25, %s8831_s0 }
 0x7a2   : > { %4261 = vrot.lane.b32.xlu1 %v9763_v25, %s8829_s18 }
 0x7a5   : > { %4249 = vrot.lane.b32.xlu0 %v9763_v25, %s8830_s25 }
 0x7a6   : > { %4253 = vrot.lane.b32.xlu1 %v9769_v29, %s8831_s0 }
 0x7a9   : > { %4247 = vrot.lane.b32.xlu0 %v9769_v29, %s8830_s25 }
 0x7ad   : > { %4259 = vrot.lane.b32.xlu0 %v9769_v29, %s8829_s18 }
 0x816   : > { %v3736_v30 = vpop.xlane.xlu1 %3735 }
 0x817   : > { %v3737_v31 = vmul.f32 0.015625, %v3736_v30 }
 0x818   : > { %v3741_v32 = vpop.xlane.xlu0 %3740 }
 0x819   : > { %v3743_v11 = vmul.f32 %v3737_v31, %v3737_v31  ;;  %v3742_v21 = vmul.f32 0.015625, %v3741_v32  ;;  %v3748_v36 = vsub.f32 %v9721_v9, %v3737_v31 }
 0x81a   : > { %v9789_v42 = vpop.permute.xlu1 %4255 }
 0x81b   : > { %v3744_v1 = vsub.f32 %v3742_v21, %v3743_v11  ;;  %v4425_v47 = vcombine.low %v9763_v25, %v9789_v42  ;;  %v4426_v50 = vcombine.high %v9763_v25, %v9789_v42 }
 0x81c   : > { %v9791_v44 = vpop.permute.xlu0 %4249 }
 0x81d   : > { %v3745_v33 = vmax.f32 %v3744_v1, 0.0  ;;  %v4433_v48 = vrot.slane %v4425_v47, %v9322_v60  ;;  %v4440_v52 = vrot.slane %v4426_v50, %v9322_v60 }
 0x81e   : > { %v9793_v46 = vpop.permute.xlu1 %4261 }
 0x81f   : > { %v3746_v35 = vadd.f32 1e-05, %v3745_v33  ;;  %v4441_v61 = vcombine.low %v9791_v44, %v9793_v46  ;;  %v4442_v43 = vcombine.high %v9791_v44, %v9793_v46 }
 0x820   : > { %v9795_v15 = vpop.permute.xlu0 %4247 }
 0x821   : > { %8483 = vrsqrt.f32 %v3746_v35  ;;  %v4449_v53 = vrot.slane %v4441_v61, %v9322_v60  ;;  %v4456_v54 = vrot.slane %v4442_v43, %v9322_v60 }
 0x822   : > { %v9809_v56 = vpop.permute.xlu1 %4253 }
 0x823   : > { %v4289_v57 = vcombine.low %v9769_v29, %v9809_v56  ;;  %v4290_v62 = vcombine.high %v9769_v29, %v9809_v56  ;;  %v4489_v39 = vcombine.low %v4433_v48, %v4449_v53  ;;  %v4490_v2 = vcombine.high %v4433_v48, %v4449_v53 }
 0x824   : > { %v9811_v55 = vpop.permute.xlu0 %4259  ;;  %v4505_v58 = vcombine.low %v4440_v52, %v4456_v54  ;;  %v4506_v59 = vcombine.high %v4440_v52, %v4456_v54 }
 0x825   : > { %v4305_v63 = vcombine.low %v9795_v15, %v9811_v55  ;;  %v4306_v0 = vcombine.high %v9795_v15, %v9811_v55  ;;  %v4297_v4 = vrot.slane %v4289_v57, %v9322_v60  ;;  %v4304_v6 = vrot.slane %v4290_v62, %v9322_v60 }
 0x826   : > { %v4497_v12 = vrot.slane %v4489_v39, %v9325_v3  ;;  %v4504_v13 = vrot.slane %v4490_v2, %v9325_v3  ;;  %v4513_v14 = vrot.slane %v4505_v58, %v9325_v3  ;;  %v4520_v16 = vrot.slane %v4506_v59, %v9325_v3 }
 0x827   : > { %v4313_v7 = vrot.slane %v4305_v63, %v9322_v60  ;;  %v4320_v10 = vrot.slane %v4306_v0, %v9322_v60 }
 0x828   : > { %v7833_v22 = vcombine.low %v4497_v12, %v4504_v13  ;;  %v7835_v23 = vcombine.high %v4497_v12, %v4504_v13  ;;  %v7837_v24 = vcombine.low %v4513_v14, %v4520_v16  ;;  %v7839_v34 = vcombine.high %v4513_v14, %v4520_v16 }
 0x829   : > { %v4353_v17 = vcombine.low %v4297_v4, %v4313_v7  ;;  %v4354_v18 = vcombine.high %v4297_v4, %v4313_v7  ;;  %v4369_v19 = vcombine.low %v4304_v6, %v4320_v10  ;;  %v4370_v20 = vcombine.high %v4304_v6, %v4320_v10 }
 0x82a   : > { %v4705_v11 = vrot.slane %v7833_v22, %v9322_v60  ;;  %v4721_v21 = vrot.slane %v7835_v23, %v9322_v60  ;;  %v4737_v1 = vrot.slane %v7837_v24, %v9322_v60  ;;  %v4753_v33 = vrot.slane %v7839_v34, %v9322_v60 }
 0x82b   : > { %v4361_v26 = vrot.slane %v4353_v17, %v9325_v3  ;;  %v4368_v30 = vrot.slane %v4354_v18, %v9325_v3  ;;  %v4377_v31 = vrot.slane %v4369_v19, %v9325_v3  ;;  %v4384_v32 = vrot.slane %v4370_v20, %v9325_v3  ;;  %v7812_v17 = vld [vmem:[%s10783_s12] ss:$0 sm:$0xff] }
 0x82d   : > { %v7825_v35 = vcombine.low %v4361_v26, %v4368_v30 }
 0x82e   : > { %v8484_v40 = vpop.eup %8483 }
 0x82f   : > { %v3749_v41 = vmul.f32 %v8484_v40, %v3748_v36  ;;  %v7827_v36 = vcombine.high %v4361_v26, %v4368_v30  ;;  %v7829_v40 = vcombine.low %v4377_v31, %v4384_v32  ;;  %v4569_v47 = vrot.slane %v7825_v35, %v9322_v60 }
 0x831   : > { %v3757_v51 = vmul.f32 %v7810_v27, %v3749_v41  ;;  %v7831_v27 = vcombine.high %v4377_v31, %v4384_v32  ;;  %v4761_v41 = vcombine.low %v4705_v11, %v4721_v21  ;;  %v4585_v50 = vrot.slane %v7827_v36, %v9322_v60 }
 0x832   : > { %v4601_v61 = vrot.slane %v7829_v40, %v9322_v60 }
 0x833   : > { %v3765_v5 = vadd.f32 %v7811_v28, %v3757_v51  ;;  %v4762_v28 = vcombine.high %v4705_v11, %v4721_v21  ;;  %v4793_v51 = vcombine.low %v4737_v1, %v4753_v33  ;;  %v4617_v43 = vrot.slane %v7831_v27, %v9322_v60 }
 0x834   : > { %v9842_v48 = vrot.slane %v4761_v41, %v9325_v3  ;;  %v4625_v63 = vcombine.low %v4569_v47, %v4585_v50  ;;  %v4626_v0 = vcombine.high %v4569_v47, %v4585_v50 }
 0x835   : > { %8179 = vmatmul.mubr.msk.f32.vlgmr.msra.gmra.mxu1 %vm910_vm0, %v3765_v5  ;;  %v4794_v5 = vcombine.high %v4737_v1, %v4753_v33  ;;  %v9845_v52 = vrot.slane %v4793_v51, %v9325_v3  ;;  %v9848_v53 = vrot.slane %v4762_v28, %v9325_v3  ;;  %v4657_v39 = vcombine.low %v4601_v61, %v4617_v43 }
 0x836   : > { %8204 = vmatprep.mubr.msk.f32.mxu1 %vm8837_vm1, %v8828_v8  ;;  %v4658_v2 = vcombine.high %v4601_v61, %v4617_v43  ;;  %v9862_v58 = vrot.slane %v4625_v63, %v9325_v3  ;;  %v9868_v4 = vrot.slane %v4626_v0, %v9325_v3 }
 0x837   : > { %v9851_v54 = vrot.slane %v4794_v5, %v9325_v3  ;;  %v4825_v57 = vcombine.low %v9842_v48, %v9845_v52  ;;  %v9865_v59 = vrot.slane %v4657_v39, %v9325_v3  ;;  %v4826_v12 = vcombine.high %v9842_v48, %v9845_v52 }
 0x838   : > { %v9871_v6 = vrot.slane %v4658_v2, %v9325_v3 }
 0x839   : > { %v4827_v62 = vcombine.low %v9848_v53, %v9851_v54  ;;  %8201 = vmatpush3.xpose.msk.msra.mxu1 %vm1946_vm2, %v4825_v57  ;;  %v4689_v7 = vcombine.low %v9862_v58, %v9865_v59  ;;  %v4690_v13 = vcombine.high %v9862_v58, %v9865_v59  ;;  %v4828_v14 = vcombine.high %v9848_v53, %v9851_v54 }
 0x83a   : > { %8202 = vmatprep.subr.mxu1 %v8828_v8  ;;  %v4691_v10 = vcombine.low %v9868_v4, %v9871_v6  ;;  %v4692_v16 = vcombine.high %v9868_v4, %v9871_v6 }
 0x83b   : > { %8215 = vmatpush3.xpose.msk.msra.mxu0 %vm1946_vm2, %v4827_v62 }
 0x83c   : > { %8216 = vmatprep.subr.mxu0 %v8828_v8 }
 0x83d   : > { %8203 = vmatpush3.xpose.msk.msra.mxu1 %vm1946_vm2, %v4689_v7 }
 0x83e   : > { %8207 = vmatprep.subr.mxu1 %v8828_v8 }
 0x83f   : > { %8217 = vmatpush3.xpose.msk.msra.mxu0 %vm1946_vm2, %v4691_v10 }
 0x840   : > { %8228 = vmatprep.subr.mxu0 %v8828_v8 }
 0x8f5   : > { %v3850_v18 = vpop.f32.mrf.mxu1 }
 0x8f6   : > { %v3851_v19 = vadd.f32 %v7812_v17, %v3850_v18 }
 0x8f7   : > { %v8180_v20 = vpop.f32.mrf.mxu1 }
 0x8f8   : > { %v3950_v22 = vmul.f32 0.35355338, %v3851_v19 }
 0x8fa   : > { %3952 = vrot.lane.b32.xlu1 %v3950_v22, %s8830_s25  ;;  %3955 = vrot.lane.b32.xlu0 %v3950_v22, %s8831_s0  ;;  %s10895_s25 = smov 40  }
 0x8fe   : > { %3958 = vrot.lane.b32.xlu1 %v3950_v22, %s8829_s18  ;;  %4267 = vrot.lane.b32.xlu0 %v9763_v25, %s8832_s23  ;;  %s10894_s18 = smov 24  }
 0x902   : > { %4273 = vrot.lane.b32.xlu1 %v9763_v25, %s8833_s28  ;;  %4279 = vrot.lane.b32.xlu0 %v9763_v25, %s8834_s26 }
 0x906   : > { %4285 = vrot.lane.b32.xlu1 %v9763_v25, %s8835_s24  ;;  %4265 = vrot.lane.b32.xlu0 %v9769_v29, %s8832_s23 }
 0x90a   : > { %4271 = vrot.lane.b32.xlu1 %v9769_v29, %s8833_s28  ;;  %4277 = vrot.lane.b32.xlu0 %v9769_v29, %s8834_s26 }
 0x90e   : > { %4283 = vrot.lane.b32.xlu1 %v9769_v29, %s8835_s24  ;;  %3961 = vrot.lane.b32.xlu0 %v3950_v22, %s8832_s23 }
 0x912   : > { %3964 = vrot.lane.b32.xlu1 %v3950_v22, %s8833_s28  ;;  %3967 = vrot.lane.b32.xlu0 %v3950_v22, %s8834_s26  ;;  %s10896_s28 = smov 32  }
 0x916   : > { %3970 = vrot.lane.b32.xlu1 %v3950_v22, %s8835_s24  ;;  %4839 = vrot.lane.b32.xlu0 %v9791_v44, %s8836_s6  ;;  %s10897_s24 = smov 56  }
 0x91a   : > { %4835 = vrot.lane.b32.xlu1 %v9763_v25, %s8836_s6  ;;  %4833 = vrot.lane.b32.xlu0 %v9769_v29, %s8836_s6 }
 0x91e   : > { %4843 = vrot.lane.b32.xlu1 %v9789_v42, %s8836_s6  ;;  %4841 = vrot.lane.b32.xlu0 %v9809_v56, %s8836_s6 }
 0x922   : > { %4847 = vrot.lane.b32.xlu1 %v9793_v46, %s8836_s6 }
 0x926   : > { %4837 = vrot.lane.b32.xlu1 %v9795_v15, %s8836_s6 }
 0x92a   : > { %4845 = vrot.lane.b32.xlu1 %v9811_v55, %s8836_s6 }
 0x96c   : > { %v3953_v44 = vpop.permute.xlu1 %3952  ;;  %v3956_v25 = vpop.permute.xlu0 %3955 }
 0x96d   : > { %v3973_v23 = vcombine.low %v3950_v22, %v3956_v25  ;;  %v3974_v24 = vcombine.high %v3950_v22, %v3956_v25 }
 0x96f   : > { %v3981_v56 = vrot.slane %v3973_v23, %v9322_v60  ;;  %v3988_v46 = vrot.slane %v3974_v24, %v9322_v60 }
 0x970   : > { %v3959_v29 = vpop.permute.xlu1 %3958  ;;  %v4268_v34 = vpop.permute.xlu0 %4267 }
 0x971   : > { %v3989_v26 = vcombine.low %v3953_v44, %v3959_v29  ;;  %v3990_v42 = vcombine.high %v3953_v44, %v3959_v29  ;;  %4851 = vrot.lane.b32.xlu0 %v4268_v34, %s8836_s6 }
 0x973   : > { %v3997_v30 = vrot.slane %v3989_v26, %v9322_v60  ;;  %v4004_v15 = vrot.slane %v3990_v42, %v9322_v60 }
 0x974   : > { %v4274_v31 = vpop.permute.xlu1 %4273  ;;  %v4280_v55 = vpop.permute.xlu0 %4279 }
 0x975   : > { %v4037_v32 = vcombine.low %v3981_v56, %v3997_v30  ;;  %v4038_v11 = vcombine.high %v3981_v56, %v3997_v30  ;;  %v4053_v21 = vcombine.low %v3988_v46, %v4004_v15  ;;  %v4054_v1 = vcombine.high %v3988_v46, %v4004_v15  ;;  %4855 = vrot.lane.b32.xlu1 %v4274_v31, %s8836_s6 }
 0x976   : > { %4859 = vrot.lane.b32.xlu0 %v4280_v55, %s8836_s6  ;;  %v4457_v27 = vcombine.low %v4268_v34, %v4280_v55  ;;  %v4458_v41 = vcombine.high %v4268_v34, %v4280_v55 }
 0x977   : > { %v4045_v33 = vrot.slane %v4037_v32, %v9325_v3  ;;  %v4052_v35 = vrot.slane %v4038_v11, %v9325_v3  ;;  %v4061_v36 = vrot.slane %v4053_v21, %v9325_v3  ;;  %v4068_v40 = vrot.slane %v4054_v1, %v9325_v3 }
 0x978   : > { %v4286_v28 = vpop.permute.xlu1 %4285  ;;  %v9942_v51 = vpop.permute.xlu0 %4265  ;;  %v4465_v2 = vrot.slane %v4457_v27, %v9322_v60  ;;  %v4472_v7 = vrot.slane %v4458_v41, %v9322_v60 }
 0x979   : > { %v7817_v5 = vcombine.low %v4045_v33, %v4052_v35  ;;  %v7819_v47 = vcombine.high %v4045_v33, %v4052_v35  ;;  %v7821_v50 = vcombine.low %v4061_v36, %v4068_v40  ;;  %v7823_v61 = vcombine.high %v4061_v36, %v4068_v40  ;;  %4863 = vrot.lane.b32.xlu1 %v4286_v28, %s8836_s6 }
 0x97a   : > { %v4473_v43 = vcombine.low %v4274_v31, %v4286_v28  ;;  %v4474_v57 = vcombine.high %v4274_v31, %v4286_v28 }
 0x97b   : > { %v4117_v62 = vrot.slane %v7817_v5, %v9322_v60  ;;  %v4133_v63 = vrot.slane %v7819_v47, %v9322_v60  ;;  %v4149_v0 = vrot.slane %v7821_v50, %v9322_v60  ;;  %v4165_v39 = vrot.slane %v7823_v61, %v9322_v60 }
 0x97c   : > { %v4481_v10 = vrot.slane %v4473_v43, %v9322_v60  ;;  %v4488_v17 = vrot.slane %v4474_v57, %v9322_v60  ;;  %v9953_v18 = vpop.permute.xlu1 %4271  ;;  %v9955_v19 = vpop.permute.xlu0 %4277 }
 0x97d   : > { %v4173_v20 = vcombine.low %v4117_v62, %v4133_v63  ;;  %v4174_v22 = vcombine.high %v4117_v62, %v4133_v63  ;;  %v4205_v44 = vcombine.low %v4149_v0, %v4165_v39  ;;  %v4206_v25 = vcombine.high %v4149_v0, %v4165_v39 }
 0x97e   : > { %v4521_v23 = vcombine.low %v4465_v2, %v4481_v10  ;;  %v4522_v24 = vcombine.high %v4465_v2, %v4481_v10  ;;  %v4537_v29 = vcombine.low %v4472_v7, %v4488_v17  ;;  %v4538_v34 = vcombine.high %v4472_v7, %v4488_v17 }
 0x97f   : > { %v4321_v26 = vcombine.low %v9942_v51, %v9955_v19  ;;  %v4322_v42 = vcombine.high %v9942_v51, %v9955_v19  ;;  %v9962_v56 = vrot.slane %v4173_v20, %v9325_v3  ;;  %v9965_v46 = vrot.slane %v4205_v44, %v9325_v3 }
 0x980   : > { %v4529_v30 = vrot.slane %v4521_v23, %v9325_v3  ;;  %v4536_v15 = vrot.slane %v4522_v24, %v9325_v3  ;;  %v4545_v31 = vrot.slane %v4537_v29, %v9325_v3  ;;  %v4552_v55 = vrot.slane %v4538_v34, %v9325_v3  ;;  %v9971_v32 = vpop.permute.xlu1 %4283  ;;  %v3962_v11 = vpop.permute.xlu0 %3961 }
 0x981   : > { %v4329_v21 = vrot.slane %v4321_v26, %v9322_v60  ;;  %v4336_v1 = vrot.slane %v4322_v42, %v9322_v60  ;;  %v4337_v33 = vcombine.low %v9953_v18, %v9971_v32  ;;  %v4338_v35 = vcombine.high %v9953_v18, %v9971_v32 }
 0x982   : > { %v7834_v36 = vcombine.low %v4529_v30, %v4536_v15  ;;  %v7836_v40 = vcombine.high %v4529_v30, %v4536_v15  ;;  %v7838_v27 = vcombine.low %v4545_v31, %v4552_v55  ;;  %v7840_v41 = vcombine.high %v4545_v31, %v4552_v55 }
 0x983   : > { %v4345_v28 = vrot.slane %v4337_v33, %v9322_v60  ;;  %v4352_v5 = vrot.slane %v4338_v35, %v9322_v60  ;;  %v4237_v47 = vcombine.low %v9962_v56, %v9965_v46  ;;  %v9984_v50 = vrot.slane %v4174_v22, %v9325_v3 }
 0x984   : > { %v9987_v61 = vrot.slane %v7834_v36, %v9322_v60  ;;  %v9990_v43 = vrot.slane %v7836_v40, %v9322_v60  ;;  %v9993_v57 = vrot.slane %v7838_v27, %v9322_v60  ;;  %v9996_v62 = vrot.slane %v7840_v41, %v9322_v60  ;;  %v3965_v63 = vpop.permute.xlu1 %3964  ;;  %v3968_v0 = vpop.permute.xlu0 %3967 }
 0x985   : > { %v4385_v39 = vcombine.low %v4329_v21, %v4345_v28  ;;  %v4386_v2 = vcombine.high %v4329_v21, %v4345_v28  ;;  %v4401_v7 = vcombine.low %v4336_v1, %v4352_v5  ;;  %v4402_v10 = vcombine.high %v4336_v1, %v4352_v5  ;;  %8205 = vmatmul.mubr.msk.f32.vlgmr.msra.gmra.mxu1 %vm1946_vm2, %v4237_v47 }
 0x986   : > { %v4777_v17 = vcombine.low %v9987_v61, %v9990_v43  ;;  %v4778_v20 = vcombine.high %v9987_v61, %v9990_v43  ;;  %v4809_v22 = vcombine.low %v9993_v57, %v9996_v62  ;;  %v4810_v44 = vcombine.high %v9993_v57, %v9996_v62  ;;  %8208 = vmatpush3.xpose.msk.msra.mxu1 %vm1946_vm2, %v4826_v12 }
 0x987   : > { %v4393_v23 = vrot.slane %v4385_v39, %v9325_v3  ;;  %v4400_v24 = vrot.slane %v4386_v2, %v9325_v3  ;;  %v4409_v29 = vrot.slane %v4401_v7, %v9325_v3  ;;  %v4416_v34 = vrot.slane %v4402_v10, %v9325_v3  ;;  %8209 = vmatprep.subr.mxu1 %v8828_v8 }
 0x988   : > { %v10017_v26 = vrot.slane %v4206_v25, %v9325_v3  ;;  %v4005_v42 = vcombine.low %v3962_v11, %v3968_v0  ;;  %v4006_v30 = vcombine.high %v3962_v11, %v3968_v0  ;;  %v3971_v15 = vpop.permute.xlu1 %3970  ;;  %v10019_v31 = vpop.permute.xlu0 %4839  ;;  %8211 = vmatprep.mubr.msk.f32.mxu1 %vm8837_vm1, %v8828_v8  ;;  %v4238_v48 = vcombine.high %v9962_v56, %v9965_v46 }
 0x989   : > { %v7826_v52 = vcombine.low %v4393_v23, %v4400_v24  ;;  %v7828_v12 = vcombine.high %v4393_v23, %v4400_v24  ;;  %v7830_v55 = vcombine.low %v4409_v29, %v4416_v34  ;;  %v7832_v21 = vcombine.high %v4409_v29, %v4416_v34 }
 0x98a   : > { %v4239_v1 = vcombine.low %v9984_v50, %v10017_v26  ;;  %v4013_v25 = vrot.slane %v4005_v42, %v9322_v60  ;;  %v4020_v11 = vrot.slane %v4006_v30, %v9322_v60  ;;  %8210 = vmatpush3.xpose.msk.msra.mxu1 %vm1946_vm2, %v4690_v13  ;;  %v4021_v33 = vcombine.low %v3965_v63, %v3971_v15 }
 0x98b   : > { %v10034_v35 = vrot.slane %v7826_v52, %v9322_v60  ;;  %v10037_v56 = vrot.slane %v7828_v12, %v9322_v60  ;;  %v10040_v46 = vrot.slane %v7830_v55, %v9322_v60  ;;  %v10043_v36 = vrot.slane %v7832_v21, %v9322_v60  ;;  %8221 = vmatprep.subr.mxu1 %v8828_v8 }
 0x98c   : > { %8219 = vmatmul.mubr.msk.f32.vlgmr.msra.gmra.mxu0 %vm1946_vm2, %v4239_v1  ;;  %v4022_v58 = vcombine.high %v3965_v63, %v3971_v15  ;;  %v4029_v59 = vrot.slane %v4021_v33, %v9322_v60  ;;  %v4785_v13 = vrot.slane %v4777_v17, %v9325_v3  ;;  %v4817_v40 = vrot.slane %v4809_v22, %v9325_v3  ;;  %v4836_v27 = vpop.permute.xlu1 %4835  ;;  %v4834_v41 = vpop.permute.xlu0 %4833 }
 0x98d   : > { %v4641_v28 = vcombine.low %v10034_v35, %v10037_v56  ;;  %v4642_v5 = vcombine.high %v10034_v35, %v10037_v56  ;;  %v4673_v47 = vcombine.low %v10040_v46, %v10043_v36  ;;  %v4674_v63 = vcombine.high %v10040_v46, %v10043_v36  ;;  %8212 = vmatmul.mubr.msk.f32.vlgmr.msra.gmra.mxu1 %vm1946_vm2, %v4238_v48 }
 0x98e   : > { %v4036_v0 = vrot.slane %v4022_v58, %v9322_v60  ;;  %v4069_v39 = vcombine.low %v4013_v25, %v4029_v59  ;;  %v4070_v2 = vcombine.high %v4013_v25, %v4029_v59  ;;  %8222 = vmatpush3.xpose.msk.msra.mxu1 %vm1946_vm2, %v4828_v14  ;;  %v4829_v7 = vcombine.low %v4785_v13, %v4817_v40 }
 0x98f   : > { %8223 = vmatprep.subr.mxu1 %v8828_v8  ;;  %8225 = vmatprep.mubr.msk.f32.mxu1 %vm8837_vm1, %v8828_v8  ;;  %v4240_v10 = vcombine.high %v9984_v50, %v10017_v26  ;;  %v10070_v17 = vrot.slane %v4641_v28, %v9325_v3  ;;  %v10073_v22 = vrot.slane %v4673_v47, %v9325_v3 }
 0x990   : > { %v4077_v23 = vrot.slane %v4069_v39, %v9325_v3  ;;  %v4084_v53 = vrot.slane %v4070_v2, %v9325_v3  ;;  %v4085_v54 = vcombine.low %v4020_v11, %v4036_v0  ;;  %v4086_v14 = vcombine.high %v4020_v11, %v4036_v0  ;;  %8229 = vmatpush3.xpose.msk.msra.mxu0 %vm1946_vm2, %v4829_v7  ;;  %v4844_v24 = vpop.permute.xlu1 %4843  ;;  %v4842_v29 = vpop.permute.xlu0 %4841 }
 0x991   : > { %v5017_v34 = vcombine.low %v4836_v27, %v4844_v24  ;;  %v5018_v42 = vcombine.high %v4836_v27, %v4844_v24  ;;  %v4881_v30 = vcombine.low %v4834_v41, %v4842_v29  ;;  %v4882_v50 = vcombine.high %v4834_v41, %v4842_v29  ;;  %8230 = vmatprep.subr.mxu0 %v8828_v8 }
 0x992   : > { %v4093_v26 = vrot.slane %v4085_v54, %v9325_v3  ;;  %v4100_v15 = vrot.slane %v4086_v14, %v9325_v3  ;;  %v7818_v48 = vcombine.low %v4077_v23, %v4084_v53  ;;  %v7820_v52 = vcombine.high %v4077_v23, %v4084_v53  ;;  %8224 = vmatpush3.xpose.msk.msra.mxu1 %vm1946_vm2, %v4692_v16 }
 0x993   : > { %v5025_v12 = vrot.slane %v5017_v34, %v9322_v60  ;;  %v5032_v55 = vrot.slane %v5018_v42, %v9322_v60  ;;  %v10088_v21 = vrot.slane %v4881_v30, %v9322_v60  ;;  %v10091_v1 = vrot.slane %v4882_v50, %v9322_v60  ;;  %8235 = vmatprep.subr.mxu1 %v8828_v8 }
 0x994   : > { %v10095_v25 = vrot.slane %v7818_v48, %v9322_v60  ;;  %v10098_v11 = vrot.slane %v7820_v52, %v9322_v60  ;;  %v7822_v4 = vcombine.low %v4093_v26, %v4100_v15  ;;  %v7824_v6 = vcombine.high %v4093_v26, %v4100_v15  ;;  %v4848_v16 = vpop.permute.xlu1 %4847  ;;  %8232 = vmatprep.mubr.msk.f32.mxu0 %vm8837_vm1, %v8828_v8 }
 0x995   : > { %8226 = vmatmul.mubr.msk.f32.vlgmr.msra.gmra.mxu1 %vm1946_vm2, %v4240_v10  ;;  %v4693_v33 = vcombine.low %v10070_v17, %v10073_v22  ;;  %v4830_v58 = vcombine.high %v4785_v13, %v4817_v40  ;;  %v5033_v59 = vcombine.low %v10019_v31, %v4848_v16  ;;  %v5034_v27 = vcombine.high %v10019_v31, %v4848_v16 }
 0x996   : > { %v4156_v41 = vrot.slane %v7822_v4, %v9322_v60  ;;  %v4172_v28 = vrot.slane %v7824_v6, %v9322_v60  ;;  %v4189_v47 = vcombine.low %v10095_v25, %v10098_v11  ;;  %v4190_v0 = vcombine.high %v10095_v25, %v10098_v11  ;;  %8239 = vmatprep.mubr.msk.f32.mxu1 %vm8837_vm1, %v8828_v8 }
 0x997   : > { %8231 = vmatpush3.xpose.msk.msra.mxu0 %vm1946_vm2, %v4693_v33  ;;  %8236 = vmatpush3.xpose.msk.msra.mxu1 %vm1946_vm2, %v4830_v58  ;;  %v5041_v13 = vrot.slane %v5033_v59, %v9322_v60  ;;  %v5048_v31 = vrot.slane %v5034_v27, %v9322_v60  ;;  %v4694_v40 = vcombine.high %v10070_v17, %v10073_v22 }
 0x998   : > { %v4221_v39 = vcombine.low %v4156_v41, %v4172_v28  ;;  %v4222_v2 = vcombine.high %v4156_v41, %v4172_v28  ;;  %8237 = vmatprep.subr.mxu1 %v8828_v8  ;;  %v4838_v7 = vpop.permute.xlu1 %4837  ;;  %8242 = vmatprep.subr.mxu0 %v8828_v8  ;;  %v4197_v10 = vrot.slane %v4189_v47, %v9325_v3 }
 0x999   : > { %v5081_v23 = vcombine.low %v5025_v12, %v5041_v13  ;;  %v5082_v53 = vcombine.high %v5025_v12, %v5041_v13  ;;  %v5097_v54 = vcombine.low %v5032_v55, %v5048_v31  ;;  %v5098_v14 = vcombine.high %v5032_v55, %v5048_v31 }
 0x99a   : > { %v4229_v24 = vrot.slane %v4221_v39, %v9325_v3  ;;  %v4792_v17 = vrot.slane %v4778_v20, %v9325_v3  ;;  %v4824_v22 = vrot.slane %v4810_v44, %v9325_v3  ;;  %v4656_v29 = vrot.slane %v4642_v5, %v9325_v3 }
 0x99b   : > { %v5089_v34 = vrot.slane %v5081_v23, %v9325_v3  ;;  %v5096_v42 = vrot.slane %v5082_v53, %v9325_v3  ;;  %v5105_v30 = vrot.slane %v5097_v54, %v9325_v3  ;;  %v5112_v50 = vrot.slane %v5098_v14, %v9325_v3  ;;  %8238 = vmatpush3.xpose.msk.msra.mxu1 %vm1946_vm2, %v4694_v40 }
 0x99c   : > { %8249 = vmatprep.subr.mxu1 %v8828_v8  ;;  %v4241_v61 = vcombine.low %v4197_v10, %v4229_v24  ;;  %v4242_v43 = vcombine.high %v4197_v10, %v4229_v24  ;;  %v4831_v57 = vcombine.low %v4792_v17, %v4824_v22  ;;  %v4832_v62 = vcombine.high %v4792_v17, %v4824_v22  ;;  %v4846_v20 = vpop.permute.xlu1 %4845 }
 0x99d   : > { %v7849_v44 = vcombine.low %v5089_v34, %v5096_v42  ;;  %v7851_v35 = vcombine.high %v5089_v34, %v5096_v42  ;;  %v7853_v56 = vcombine.low %v5105_v30, %v5112_v50  ;;  %v7855_v5 = vcombine.high %v5105_v30, %v5112_v50 }
 0x99e   : > { %8233 = vmatmul.mubr.msk.f32.vlgmr.msra.gmra.mxu0 %vm1946_vm2, %v4241_v61  ;;  %8240 = vmatmul.mubr.msk.f32.vlgmr.msra.gmra.mxu1 %vm1946_vm2, %v4242_v43  ;;  %v4897_v26 = vcombine.low %v4838_v7, %v4846_v20  ;;  %v4898_v15 = vcombine.high %v4838_v7, %v4846_v20  ;;  %v4688_v48 = vrot.slane %v4674_v63, %v9325_v3 }
 0x99f   : > { %v5297_v52 = vrot.slane %v7849_v44, %v9322_v60  ;;  %v5313_v12 = vrot.slane %v7851_v35, %v9322_v60  ;;  %v5329_v55 = vrot.slane %v7853_v56, %v9322_v60  ;;  %v5345_v25 = vrot.slane %v7855_v5, %v9322_v60  ;;  %8243 = vmatpush3.xpose.msk.msra.mxu0 %vm1946_vm2, %v4831_v57 }
 0x9a0   : > { %8250 = vmatpush3.xpose.msk.msra.mxu1 %vm1946_vm2, %v4832_v62  ;;  %v4905_v11 = vrot.slane %v4897_v26, %v9322_v60  ;;  %v4912_v4 = vrot.slane %v4898_v15, %v9322_v60  ;;  %8244 = vmatprep.subr.mxu0 %v8828_v8  ;;  %v4695_v46 = vcombine.low %v4656_v29, %v4688_v48 }
 0x9a1   : > { %8251 = vmatprep.subr.mxu1 %v8828_v8  ;;  %v4696_v36 = vcombine.high %v4656_v29, %v4688_v48  ;;  %8246 = vmatprep.mubr.msk.f32.mxu0 %vm8837_vm1, %v8828_v8  ;;  %v4204_v63 = vrot.slane %v4190_v0, %v9325_v3  ;;  %v4236_v6 = vrot.slane %v4222_v2, %v9325_v3 }
 0x9a2   : > { %v4945_v16 = vcombine.low %v10088_v21, %v4905_v11  ;;  %v4946_v33 = vcombine.high %v10088_v21, %v4905_v11  ;;  %v4961_v58 = vcombine.low %v10091_v1, %v4912_v4  ;;  %v4962_v59 = vcombine.high %v10091_v1, %v4912_v4  ;;  %8253 = vmatprep.mubr.msk.f32.mxu1 %vm8837_vm1, %v8828_v8 }
 0x9a3   : > { %8245 = vmatpush3.xpose.msk.msra.mxu0 %vm1946_vm2, %v4695_v46  ;;  %v4243_v27 = vcombine.low %v4204_v63, %v4236_v6  ;;  %v4244_v41 = vcombine.high %v4204_v63, %v4236_v6  ;;  %v5353_v28 = vcombine.low %v5297_v52, %v5313_v12  ;;  %v5385_v47 = vcombine.low %v5329_v55, %v5345_v25 }
 0x9a4   : > { %v4953_v0 = vrot.slane %v4945_v16, %v9325_v3  ;;  %v4960_v13 = vrot.slane %v4946_v33, %v9325_v3  ;;  %v4969_v31 = vrot.slane %v4961_v58, %v9325_v3  ;;  %v4976_v21 = vrot.slane %v4962_v59, %v9325_v3  ;;  %8252 = vmatpush3.xpose.msk.msra.mxu1 %vm1946_vm2, %v4696_v36 }
 0x9a5   : > { %8256 = vmatprep.subr.mxu0 %v8828_v8  ;;  %8263 = vmatprep.subr.mxu1 %v8828_v8  ;;  %v5361_v1 = vrot.slane %v5353_v28, %v9325_v3  ;;  %v5393_v40 = vrot.slane %v5385_v47, %v9325_v3  ;;  %v5354_v39 = vcombine.high %v5297_v52, %v5313_v12 }
 0x9a6   : > { %v7841_v2 = vcombine.low %v4953_v0, %v4960_v13  ;;  %v7843_v7 = vcombine.high %v4953_v0, %v4960_v13  ;;  %v7845_v10 = vcombine.low %v4969_v31, %v4976_v21  ;;  %v7847_v23 = vcombine.high %v4969_v31, %v4976_v21  ;;  %8247 = vmatmul.mubr.msk.f32.vlgmr.msra.gmra.mxu0 %vm1946_vm2, %v4243_v27 }
 0x9a7   : > { %8254 = vmatmul.mubr.msk.f32.vlgmr.msra.gmra.mxu1 %vm1946_vm2, %v4244_v41  ;;  %v5417_v53 = vcombine.low %v5361_v1, %v5393_v40  ;;  %v5418_v54 = vcombine.high %v5361_v1, %v5393_v40  ;;  %8260 = vmatprep.mubr.msk.f32.mxu0 %vm8837_vm1, %v8828_v8  ;;  %v10190_v29 = vrot.slane %v5354_v39, %v9325_v3 }
 0x9a8   : > { %v5161_v14 = vrot.slane %v7841_v2, %v9322_v60  ;;  %v5177_v24 = vrot.slane %v7843_v7, %v9322_v60  ;;  %v5193_v17 = vrot.slane %v7845_v10, %v9322_v60  ;;  %v5209_v22 = vrot.slane %v7847_v23, %v9322_v60  ;;  %8267 = vmatprep.mubr.msk.f32.mxu1 %vm8837_vm1, %v8828_v8 }
 0x9a9   : > { %8257 = vmatpush3.msra.mxu0 %v5417_v53  ;;  %8264 = vmatpush3.msra.mxu1 %v5418_v54  ;;  %v5386_v34 = vcombine.high %v5329_v55, %v5345_v25 }
 0x9aa   : > { %8258 = vmatprep.subr.mxu0 %v8828_v8  ;;  %8265 = vmatprep.subr.mxu1 %v8828_v8  ;;  %v5217_v42 = vcombine.low %v5161_v14, %v5177_v24  ;;  %v5249_v30 = vcombine.low %v5193_v17, %v5209_v22  ;;  %v5218_v50 = vcombine.high %v5161_v14, %v5177_v24 }
 0x9ab   : > { %v10195_v61 = vrot.slane %v5386_v34, %v9325_v3  ;;  %v5250_v43 = vcombine.high %v5193_v17, %v5209_v22 }
 0x9ac   : > { %v5225_v57 = vrot.slane %v5217_v42, %v9325_v3  ;;  %v5257_v62 = vrot.slane %v5249_v30, %v9325_v3  ;;  %v10200_v20 = vrot.slane %v5218_v50, %v9325_v3 }
 0x9ad   : > { %v5419_v44 = vcombine.low %v10190_v29, %v10195_v61  ;;  %v10205_v35 = vrot.slane %v5250_v43, %v9325_v3  ;;  %v5420_v56 = vcombine.high %v10190_v29, %v10195_v61 }
 0x9ae   : > { %v5281_v5 = vcombine.low %v5225_v57, %v5257_v62  ;;  %v5282_v26 = vcombine.high %v5225_v57, %v5257_v62  ;;  %v7857_v57 = vld [vmem:[%s813_s4] ss:$0 sm:$0xff]  ;;  %s10893_s4 = smov 8  }
 0x9af   : > { %v5283_v15 = vcombine.low %v10200_v20, %v10205_v35  ;;  %v5284_v48 = vcombine.high %v10200_v20, %v10205_v35 }
 0x9b0   : > { %8259 = vmatpush3.msra.mxu0 %v5281_v5  ;;  %8266 = vmatpush3.msra.mxu1 %v5282_v26 }
 0x9b1   : > { %8270 = vmatprep.subr.mxu0 %v8828_v8  ;;  %8277 = vmatprep.subr.mxu1 %v8828_v8 }
 0x9e3   : > { %v4852_v52 = vpop.permute.xlu0 %4851 }
 0x9e7   : > { %v4856_v12 = vpop.permute.xlu1 %4855 }
 0x9e8   : > { %v4860_v55 = vpop.permute.xlu0 %4859 }
 0x9e9   : > { %v5049_v25 = vcombine.low %v4852_v52, %v4860_v55  ;;  %v5050_v11 = vcombine.high %v4852_v52, %v4860_v55 }
 0x9eb   : > { %v4864_v4 = vpop.permute.xlu1 %4863  ;;  %v5057_v63 = vrot.slane %v5049_v25, %v9322_v60  ;;  %v5064_v6 = vrot.slane %v5050_v11, %v9322_v60 }
 0x9ec   : > { %v5065_v46 = vcombine.low %v4856_v12, %v4864_v4  ;;  %v5066_v36 = vcombine.high %v4856_v12, %v4864_v4 }
 0x9ee   : > { %v5073_v16 = vrot.slane %v5065_v46, %v9322_v60  ;;  %v5080_v33 = vrot.slane %v5066_v36, %v9322_v60 }
 0x9f0   : > { %v5113_v58 = vcombine.low %v5057_v63, %v5073_v16  ;;  %v5114_v59 = vcombine.high %v5057_v63, %v5073_v16  ;;  %v5129_v27 = vcombine.low %v5064_v6, %v5080_v33  ;;  %v5130_v41 = vcombine.high %v5064_v6, %v5080_v33 }
 0x9f2   : > { %v5121_v28 = vrot.slane %v5113_v58, %v9325_v3  ;;  %v5128_v47 = vrot.slane %v5114_v59, %v9325_v3  ;;  %v5137_v0 = vrot.slane %v5129_v27, %v9325_v3  ;;  %v5144_v13 = vrot.slane %v5130_v41, %v9325_v3 }
 0x9f4   : > { %v7850_v31 = vcombine.low %v5121_v28, %v5128_v47  ;;  %v7852_v21 = vcombine.high %v5121_v28, %v5128_v47  ;;  %v7854_v1 = vcombine.low %v5137_v0, %v5144_v13  ;;  %v7856_v40 = vcombine.high %v5137_v0, %v5144_v13 }
 0x9f6   : > { %v5304_v39 = vrot.slane %v7850_v31, %v9322_v60  ;;  %v5320_v2 = vrot.slane %v7852_v21, %v9322_v60  ;;  %v5336_v7 = vrot.slane %v7854_v1, %v9322_v60  ;;  %v5352_v10 = vrot.slane %v7856_v40, %v9322_v60 }
 0x9f8   : > { %v5369_v23 = vcombine.low %v5304_v39, %v5320_v2  ;;  %v5401_v53 = vcombine.low %v5336_v7, %v5352_v10  ;;  %v5370_v54 = vcombine.high %v5304_v39, %v5320_v2  ;;  %v5402_v14 = vcombine.high %v5336_v7, %v5352_v10 }
 0x9fa   : > { %v10228_v24 = vrot.slane %v5369_v23, %v9325_v3  ;;  %v10231_v17 = vrot.slane %v5401_v53, %v9325_v3  ;;  %v10234_v22 = vrot.slane %v5370_v54, %v9325_v3  ;;  %v10237_v34 = vrot.slane %v5402_v14, %v9325_v3 }
 0x9fc   : > { %v5421_v42 = vcombine.low %v10228_v24, %v10231_v17  ;;  %v5422_v30 = vcombine.high %v10228_v24, %v10231_v17  ;;  %v5423_v50 = vcombine.low %v10234_v22, %v10237_v34  ;;  %v5424_v43 = vcombine.high %v10234_v22, %v10237_v34 }
 0xa45   : > { %v5506_v62 = vpop.f32.mrf.mxu1 }
 0xa46   : > { %v5507_v5 = vadd.f32 %v7857_v57, %v5506_v62 }
 0xa47   : > { %v8206_v26 = vpop.f32.mrf.mxu1 }
 0xa48   : > { %v6063_v52 = vsel %vm3528_vm3, %v5507_v5, -inf }
 0xa49   : > { %6064 = vmax.xlane.f32.xlu0 %v6063_v52 }
 0xa4c   : > { %v5664_v12 = vpop.f32.mrf.mxu0 }
 0xa4d   : > { %v5665_v55 = vadd.f32 %v7857_v57, %v5664_v12  ;;  %v5585_v25 = vpop.f32.mrf.mxu1 }
 0xa4e   : > { %v8220_v11 = vpop.f32.mrf.mxu0  ;;  %v5586_v4 = vadd.f32 %v7857_v57, %v5585_v25 }
 0xa4f   : > { %v6069_v46 = vsel %vm3528_vm3, %v5665_v55, -inf  ;;  %v8213_v36 = vpop.f32.mrf.mxu1 }
 0xa50   : > { %6070 = vmax.xlane.f32.xlu0 %v6069_v46  ;;  %v6066_v63 = vsel %vm3528_vm3, %v5586_v4, -inf }
 0xa51   : > { %6067 = vmax.xlane.f32.xlu1 %v6066_v63 }
 0xa55   : > { %v5743_v6 = vpop.f32.mrf.mxu1 }
 0xa56   : > { %v5744_v16 = vadd.f32 %v7857_v57, %v5743_v6 }
 0xa57   : > { %v8227_v33 = vpop.f32.mrf.mxu1 }
 0xa58   : > { %v6072_v58 = vsel %vm3528_vm3, %v5744_v16, -inf }
 0xa59   : > { %6073 = vmax.xlane.f32.xlu0 %v6072_v58 }
 0xa5e   : > { %v5822_v59 = vpop.f32.mrf.mxu0  ;;  %v5901_v27 = vpop.f32.mrf.mxu1 }
 0xa5f   : > { %v5823_v41 = vadd.f32 %v7857_v57, %v5822_v59  ;;  %v5902_v28 = vadd.f32 %v7857_v57, %v5901_v27 }
 0xa60   : > { %v8234_v47 = vpop.f32.mrf.mxu0  ;;  %v8241_v0 = vpop.f32.mrf.mxu1 }
 0xa61   : > { %v6078_v13 = vsel %vm3528_vm3, %v5902_v28, -inf  ;;  %v6075_v31 = vsel %vm3528_vm3, %v5823_v41, -inf }
 0xa62   : > { %6079 = vmax.xlane.f32.xlu0 %v6078_v13  ;;  %6076 = vmax.xlane.f32.xlu1 %v6075_v31 }
 0xa66   : > { %v5980_v21 = vpop.f32.mrf.mxu0 }
 0xa67   : > { %v5981_v1 = vadd.f32 %v7857_v57, %v5980_v21  ;;  %v6059_v40 = vpop.f32.mrf.mxu1 }
 0xa68   : > { %v6060_v39 = vadd.f32 %v7857_v57, %v6059_v40  ;;  %v8248_v2 = vpop.f32.mrf.mxu0 }
 0xa69   : > { %v8255_v7 = vpop.f32.mrf.mxu1  ;;  %v6081_v10 = vsel %vm3528_vm3, %v5981_v1, -inf }
 0xa6a   : > { %v6084_v23 = vsel %vm3528_vm3, %v6060_v39, -inf  ;;  %6082 = vmax.xlane.f32.xlu1 %v6081_v10 }
 0xa6b   : > { %6085 = vmax.xlane.f32.xlu0 %v6084_v23 }
 0xa7b   : > { %4853 = vrot.lane.b32.xlu1 %v9953_v18, %s8836_s6 }
 0xa81   : > { %4849 = vrot.lane.b32.xlu0 %v9942_v51, %s8836_s6 }
 0xad2   : > { %v6065_v53 = vpop.xlane.xlu0 %6064 }
 0xad3   : > { %v6087_v54 = vsub.f32 %v5507_v5, %v6065_v53 }
 0xad5   : > { %v6095_v14 = vmul.f32 1.442695, %v6087_v54 }
 0xad7   : > { %8485 = vpow2.f32 %v6095_v14 }
 0xad9   : > { %v6071_v62 = vpop.xlane.xlu0 %6070 }
 0xada   : > { %v6089_v57 = vsub.f32 %v5665_v55, %v6071_v62  ;;  %v6068_v26 = vpop.xlane.xlu1 %6067 }
 0xadb   : > { %v6088_v52 = vsub.f32 %v5586_v4, %v6068_v26 }
 0xadc   : > { %v6099_v12 = vmul.f32 1.442695, %v6089_v57 }
 0xadd   : > { %v6097_v25 = vmul.f32 1.442695, %v6088_v52 }
 0xade   : > { %8487 = vpow2.f32 %v6099_v12 }
 0xadf   : > { %8489 = vpow2.f32 %v6097_v25 }
 0xae2   : > { %v6074_v18 = vpop.xlane.xlu0 %6073 }
 0xae3   : > { %v6090_v36 = vsub.f32 %v5744_v16, %v6074_v18 }
 0xae4   : > { %v8486_v11 = vpop.eup %8485 }
 0xae5   : > { %v6111_v46 = vsel %vm3528_vm3, %v8486_v11, 0.0  ;;  %v6101_v59 = vmul.f32 1.442695, %v6090_v36 }
 0xae6   : > { %6112 = vadd.xlane.f32.xlu1 %v6111_v46 }
 0xaeb   : > { %v8488_v63 = vpop.eup %8487  ;;  %v6077_v51 = vpop.xlane.xlu1 %6076 }
 0xaec   : > { %v6080_v6 = vpop.xlane.xlu0 %6079  ;;  %v8490_v5 = vpop.eup %8489  ;;  %v6091_v33 = vsub.f32 %v5823_v41, %v6077_v51  ;;  %v6117_v58 = vsel %vm3528_vm3, %v8488_v63, 0.0 }
 0xaed   : > { %v6092_v55 = vsub.f32 %v5902_v28, %v6080_v6  ;;  %6118 = vadd.xlane.f32.xlu1 %v6117_v58  ;;  %v6114_v4 = vsel %vm3528_vm3, %v8490_v5, 0.0 }
 0xaee   : > { %v6103_v27 = vmul.f32 1.442695, %v6091_v33  ;;  %6115 = vadd.xlane.f32.xlu0 %v6114_v4 }
 0xaef   : > { %v6105_v47 = vmul.f32 1.442695, %v6092_v55 }
 0xaf0   : > { %8491 = vpow2.f32 %v6103_v27 }
 0xaf1   : > { %8493 = vpow2.f32 %v6105_v47 }
 0xaf2   : > { %8495 = vpow2.f32 %v6101_v59 }
 0xaf3   : > { %v6083_v0 = vpop.xlane.xlu1 %6082 }
 0xaf4   : > { %v6093_v16 = vsub.f32 %v5981_v1, %v6083_v0  ;;  %v6086_v13 = vpop.xlane.xlu0 %6085 }
 0xaf5   : > { %v6094_v31 = vsub.f32 %v6060_v39, %v6086_v13 }
 0xaf6   : > { %v6107_v21 = vmul.f32 1.442695, %v6093_v16 }
 0xaf7   : > { %v6109_v40 = vmul.f32 1.442695, %v6094_v31  ;;  %v4854_v14 = vpop.permute.xlu1 %4853 }
 0xaf8   : > { %8497 = vpow2.f32 %v6107_v21  ;;  %v4850_v57 = vpop.permute.xlu0 %4849 }
 0xaf9   : > { %8499 = vpow2.f32 %v6109_v40 }
 0xafd   : > { %v10264_v41 = vpop.eup %8491 }
 0xafe   : > { %v10266_v28 = vpop.eup %8493  ;;  %v6123_v2 = vsel %vm3528_vm3, %v10264_v41, 0.0 }
 0xaff   : > { %v10270_v7 = vpop.eup %8495  ;;  %6124 = vadd.xlane.f32.xlu0 %v6123_v2  ;;  %v6126_v10 = vsel %vm3528_vm3, %v10266_v28, 0.0 }
 0xb00   : > { %6127 = vadd.xlane.f32.xlu1 %v6126_v10  ;;  %v6120_v1 = vsel %vm3528_vm3, %v10270_v7, 0.0 }
 0xb03   : > { %6121 = vadd.xlane.f32.xlu0 %v6120_v1 }
 0xb05   : > { %v10276_v39 = vpop.eup %8497 }
 0xb06   : > { %v10278_v23 = vpop.eup %8499  ;;  %v6129_v53 = vsel %vm3528_vm3, %v10276_v39, 0.0 }
 0xb07   : > { %v6132_v54 = vsel %vm3528_vm3, %v10278_v23, 0.0  ;;  %6130 = vadd.xlane.f32.xlu0 %v6129_v53 }
 0xb08   : > { %6133 = vadd.xlane.f32.xlu1 %v6132_v54 }
 0xb19   : > { %4861 = vrot.lane.b32.xlu1 %v9971_v32, %s8836_s6 }
 0xb1d   : > { %4857 = vrot.lane.b32.xlu0 %v9955_v19, %s8836_s6 }
 0xb6f   : > { %v6113_v62 = vpop.xlane.xlu1 %6112 }
 0xb70   : > { %8501 = vrcp.f32 %v6113_v62 }
 0xb76   : > { %v6119_v26 = vpop.xlane.xlu1 %6118 }
 0xb77   : > { %8503 = vrcp.f32 %v6119_v26  ;;  %v6116_v52 = vpop.xlane.xlu0 %6115 }
 0xb78   : > { %8505 = vrcp.f32 %v6116_v52 }
 0xb7d   : > { %v8502_v12 = vpop.eup %8501 }
 0xb7e   : > { %v6136_v25 = vmul.f32 %v8502_v12, %v8486_v11 }
 0xb80   : > { %8261 = vmatmul.mubr.msk.f32.vlgmr.msra.gmra.mxu0 %vm3528_vm3, %v6136_v25  ;;  %v7042_v18 = vsel %vm3528_vm3, %v6136_v25, 0.0 }
 0xb81   : > { %8271 = vmatpush3.msra.mxu0 %v5419_v44  ;;  %8274 = vmatprep.mubr.msk.f32.mxu0 %vm8837_vm1, %v8828_v8 }
 0xb82   : > { %8272 = vmatprep.subr.mxu0 %v8828_v8 }
 0xb83   : > { %8273 = vmatpush3.msra.mxu0 %v5283_v15 }
 0xb84   : > { %v8504_v19 = vpop.eup %8503  ;;  %8284 = vmatprep.subr.mxu0 %v8828_v8 }
 0xb85   : > { %v8506_v32 = vpop.eup %8505  ;;  %v6140_v11 = vmul.f32 %v8504_v19, %v8488_v63 }
 0xb86   : > { %v6138_v46 = vmul.f32 %v8506_v32, %v8490_v5 }
 0xb87   : > { %8275 = vmatmul.mubr.msk.f32.vlgmr.msra.gmra.mxu0 %vm3528_vm3, %v6140_v11  ;;  %v7045_v63 = vsel %vm3528_vm3, %v6140_v11, 0.0 }
 0xb88   : > { %8285 = vmatpush3.msra.mxu0 %v5421_v42  ;;  %8268 = vmatmul.mubr.msk.f32.vlgmr.msra.gmra.mxu1 %vm3528_vm3, %v6138_v46  ;;  %v7043_v44 = vsel %vm3528_vm3, %v6138_v46, 0.0  ;;  %v6125_v36 = vpop.xlane.xlu0 %6124 }
 0xb89   : > { %v6128_v15 = vpop.xlane.xlu1 %6127  ;;  %v7044_v51 = vadd.f32 %v7043_v44, %v7042_v18  ;;  %8278 = vmatpush3.msra.mxu1 %v5420_v56  ;;  %8281 = vmatprep.mubr.msk.f32.mxu1 %vm8837_vm1, %v8828_v8  ;;  %8507 = vrcp.f32 %v6125_v36 }
 0xb8a   : > { %8279 = vmatprep.subr.mxu1 %v8828_v8  ;;  %8286 = vmatprep.subr.mxu0 %v8828_v8  ;;  %8509 = vrcp.f32 %v6128_v15 }
 0xb8b   : > { %8280 = vmatpush3.msra.mxu1 %v5284_v48  ;;  %v7046_v42 = vadd.f32 %v7045_v63, %v7044_v51  ;;  %8288 = vmatprep.mubr.msk.f32.mxu0 %vm8837_vm1, %v8828_v8 }
 0xb8c   : > { %v6122_v29 = vpop.xlane.xlu0 %6121  ;;  %8291 = vmatprep.subr.mxu1 %v8828_v8 }
 0xb8d   : > { %8511 = vrcp.f32 %v6122_v29 }
 0xb90   : > { %v6131_v61 = vpop.xlane.xlu0 %6130 }
 0xb91   : > { %v6134_v56 = vpop.xlane.xlu1 %6133  ;;  %8513 = vrcp.f32 %v6131_v61 }
 0xb92   : > { %8515 = vrcp.f32 %v6134_v56 }
 0xb94   : > { %v4858_v6 = vpop.permute.xlu0 %4857 }
 0xb95   : > { %v4862_v5 = vpop.permute.xlu1 %4861  ;;  %v4913_v33 = vcombine.low %v4850_v57, %v4858_v6  ;;  %v4914_v58 = vcombine.high %v4850_v57, %v4858_v6 }
 0xb96   : > { %v4929_v55 = vcombine.low %v4854_v14, %v4862_v5  ;;  %v4930_v20 = vcombine.high %v4854_v14, %v4862_v5  ;;  %v8508_v4 = vpop.eup %8507 }
 0xb97   : > { %v4921_v35 = vrot.slane %v4913_v33, %v9322_v60  ;;  %v4928_v48 = vrot.slane %v4914_v58, %v9322_v60  ;;  %v8510_v47 = vpop.eup %8509  ;;  %v6144_v2 = vmul.f32 %v8508_v4, %v10264_v41 }
 0xb98   : > { %v4937_v59 = vrot.slane %v4929_v55, %v9322_v60  ;;  %v4944_v27 = vrot.slane %v4930_v20, %v9322_v60  ;;  %v6146_v62 = vmul.f32 %v8510_v47, %v10266_v28 }
 0xb99   : > { %v7049_v19 = vsel %vm3528_vm3, %v6144_v2, 0.0 }
 0xb9a   : > { %v8512_v0 = vpop.eup %8511  ;;  %v4977_v16 = vcombine.low %v4921_v35, %v4937_v59  ;;  %v4978_v13 = vcombine.high %v4921_v35, %v4937_v59  ;;  %v4993_v31 = vcombine.low %v4928_v48, %v4944_v27  ;;  %v4994_v21 = vcombine.high %v4928_v48, %v4944_v27 }
 0xb9b   : > { %v6142_v40 = vmul.f32 %v8512_v0, %v10270_v7  ;;  %v7051_v44 = vsel %vm3528_vm3, %v6146_v62, 0.0 }
 0xb9c   : > { %v4985_v10 = vrot.slane %v4977_v16, %v9325_v3  ;;  %v4992_v1 = vrot.slane %v4978_v13, %v9325_v3  ;;  %v5001_v53 = vrot.slane %v4993_v31, %v9325_v3  ;;  %v5008_v54 = vrot.slane %v4994_v21, %v9325_v3 }
 0xb9d   : > { %8282 = vmatmul.mubr.msk.f32.vlgmr.msra.gmra.mxu1 %vm3528_vm3, %v6142_v40  ;;  %v7047_v14 = vsel %vm3528_vm3, %v6142_v40, 0.0 }
 0xb9e   : > { %v8514_v57 = vpop.eup %8513  ;;  %v7842_v26 = vcombine.low %v4985_v10, %v4992_v1  ;;  %v7844_v52 = vcombine.high %v4985_v10, %v4992_v1  ;;  %v7846_v7 = vcombine.low %v5001_v53, %v5008_v54  ;;  %v7848_v12 = vcombine.high %v5001_v53, %v5008_v54  ;;  %8292 = vmatpush3.msra.mxu1 %v5422_v30 }
 0xb9f   : > { %v8516_v41 = vpop.eup %8515  ;;  %v7048_v25 = vadd.f32 %v7047_v14, %v7046_v42  ;;  %8293 = vmatprep.subr.mxu1 %v8828_v8  ;;  %8295 = vmatprep.mubr.msk.f32.mxu1 %vm8837_vm1, %v8828_v8  ;;  %v6148_v28 = vmul.f32 %v8514_v57, %v10276_v39 }
 0xba0   : > { %v5168_v32 = vrot.slane %v7842_v26, %v9322_v60  ;;  %v5184_v11 = vrot.slane %v7844_v52, %v9322_v60  ;;  %v5200_v46 = vrot.slane %v7846_v7, %v9322_v60  ;;  %v5216_v24 = vrot.slane %v7848_v12, %v9322_v60 }
 0xba1   : > { %v7050_v17 = vadd.f32 %v7049_v19, %v7048_v25  ;;  %v6150_v36 = vmul.f32 %v8516_v41, %v10278_v23  ;;  %v7053_v29 = vsel %vm3528_vm3, %v6148_v28, 0.0 }
 0xba2   : > { %v5233_v30 = vcombine.low %v5168_v32, %v5184_v11  ;;  %v5265_v18 = vcombine.low %v5200_v46, %v5216_v24  ;;  %v5234_v51 = vcombine.high %v5168_v32, %v5184_v11  ;;  %v5266_v63 = vcombine.high %v5200_v46, %v5216_v24  ;;  %v7065_v32 = vld [vmem:[#allocation11 + $0x38] sm:$0xff]  ;;  %v7064_v11 = vld [vmem:[#allocation11 + $0x30] sm:$0xff] }
 0xba3   : > { %v7052_v15 = vadd.f32 %v7051_v44, %v7050_v17  ;;  %v7055_v5 = vsel %vm3528_vm3, %v6150_v36, 0.0 }
 0xba4   : > { %v5241_v39 = vrot.slane %v5233_v30, %v9325_v3  ;;  %v5273_v42 = vrot.slane %v5265_v18, %v9325_v3  ;;  %v5248_v33 = vrot.slane %v5234_v51, %v9325_v3  ;;  %v5280_v58 = vrot.slane %v5266_v63, %v9325_v3 }
 0xba5   : > { %v7054_v61 = vadd.f32 %v7053_v29, %v7052_v15 }
 0xba6   : > { %v5285_v56 = vcombine.low %v5241_v39, %v5273_v42  ;;  %v5286_v6 = vcombine.high %v5241_v39, %v5273_v42  ;;  %v5287_v23 = vcombine.low %v5248_v33, %v5280_v58  ;;  %v5288_v20 = vcombine.high %v5248_v33, %v5280_v58 }
 0xba7   : > { %v10353_v55 = vadd.f32 %v7055_v5, %v7054_v61  ;;  %v7062_v61 = vld [vmem:[#allocation11 + $0x20] sm:$0xff] }
 0xba8   : > { %8287 = vmatpush3.msra.mxu0 %v5285_v56  ;;  %8294 = vmatpush3.msra.mxu1 %v5286_v6 }
 0xba9   : > { %8289 = vmatmul.mubr.msk.f32.vlgmr.msra.gmra.mxu0 %vm3528_vm3, %v6144_v2  ;;  %8296 = vmatmul.mubr.msk.f32.vlgmr.msra.gmra.mxu1 %vm3528_vm3, %v6146_v62 }
 0xbaa   : > { %8298 = vmatprep.subr.mxu0 %v8828_v8  ;;  %8305 = vmatprep.subr.mxu1 %v8828_v8 }
 0xbab   : > { %8299 = vmatpush3.msra.mxu0 %v5423_v50  ;;  %8306 = vmatpush3.msra.mxu1 %v5424_v43 }
 0xbac   : > { %8300 = vmatprep.subr.mxu0 %v8828_v8  ;;  %8307 = vmatprep.subr.mxu1 %v8828_v8 }
 0xbad   : > { %8301 = vmatpush3.msra.mxu0 %v5287_v23  ;;  %8302 = vmatprep.mubr.msk.f32.mxu0 %vm8837_vm1, %v8828_v8  ;;  %v7061_v23 = vld [vmem:[#allocation11 + $0x18] sm:$0xff] }
 0xbae   : > { %8308 = vmatpush3.msra.mxu1 %v5288_v20  ;;  %8309 = vmatprep.mubr.msk.f32.mxu1 %vm8837_vm1, %v8828_v8 }
 0xbaf   : > { %8303 = vmatmul.mubr.msk.f32.vlgmr.msra.gmra.mxu0 %vm3528_vm3, %v6148_v28  ;;  %8310 = vmatmul.mubr.msk.f32.vlgmr.msra.gmra.mxu1 %vm3528_vm3, %v6150_v36  ;;  %v7063_v36 = vld [vmem:[#allocation11 + $0x28] sm:$0xff] }
 0xbb0   : > { %8312 = vmatprep.subr.mxu0 %v8828_v8  ;;  %8328 = vmatprep.mubr.msk.f32.mxu0 %vm8837_vm1, %v8828_v8 }
 0xbb1   : > { %7362 = vmatprep.mubr.f32.mxu1 %v8828_v8  ;;  %8313 = vmatpush3.msra.mxu0 %v7065_v32 }
 0xbb2   : > { %8314 = vmatprep.subr.mxu0 %v8828_v8 }
 0xbb3   : > { %8315 = vmatpush3.msra.mxu0 %v7064_v11 }
 0xbb4   : > { %8316 = vmatprep.subr.mxu0 %v8828_v8 }
 0xbb5   : > { %8317 = vmatpush3.msra.mxu0 %v7063_v36 }
 0xbb6   : > { %8318 = vmatprep.subr.mxu0 %v8828_v8 }
 0xbb7   : > { %8319 = vmatpush3.msra.mxu0 %v7062_v61 }
 0xbb8   : > { %8320 = vmatprep.subr.mxu0 %v8828_v8 }
 0xbb9   : > { %8321 = vmatpush3.msra.mxu0 %v7061_v23 }
 0xbba   : > { %8322 = vmatprep.subr.mxu0 %v8828_v8 }
 0xc40   : > { %v6220_v22 = vpop.f32.mrf.mxu0 }
 0xc42   : > { %v8262_v34 = vpop.f32.mrf.mxu0 }
 0xc47   : > { %v6366_v50 = vpop.f32.mrf.mxu0 }
 0xc48   : > { %v6293_v43 = vpop.f32.mrf.mxu1  ;;  %v6735_v4 = vcombine.low %v6220_v22, %v6366_v50  ;;  %v6736_v59 = vcombine.high %v6220_v22, %v6366_v50 }
 0xc49   : > { %v8276_v35 = vpop.f32.mrf.mxu0 }
 0xc4a   : > { %v8269_v48 = vpop.f32.mrf.mxu1  ;;  %v6743_v13 = vrot.slane %v6735_v4, %v9322_v60  ;;  %v6750_v31 = vrot.slane %v6736_v59, %v9322_v60 }
 0xc5d   : > { %v6439_v27 = vpop.f32.mrf.mxu1 }
 0xc5e   : > { %v6751_v47 = vcombine.low %v6293_v43, %v6439_v27  ;;  %v6752_v0 = vcombine.high %v6293_v43, %v6439_v27 }
 0xc5f   : > { %v8283_v16 = vpop.f32.mrf.mxu1 }
 0xc60   : > { %v6759_v21 = vrot.slane %v6751_v47, %v9322_v60  ;;  %v6766_v40 = vrot.slane %v6752_v0, %v9322_v60 }
 0xc62   : > { %v6799_v2 = vcombine.low %v6743_v13, %v6759_v21  ;;  %v6800_v10 = vcombine.high %v6743_v13, %v6759_v21  ;;  %v6815_v1 = vcombine.low %v6750_v31, %v6766_v40  ;;  %v6816_v53 = vcombine.high %v6750_v31, %v6766_v40 }
 0xc64   : > { %v6807_v54 = vrot.slane %v6799_v2, %v9325_v3  ;;  %v6814_v14 = vrot.slane %v6800_v10, %v9325_v3  ;;  %v6823_v62 = vrot.slane %v6815_v1, %v9325_v3  ;;  %v6830_v57 = vrot.slane %v6816_v53, %v9325_v3  ;;  %v7060_v1 = vld [vmem:[#allocation11 + $0x10] sm:$0xff]  ;;  %v7059_v53 = vld [vmem:[#allocation11 + $0x8] sm:$0xff] }
 0xc65   : > { %8323 = vmatpush3.msra.mxu0 %v7060_v1 }
 0xc66   : > { %v7890_v26 = vcombine.low %v6807_v54, %v6814_v14  ;;  %v7892_v52 = vcombine.high %v6807_v54, %v6814_v14  ;;  %v7894_v7 = vcombine.low %v6823_v62, %v6830_v57  ;;  %v7896_v12 = vcombine.high %v6823_v62, %v6830_v57  ;;  %8324 = vmatprep.subr.mxu0 %v8828_v8 }
 0xc67   : > { %8325 = vmatpush3.msra.mxu0 %v7059_v53  ;;  %v7282_v53 = vld [vmem:[%s10790_s19 + $0x78] sm:$0xff] }
 0xc68   : > { %v6879_v41 = vrot.slane %v7890_v26, %v9322_v60  ;;  %v6895_v25 = vrot.slane %v7892_v52, %v9322_v60  ;;  %v6911_v19 = vrot.slane %v7894_v7, %v9322_v60  ;;  %v6927_v28 = vrot.slane %v7896_v12, %v9322_v60  ;;  %8326 = vmatprep.subr.mxu0 %v8828_v8 }
 0xc69   : > { %v6512_v46 = vpop.f32.mrf.mxu0  ;;  %v6585_v24 = vpop.f32.mrf.mxu1  ;;  %7314 = vmatprep.subr.mxu1 %v7282_v53 }
 0xc6a   : > { %v6936_v17 = vcombine.high %v6879_v41, %v6895_v25  ;;  %v6968_v30 = vcombine.high %v6911_v19, %v6927_v28  ;;  %v6935_v18 = vcombine.low %v6879_v41, %v6895_v25  ;;  %v6967_v44 = vcombine.low %v6911_v19, %v6927_v28  ;;  %v7058_v41 = vld [vmem:[#allocation11] sm:$0xff] }
 0xc6b   : > { %v8290_v15 = vpop.f32.mrf.mxu0  ;;  %v8297_v51 = vpop.f32.mrf.mxu1  ;;  %8327 = vmatpush3.msra.mxu0 %v7058_v41  ;;  %v7277_v41 = vld [vmem:[%s10790_s19 + $0x50] sm:$0xff] }
 0xc6c   : > { %v6950_v63 = vrot.slane %v6936_v17, %v9325_v3  ;;  %v6982_v39 = vrot.slane %v6968_v30, %v9325_v3  ;;  %v10393_v42 = vrot.slane %v6935_v18, %v9325_v3  ;;  %v10396_v29 = vrot.slane %v6967_v44, %v9325_v3 }
 0xc6e   : > { %v7001_v56 = vcombine.low %v6950_v63, %v6982_v39  ;;  %v7000_v6 = vcombine.high %v10393_v42, %v10396_v29  ;;  %v6999_v5 = vcombine.low %v10393_v42, %v10396_v29  ;;  %v7002_v47 = vcombine.high %v6950_v63, %v6982_v39  ;;  %v7898_v42 = vld [vmem:[%s10787_s16] ss:$0 sm:$0xff] }
 0xc6f   : > { %v6658_v33 = vpop.f32.mrf.mxu0  ;;  %v6731_v58 = vpop.f32.mrf.mxu1 }
 0xc70   : > { %v6767_v20 = vcombine.low %v6512_v46, %v6658_v33  ;;  %v6768_v22 = vcombine.high %v6512_v46, %v6658_v33  ;;  %v6783_v34 = vcombine.low %v6585_v24, %v6731_v58  ;;  %v6784_v50 = vcombine.high %v6585_v24, %v6731_v58  ;;  %7012 = vrot.lane.b32.xlu1 %v7001_v56, %s8840_s27 }
 0xc71   : > { %v8304_v43 = vpop.f32.mrf.mxu0  ;;  %v8311_v35 = vpop.f32.mrf.mxu1  ;;  %7008 = vrot.lane.b32.xlu0 %v7000_v6, %s10893_s4 }
 0xc72   : > { %v6775_v48 = vrot.slane %v6767_v20, %v9322_v60  ;;  %v6782_v4 = vrot.slane %v6768_v22, %v9322_v60  ;;  %v6791_v59 = vrot.slane %v6783_v34, %v9322_v60  ;;  %v6798_v27 = vrot.slane %v6784_v50, %v9322_v60 }
 0xc74   : > { %v6831_v0 = vcombine.low %v6775_v48, %v6791_v59  ;;  %v6832_v16 = vcombine.high %v6775_v48, %v6791_v59  ;;  %v6847_v13 = vcombine.low %v6782_v4, %v6798_v27  ;;  %v6848_v31 = vcombine.high %v6782_v4, %v6798_v27 }
 0xc75   : > { %7016 = vrot.lane.b32.xlu0 %v7002_v47, %s10894_s18  ;;  %v3555_v27 = vmul.f32 0.125, %v9603_v45 }
 0xc76   : > { %v6839_v21 = vrot.slane %v6831_v0, %v9325_v3  ;;  %v6846_v40 = vrot.slane %v6832_v16, %v9325_v3  ;;  %v6855_v2 = vrot.slane %v6847_v13, %v9325_v3  ;;  %v6862_v10 = vrot.slane %v6848_v31, %v9325_v3 }
 0xc77   : > { %v3652_v47 = vrot.slane %v3555_v27, %v9322_v60  ;;  %v7057_v0 = vmul.f32 0.125, %v10353_v55 }
 0xc78   : > { %v7891_v54 = vcombine.low %v6839_v21, %v6846_v40  ;;  %v7893_v14 = vcombine.high %v6839_v21, %v6846_v40  ;;  %v7895_v62 = vcombine.low %v6855_v2, %v6862_v10  ;;  %v7897_v57 = vcombine.high %v6855_v2, %v6862_v10 }
 0xc79   : > { %v3660_v16 = vcombine.high %v3652_v47, %v8828_v8  ;;  %v10464_v21 = vrot.slane %v3652_v47, %v9325_v3  ;;  %v3645_v2 = vcombine.high %v3555_v27, %v8828_v8  ;;  %v7147_v1 = vcombine.high %v7057_v0, %v8828_v8 }
 0xc7a   : > { %v6886_v26 = vrot.slane %v7891_v54, %v9322_v60  ;;  %v6902_v52 = vrot.slane %v7893_v14, %v9322_v60  ;;  %v6918_v7 = vrot.slane %v7895_v62, %v9322_v60  ;;  %v6934_v12 = vrot.slane %v7897_v57, %v9322_v60  ;;  %v7281_v54 = vld [vmem:[%s10790_s19 + $0x70] sm:$0xff]  ;;  %v7280_v57 = vld [vmem:[%s10790_s19 + $0x68] sm:$0xff] }
 0xc7b   : > { %v3674_v13 = vrot.slane %v3660_v16, %v9325_v3  ;;  %v3690_v55 = vcombine.high %v10464_v21, %v8828_v8  ;;  %v3659_v62 = vrot.slane %v3645_v2, %v9322_v60  ;;  %7315 = vmatpush1.msra.mxu1 %v7281_v54 }
 0xc7c   : > { %v6951_v25 = vcombine.low %v6886_v26, %v6902_v52  ;;  %v6983_v19 = vcombine.low %v6918_v7, %v6934_v12  ;;  %v6952_v28 = vcombine.high %v6886_v26, %v6902_v52  ;;  %v6984_v32 = vcombine.high %v6918_v7, %v6934_v12  ;;  %v7279_v26 = vld [vmem:[%s10790_s19 + $0x60] sm:$0xff]  ;;  %7316 = vmatprep.subr.mxu1 %v7280_v57  ;;  %v7278_v12 = vld [vmem:[%s10790_s19 + $0x58] sm:$0xff] }
 0xc7d   : > { %v3691_v14 = vcombine.high %v3674_v13, %v8828_v8  ;;  %v7161_v7 = vrot.slane %v7147_v1, %v9322_v60  ;;  %7317 = vmatpush1.msra.mxu1 %v7279_v26 }
 0xc7e   : > { %v6959_v11 = vrot.slane %v6951_v25, %v9325_v3  ;;  %v6991_v46 = vrot.slane %v6983_v19, %v9325_v3  ;;  %v6966_v30 = vrot.slane %v6952_v28, %v9325_v3  ;;  %v6998_v18 = vrot.slane %v6984_v32, %v9325_v3  ;;  %7318 = vmatprep.subr.mxu1 %v7278_v12  ;;  %v7275_v19 = vld [vmem:[%s10790_s19 + $0x40] sm:$0xff]  ;;  %v7274_v32 = vld [vmem:[%s10790_s19 + $0x38] sm:$0xff] }
 0xc7f   : > { %v3682_v25 = vrot.slane %v3659_v62, %v9325_v3  ;;  %7319 = vmatpush1.msra.mxu1 %v7277_v41  ;;  %v7184_v28 = vrot.slane %v7161_v7, %v9325_v3  ;;  %v7901_v41 = vld [vmem:[%s10900_s22] ss:$0 sm:$0xff]  ;;  %s10904_s22 = sand.u32 1, %s9001_s7  }
 0xc80   : > { %v7004_v24 = vcombine.high %v6959_v11, %v6991_v46  ;;  %v7003_v17 = vcombine.low %v6959_v11, %v6991_v46  ;;  %v7006_v44 = vcombine.high %v6966_v30, %v6998_v18  ;;  %v7005_v36 = vcombine.low %v6966_v30, %v6998_v18  ;;  %v7273_v11 = vld [vmem:[%s10790_s19 + $0x30] sm:$0xff]  ;;  %v7271_v30 = vld [vmem:[%s10790_s19 + $0x20] sm:$0xff]  ;;  %s10693_s9 = scalar_lea.sflag [#allocation15], %s10904_s22 }
 0xc81   : > { %v3692_v46 = vcombine.high %v3682_v25, %v8828_v8  ;;  %v7194_v18 = vcombine.high %v7184_v28, %v8828_v8 }
 0xc82   : > { %7024 = vrot.lane.b32.xlu0 %v7004_v24, %s10895_s25  ;;  %7020 = vrot.lane.b32.xlu1 %v7003_v17, %s10896_s28  ;;  %v3675_v24 = vcombine.high %v3659_v62, %v8828_v8  ;;  %v7272_v17 = vld [vmem:[%s10790_s19 + $0x28] sm:$0xff] }
 0xc86   : > { %7032 = vrot.lane.b32.xlu0 %v7006_v44, %s10897_s24  ;;  %7028 = vrot.lane.b32.xlu1 %v7005_v36, %s10898_s17  ;;  %v7177_v44 = vcombine.high %v7161_v7, %v8828_v8  ;;  %v7270_v36 = vld [vmem:[%s10790_s19 + $0x18] sm:$0xff] }
 0xce2   : > { %v7013_v51 = vpop.permute.xlu1 %7012 }
 0xce3   : > { %v7009_v15 = vpop.permute.xlu0 %7008 }
 0xce4   : > { %v7035_v63 = vsel %vm1946_vm2, %v6999_v5, %v7009_v15  ;;  %v7269_v15 = vld [vmem:[%s10790_s19 + $0x10] sm:$0xff] }
 0xce5   : > { %v7036_v61 = vsel %vm3528_vm3, %v7035_v63, %v7013_v51  ;;  %v3689_v51 = vrot.slane %v3675_v24, %v9325_v3  ;;  %v7268_v63 = vld [vmem:[%s10790_s19 + $0x8] sm:$0xff] }
 0xce7   : > { %v7017_v39 = vpop.permute.xlu0 %7016 }
 0xce8   : > { %v7037_v56 = vsel %vm3530_vm4, %v7036_v61, %v7017_v39  ;;  %v7267_v39 = vld [vmem:[%s10790_s19] sm:$0xff]  ;;  %v7191_v61 = vrot.slane %v7177_v44, %v9325_v3  ;;  %v7406_v44 = vld [vmem:[%s10792_s21 + $0xd8] sm:$0xff] }
 0xcf4   : > { %v7021_v6 = vpop.permute.xlu1 %7020  ;;  %v7025_v33 = vpop.permute.xlu0 %7024 }
 0xcf5   : > { %v7038_v58 = vsel %vm3532_vm5, %v7037_v56, %v7021_v6  ;;  %v7410_v56 = vld [vmem:[%s10792_s21 + $0xf8] sm:$0xff]  ;;  %v3693_v6 = vcombine.high %v3689_v51, %v8828_v8 }
 0xcf6   : > { %v7039_v23 = vsel %vm3534_vm6, %v7038_v58, %v7025_v33  ;;  %8028 = vmatprep.subr.mxu0 %v7410_v56  ;;  %v7394_v33 = vld [vmem:[%s10792_s21 + $0x78] sm:$0xff]  ;;  %v7393_v58 = vld [vmem:[%s10792_s21 + $0x70] sm:$0xff]  ;;  %v7387_v56 = vld [vmem:[%s10792_s21 + $0x40] sm:$0xff] }
 0xcf8   : > { %v7029_v20 = vpop.permute.xlu1 %7028  ;;  %v7033_v22 = vpop.permute.xlu0 %7032 }
 0xcf9   : > { %v7040_v34 = vsel %vm3536_vm7, %v7039_v23, %v7029_v20  ;;  %v7408_v23 = vld [vmem:[%s10792_s21 + $0xe8] sm:$0xff] }
 0xcfa   : > { %v7041_v50 = vsel %vm3538_vm8, %v7040_v34, %v7033_v22  ;;  %v7392_v20 = vld [vmem:[%s10792_s21 + $0x68] sm:$0xff]  ;;  %v7195_v22 = vcombine.high %v7191_v61, %v8828_v8 }
 0xcfb   : > { %8329 = vmatmul.mubr.msk.f32.vlgmr.msra.gmra.mxu0 %vm910_vm0, %v7041_v50 }
 0xcfc   : > { %8029 = vmatpush3.msra.mxu0 %v7394_v33  ;;  %v7386_v33 = vld [vmem:[%s10792_s21 + $0x38] sm:$0xff] }
 0xdbb   : > { %v7142_v29 = vpop.f32.mrf.mxu0 }
 0xdbc   : > { %v7143_v5 = vadd.f32 %v7898_v42, %v7142_v29 }
 0xdbd   : > { %v8330_v43 = vpop.f32.mrf.mxu0 }
 0xdbe   : > { %v10446_v35 = vadd.f32 %v7143_v5, %v9721_v9  ;;  %v7154_v9 = vrot.slane %v7057_v0, %v9322_v60  ;;  %v7276_v60 = vld [vmem:[%s10790_s19 + $0x48] sm:$0xff] }
 0xdbf   : > { %7320 = vmatprep.subr.mxu1 %v7276_v60 }
 0xdc0   : > { %v7235_v48 = vsel %vm910_vm0, %v10446_v35, 0.0  ;;  %v7239_v4 = vmul.f32 %v10446_v35, %v10446_v35  ;;  %v10460_v31 = vrot.slane %v7154_v9, %v9325_v3  ;;  %v7162_v40 = vcombine.high %v7154_v9, %v8828_v8  ;;  %7321 = vmatpush1.msra.mxu1 %v7275_v19 }
 0xdc1   : > { %7236 = vadd.xlane.f32.xlu1 %v7235_v48  ;;  %7322 = vmatprep.subr.mxu1 %v7274_v32 }
 0xdc2   : > { %v7240_v59 = vsel %vm910_vm0, %v7239_v4, 0.0  ;;  %v7192_v45 = vcombine.high %v10460_v31, %v8828_v8  ;;  %v7176_v10 = vrot.slane %v7162_v40, %v9325_v3  ;;  %7323 = vmatpush1.msra.mxu1 %v7273_v11  ;;  %v7409_v3 = vld [vmem:[%s10792_s21 + $0xf0] sm:$0xff] }
 0xdc3   : > { %7241 = vadd.xlane.f32.xlu0 %v7240_v59  ;;  %7324 = vmatprep.subr.mxu1 %v7272_v17 }
 0xdc4   : > { %v7193_v52 = vcombine.high %v7176_v10, %v8828_v8  ;;  %7325 = vmatpush1.msra.mxu1 %v7271_v30  ;;  %8030 = vmatprep.subr.mxu0 %v7409_v3  ;;  %v7407_v30 = vld [vmem:[%s10792_s21 + $0xe0] sm:$0xff]  ;;  %v7401_v3 = vld [vmem:[%s10792_s21 + $0xb0] sm:$0xff] }
 0xdc5   : > { %7326 = vmatprep.subr.mxu1 %v7270_v36  ;;  %8031 = vmatpush3.msra.mxu0 %v7393_v58  ;;  %v7390_v36 = vld [vmem:[%s10792_s21 + $0x58] sm:$0xff]  ;;  %v7385_v58 = vld [vmem:[%s10792_s21 + $0x30] sm:$0xff] }
 0xdc6   : > { %7327 = vmatpush1.msra.mxu1 %v7269_v15  ;;  %8032 = vmatprep.subr.mxu0 %v7408_v23  ;;  %v7405_v15 = vld [vmem:[%s10792_s21 + $0xd0] sm:$0xff]  ;;  %v7400_v23 = vld [vmem:[%s10792_s21 + $0xa8] sm:$0xff] }
 0xdc7   : > { %7328 = vmatprep.subr.mxu1 %v7268_v63  ;;  %8033 = vmatpush3.msra.mxu0 %v7392_v20  ;;  %v7404_v63 = vld [vmem:[%s10792_s21 + $0xc8] sm:$0xff] }
 0xdc8   : > { %7329 = vmatpush1.msra.mxu1 %v7267_v39  ;;  %8034 = vmatprep.subr.mxu0 %v7407_v30  ;;  %v7388_v39 = vld [vmem:[%s10792_s21 + $0x48] sm:$0xff] }
 0xdc9   : > { %v7384_v20 = vld [vmem:[%s10792_s21 + $0x28] sm:$0xff] }
 0xdd2   : > { %3699 = vrot.lane.b32.xlu1 %v3674_v13, %s8840_s27 }
 0xdd6   : > { %7197 = vrot.lane.b32.xlu1 %v7192_v45, %s8840_s27  ;;  %s10902_s27 = sld [smem:[#allocation28_spill]] }
 0xdd9   : > { %3695 = vrot.lane.b32.xlu0 %v3690_v55, %s10893_s4  ;;  %s10899_s4 = sld [smem:[#allocation42_spill]] }
 0xdda   : > { %7201 = vrot.lane.b32.xlu1 %v7176_v10, %s10896_s28 }
 0xddc   : > { %p10905_p0 = scmp.ne.s32.totalorder %s10902_s27, 0 }
 0xddd   : > { %3703 = vrot.lane.b32.xlu0 %v3691_v14, %s10894_s18  ;;  %s10681_s18 = sshll.u32 %s908_s29, 4  ;;  %s7539_s18 = int_to_ptr.vmem [resolvable:$true] %s10681_s18 }
 0xdde   : > { %7205 = vrot.lane.b32.xlu1 %v7193_v52, %s10898_s17 }
 0xde1   : > { %3707 = vrot.lane.b32.xlu0 %v3682_v25, %s10896_s28  ;;  %s8847_s28 = smov [#allocation14]  }
 0xde2   : > { %7209 = vrot.lane.b32.xlu1 %v7184_v28, %s8836_s6 }
 0xde5   : > { %3711 = vrot.lane.b32.xlu0 %v3692_v46, %s10895_s25 }
 0xde6   : > { %7213 = vrot.lane.b32.xlu1 %v7194_v18, %s8834_s26  ;;  %s902_s26 = scalar_lea.vmem [#allocation14], %s9186_s30  ;;  %v7391_v18 = vld [vmem:[%s10792_s21 + $0x60] sm:$0xff] }
 0xde7   : > { %8035 = vmatpush3.msra.mxu0 %v7391_v18  ;;  %s7525_s25 = sshll.u32 %s902_s26, 4  ;;  %s7526_s25 = int_to_ptr.vmem [resolvable:$true] %s7525_s25 }
 0xde8   : > { %8036 = vmatprep.subr.mxu0 %v7406_v44  ;;  %s8686_s15 = scalar_lea.vmem %s7526_s25, 16 }
 0xde9   : > { %3715 = vrot.lane.b32.xlu0 %v3689_v51, %s10898_s17  ;;  %8037 = vmatpush3.msra.mxu0 %v7390_v36  ;;  %v7389_v51 = vld [vmem:[%s10792_s21 + $0x50] sm:$0xff]  ;;  %p8687_p13 = scmp.ne.s32.totalorder %s7526_s25, %s8686_s15 }
 0xdea   : > { %7217 = vrot.lane.b32.xlu1 %v7191_v61, %s8832_s23  ;;  %8038 = vmatprep.subr.mxu0 %v7405_v15  ;;  %v7403_v61 = vld [vmem:[%s10792_s21 + $0xc0] sm:$0xff]  ;;  %s10901_s23 = sld [smem:[#allocation44_spill]] }
 0xdeb   : > { %8039 = vmatpush3.msra.mxu0 %v7389_v51  ;;  %p8688_p7 = pnand %p8687_p13, %p10905_p0 }
 0xdec   : > { %8040 = vmatprep.subr.mxu0 %v7404_v63 }
 0xded   : > { %3719 = vrot.lane.b32.xlu0 %v3693_v6, %s10897_s24  ;;  %8041 = vmatpush3.msra.mxu0 %v7388_v39  ;;  %v7402_v6 = vld [vmem:[%s10792_s21 + $0xb8] sm:$0xff]  ;;  %p8689_p1 = pneg %p8688_p7 }
 0xdee   : > { %8042 = vmatprep.subr.mxu0 %v7403_v61 }
 0xdef   : > { %8043 = vmatpush3.msra.mxu0 %v7387_v56 }
 0xdf0   : > { %8044 = vmatprep.subr.mxu0 %v7402_v6 }
 0xdf1   : > { %7221 = vrot.lane.b32.xlu0 %v7195_v22, %s8831_s0  ;;  %8045 = vmatpush3.msra.mxu0 %v7386_v33  ;;  %v7399_v22 = vld [vmem:[%s10792_s21 + $0xa0] sm:$0xff] }
 0xdf2   : > { %8046 = vmatprep.subr.mxu0 %v7401_v3 }
 0xdf3   : > { %8047 = vmatpush3.msra.mxu0 %v7385_v58 }
 0xdf4   : > { %8048 = vmatprep.subr.mxu0 %v7400_v23 }
 0xdf5   : > { %8049 = vmatpush3.msra.mxu0 %v7384_v20 }
 0xdf6   : > { %8050 = vmatprep.subr.mxu0 %v7399_v22 }
 0xe4a   : > { %v7237_v34 = vpop.xlane.xlu1 %7236 }
 0xe4b   : > { %v7238_v50 = vmul.f32 0.015625, %v7237_v34  ;;  %v7383_v34 = vld [vmem:[%s10792_s21 + $0x20] sm:$0xff] }
 0xe4c   : > { %v7242_v42 = vpop.xlane.xlu0 %7241  ;;  %8051 = vmatpush3.msra.mxu0 %v7383_v34 }
 0xe4d   : > { %v7244_v29 = vmul.f32 %v7238_v50, %v7238_v50  ;;  %v7243_v5 = vmul.f32 0.015625, %v7242_v42  ;;  %v7249_v10 = vsub.f32 %v10446_v35, %v7238_v50  ;;  %v7398_v50 = vld [vmem:[%s10792_s21 + $0x98] sm:$0xff] }
 0xe4e   : > { %v3700_v43 = vpop.permute.xlu1 %3699  ;;  %v7382_v42 = vld [vmem:[%s10792_s21 + $0x18] sm:$0xff]  ;;  %8052 = vmatprep.subr.mxu0 %v7398_v50 }
 0xe4f   : > { %v7245_v48 = vsub.f32 %v7243_v5, %v7244_v29  ;;  %v7397_v29 = vld [vmem:[%s10792_s21 + $0x90] sm:$0xff]  ;;  %8053 = vmatpush3.msra.mxu0 %v7382_v42 }
 0xe50   : > { %v3696_v4 = vpop.permute.xlu0 %3695  ;;  %v7381_v5 = vld [vmem:[%s10792_s21 + $0x10] sm:$0xff]  ;;  %8054 = vmatprep.subr.mxu0 %v7397_v29 }
 0xe51   : > { %v7246_v59 = vmax.f32 %v7245_v48, 0.0  ;;  %v3722_v45 = vsel %vm1946_vm2, %v10464_v21, %v3696_v4  ;;  %v7900_v21 = vld [vmem:[%s10899_s4] ss:$0 sm:$0xff]  ;;  %v7380_v48 = vld [vmem:[%s10792_s21 + $0x8] sm:$0xff]  ;;  %8055 = vmatpush3.msra.mxu0 %v7381_v5  ;;  %s10903_s4 = sld [smem:[#allocation47_spill]] }
 0xe52   : > { %v7198_v27 = vpop.permute.xlu1 %7197  ;;  %v3723_v55 = vsel %vm3528_vm3, %v3722_v45, %v3700_v43  ;;  %v7396_v43 = vld [vmem:[%s10792_s21 + $0x88] sm:$0xff]  ;;  %v7395_v4 = vld [vmem:[%s10792_s21 + $0x80] sm:$0xff] }
 0xe53   : > { %v7247_v47 = vadd.f32 1e-05, %v7246_v59  ;;  %v7224_v54 = vsel %vm3528_vm3, %v10460_v31, %v7198_v27  ;;  %8056 = vmatprep.subr.mxu0 %v7396_v43  ;;  %v7379_v59 = vld [vmem:[%s10792_s21] sm:$0xff] }
 0xe54   : > { %v3704_v0 = vpop.permute.xlu0 %3703  ;;  %8057 = vmatpush3.msra.mxu0 %v7380_v48  ;;  %v7283_v27 = vld [vmem:[%s10901_s23] sm:$0x3] }
 0xe55   : > { %8517 = vrsqrt.f32 %v7247_v47  ;;  %v3724_v1 = vsel %vm3530_vm4, %v3723_v55, %v3704_v0  ;;  %8058 = vmatprep.subr.mxu0 %v7395_v4  ;;  %v7288_v47 = vrot.slane %v7283_v27, %v964_v38  ;;  %v7292_v0 = vrot.slane %v7283_v27, %v968_v49 }
 0xe56   : > { %v7202_v16 = vpop.permute.xlu1 %7201  ;;  %8059 = vmatpush3.msra.mxu0 %v7379_v59 }
 0xe57   : > { %v7225_v57 = vsel %vm3532_vm5, %v7224_v54, %v7202_v16  ;;  %s7523_s13 = scalar_lea.hbm %s10903_s4, %s7906_s8 }
 0xe58   : > { %v3708_v9 = vpop.permute.xlu0 %3707 }
 0xe59   : > { %v3725_v14 = vsel %vm3532_vm5, %v3724_v1, %v3708_v9 }
 0xe5a   : > { %v7206_v8 = vpop.permute.xlu1 %7205 }
 0xe5b   : > { %v7226_v7 = vsel %vm3536_vm7, %v7225_v57, %v7206_v8 }
 0xe5c   : > { %v3712_v13 = vpop.permute.xlu0 %3711 }
 0xe5d   : > { %v3726_v26 = vsel %vm3534_vm6, %v3725_v14, %v3712_v13 }
 0xe5e   : > { %v7210_v40 = vpop.permute.xlu1 %7209 }
 0xe5f   : > { %v7227_v25 = vsel %vm910_vm0, %v7226_v7, %v7210_v40 }
 0xe60   : > { %v3716_v2 = vpop.permute.xlu0 %3715 }
 0xe61   : > { %v3727_v31 = vsel %vm3536_vm7, %v3726_v26, %v3716_v2 }
 0xe62   : > { %v8518_v53 = vpop.eup %8517  ;;  %v7214_v62 = vpop.permute.xlu1 %7213 }
 0xe63   : > { %v7250_v52 = vmul.f32 %v8518_v53, %v7249_v10  ;;  %v7229_v28 = vsel %vm7228_vm9, %v7227_v25, %v7214_v62 }
 0xe64   : > { %v3720_v12 = vpop.permute.xlu0 %3719 }
 0xe65   : > { %v3728_v60 = vsel %vm3538_vm8, %v3727_v31, %v3720_v12  ;;  %v7258_v19 = vmul.f32 %v7900_v21, %v7250_v52 }
 0xe66   : > { %v7218_v32 = vpop.permute.xlu1 %7217  ;;  %3730 = vst.msk [vmem:[%s902_s26] sm:$0x1] %vm3729_vm10, %v3728_v60 }
 0xe67   : > { %v7231_v11 = vsel %vm7230_vm11, %v7229_v28, %v7218_v32  ;;  %v7266_v46 = vadd.f32 %v7901_v41, %v7258_v19 }
 0xe68   : > { %v7222_v24 = vpop.permute.xlu0 %7221 }
 0xe69   : > { %v7233_v17 = vsel %vm7232_vm12, %v7231_v11, %v7222_v24  ;;  %7902 = vmatmul.mubr.msk.f32.vlgmr.msra.gmra.mxu1 %vm910_vm0, %v7266_v46 }
 0xe6a   : > { %7234 = vst [vmem:[%s908_s29] sm:$0x1] %v7233_v17  ;;  %s8690_s29 = sshll.u32 %s8847_s28, 4  ;;  %s8691_s29 = int_to_ptr.vmem [resolvable:$false] %s8690_s29 }
 0xe6b   : > { %s8692_s1 = scalar_lea.vmem %s8691_s29, 32  ;;  %p8693_p3 = scmp.lt.s32.totalorder %s7526_s25, %s8691_s29 }
 0xe6c   : > { %p8694_p9 = scmp.lt.s32.totalorder %s8692_s1, %s8686_s15 }
 0xe6e   : > { %p8695_p11 = por %p8694_p9, %p8693_p3 }
 0xe70   : > { %p8696_p10 = pnand %p8695_p11, %p8689_p1 }
 0xf29   : > { %v7364_v16 = vpop.f32.mrf.mxu1 }
 0xf2a   : > { %v7365_v9 = vadd.f32 %v7364_v16, %v7288_v47 }
 0xf2b   : > { %v7366_v8 = vpop.f32.mrf.mxu1 }
 0xf2c   : > { %v7371_v13 = vmul.f32 0.70710677, %v7365_v9  ;;  %v7367_v45 = vadd.f32 %v7366_v8, %v7292_v0  ;;  %v7369_v49 = vmul.f32 0.5, %v7365_v9 }
 0xf2e   : > { %8519 = verf.f32 %v7371_v13  ;;  %v7372_v40 = vmul.f32 0.70710677, %v7367_v45  ;;  %v7370_v38 = vmul.f32 0.5, %v7367_v45 }
 0xf30   : > { %8521 = verf.f32 %v7372_v40 }
 0xf3b   : > { %v8520_v55 = vpop.eup %8519 }
 0xf3c   : > { %v7375_v10 = vadd.f32 1.0, %v8520_v55 }
 0xf3d   : > { %v8522_v2 = vpop.eup %8521 }
 0xf3e   : > { %v7376_v37 = vadd.f32 1.0, %v8522_v2  ;;  %v7377_v53 = vmul.f32 %v7375_v10, %v7369_v49 }
 0xf40   : > { %v7378_v1 = vmul.f32 %v7376_v37, %v7370_v38 }
 0xf42   : > { %7482 = vmatprep.mubr.f32.mxu0 %v7378_v1 }
 0xf43   : > { %7483 = vmatmul.mubr.f32.vlgmr.msra.gmra.mxu0 %v7377_v53 }
 0xf44   : > { %8699 = shalt.err (!%p8696_p10)
}
 0xf45   : > { %s8700_s6 = scalar_lea.hbm %s7523_s13, 16  ;;  %s8704_s23 = scalar_lea.hbm %s10903_s4, 32 }
 0xf46   : > { %p8701_p2 = scmp.ne.s32.totalorder %s7523_s13, %s8700_s6  ;;  %p8705_p4 = scmp.lt.s32.totalorder %s7523_s13, %s10903_s4 }
 0xf47   : > { %p8706_p12 = scmp.lt.s32.totalorder %s8704_s23, %s8700_s6 }
 0xf48   : > { %p8702_p5 = pnand %p8701_p2, %p10905_p0 }
 0xf49   : > { %p8707_p6 = por %p8706_p12, %p8705_p4 }
 0xf4a   : > { %p8703_p8 = pneg %p8702_p5 }
 0xf4c   : > { %p8708_p13 = pnand %p8707_p6, %p8703_p8 }
 0xf4e   : > { %8711 = shalt.err (!%p8708_p13)
}
 0xf4f   : > { %8350 = dma.vmem_to_hbm [thread:$0]  (%p10905_p0), %s7526_s25, 16, %s7523_s13, %s10693_s9  }
 0xf50   : > { %s10906_s28 = sld [smem:[#allocation48_spill]]  ;;  %s8712_s1 = scalar_lea.vmem %s7539_s18, 16 }
 0xf51   : > { %p8713_p7 = scmp.ne.s32.totalorder %s7539_s18, %s8712_s1  ;;  %s8848_s6 = smov [#allocation16]  }
 0xf52   : > { %s8716_s26 = sshll.u32 %s8848_s6, 4  ;;  %s8717_s26 = int_to_ptr.vmem [resolvable:$false] %s8716_s26 }
 0xf53   : > { %p8714_p1 = pnand %p8713_p7, %p10905_p0  ;;  %s8718_s17 = scalar_lea.vmem %s8717_s26, 32 }
 0xf54   : > { %p8719_p9 = scmp.lt.s32.totalorder %s7539_s18, %s8717_s26  ;;  %p8720_p11 = scmp.lt.s32.totalorder %s8718_s17, %s8712_s1 }
 0xf55   : > { %p8715_p3 = pneg %p8714_p1 }
 0xf56   : > { %s7536_s29 = scalar_lea.hbm %s10906_s28, %s7906_s8  ;;  %p8721_p10 = por %p8720_p11, %p8719_p9 }
 0xf58   : > { %p8722_p2 = pnand %p8721_p10, %p8715_p3 }
 0xf5a   : > { %8725 = shalt.err (!%p8722_p2)
}
 0xf5b   : > { %s8726_s13 = scalar_lea.hbm %s7536_s29, 16  ;;  %s8730_s23 = scalar_lea.hbm %s10906_s28, 32 }
 0xf5c   : > { %p8727_p5 = scmp.ne.s32.totalorder %s7536_s29, %s8726_s13  ;;  %p8731_p12 = scmp.lt.s32.totalorder %s7536_s29, %s10906_s28 }
 0xf5d   : > { %p8732_p6 = scmp.lt.s32.totalorder %s8730_s23, %s8726_s13 }
 0xf5e   : > { %p8728_p8 = pnand %p8727_p5, %p10905_p0 }
 0xf5f   : > { %p8733_p13 = por %p8732_p6, %p8731_p12 }
 0xf60   : > { %p8729_p4 = pneg %p8728_p8 }
 0xf62   : > { %p8734_p7 = pnand %p8733_p13, %p8729_p4 }
 0xf64   : > { %8737 = shalt.err (!%p8734_p7)
}
 0xf65   : > { %8351 = dma.vmem_to_hbm [thread:$0]  (%p10905_p0), %s7539_s18, 16, %s7536_s29, %s10693_s9  }
 0xf66   : > { %s10907_s1 = sld [smem:[#allocation45_spill]]  ;;  %s7905_s6 = sshll.u32 %s9001_s7, 7 }
 0xf67   : > { %s10908_s26 = sshll.u32 %s9186_s30, 3  ;;  %s10909_s23 = sld [smem:[#allocation46_spill]] }
 0xf68   : > { %s896_s17 = scalar_lea.vmem [#allocation13], %s10908_s26  ;;  %s7491_s18 = scalar_lea.sflag [#allocation4], %s9186_s30 }
 0xf69   : > { %s7512_s13 = sshll.u32 %s896_s17, 4  ;;  %s8849_s7 = smov [#allocation13]   ;;  %s7513_s13 = int_to_ptr.vmem [resolvable:$true] %s7512_s13 }
 0xf6a   : > { %s8738_s9 = scalar_lea.vmem %s7513_s13, 128  ;;  %s8742_s29 = sshll.u32 %s8849_s7, 4  ;;  %s8743_s29 = int_to_ptr.vmem [resolvable:$false] %s8742_s29 }
 0xf6b   : > { %p8739_p1 = scmp.ne.s32.totalorder %s7513_s13, %s8738_s9  ;;  %s8744_s24 = scalar_lea.vmem %s8743_s29, 256 }
 0xf6c   : > { %v7903_v14 = vld [vmem:[%s10907_s1] ss:$0 sm:$0xff]  ;;  %p8745_p11 = scmp.lt.s32.totalorder %s7513_s13, %s8743_s29  ;;  %p8746_p10 = scmp.lt.s32.totalorder %s8744_s24, %s8738_s9 }
 0xf6d   : > { %s7510_s0 = scalar_lea.hbm %s10909_s23, %s7905_s6  ;;  %p8740_p3 = pnand %p8739_p1, %p10905_p0 }
 0xf6e   : > { %p8747_p2 = por %p8746_p10, %p8745_p11 }
 0xf6f   : > { %p8741_p9 = pneg %p8740_p3 }
 0xf71   : > { %p8748_p5 = pnand %p8747_p2, %p8741_p9 }
0x1003   : > { %v8060_v54 = vpop.f32.mrf.mxu0 }
0x1005   : > { %v8061_v62 = vpop.f32.mrf.mxu0 }
0x1006   : > { %v8062_v21 = vadd.f32 %v8061_v62, %v8060_v54 }
0x1008   : > { %v7485_v57 = vadd.f32 %v8062_v21, %v7903_v14 }
0x100a   : > { %v7488_v26 = vadd.f32 %v7485_v57, %v10446_v35 }
0x100c   : > { %7489 = vst.msk [vmem:[%s896_s17] sm:$0xff] %vm910_vm0, %v7488_v26 }
0x100d   : > { %8751 = shalt.err (!%p8748_p5)
}
0x100e   : > { %s8752_s22 = scalar_lea.hbm %s7510_s0, 128  ;;  %s8756_s1 = scalar_lea.hbm %s10909_s23, 256 }
0x100f   : > { %p8753_p8 = scmp.ne.s32.totalorder %s7510_s0, %s8752_s22  ;;  %p8757_p6 = scmp.lt.s32.totalorder %s7510_s0, %s10909_s23 }
0x1010   : > { %p8758_p13 = scmp.lt.s32.totalorder %s8756_s1, %s8752_s22 }
0x1011   : > { %p8754_p4 = pnand %p8753_p8, %p10905_p0 }
0x1012   : > { %p8759_p7 = por %p8758_p13, %p8757_p6 }
0x1013   : > { %p8755_p12 = pneg %p8754_p4 }
0x1015   : > { %p8760_p1 = pnand %p8759_p7, %p8755_p12 }
0x1017   : > { %8763 = shalt.err (!%p8760_p1)
}
0x1018   : > { %8349 = dma.vmem_to_hbm [thread:$0]  (%p10905_p0), %s7513_s13, 128, %s7510_s0, %s7491_s18  }
0x1019 PF: > { %s10910_s17 = sld [smem:[#allocation23_spill]] }
0x101a   : > { %s10911_s8 = sld [smem:[#allocation29_spill]] }
0x101b   : > { %s10912_s25 = sld [smem:[#allocation25_spill]] }
0x101f   : > { %s7550_s9 = sand.u32 1, %s10910_s17  }
0x1020   : > { %p10913_p3 = scmp.ne.s32.totalorder %s10911_s8, 0  ;;  %s7551_s7 = scalar_lea.sflag [#allocation4], %s7550_s9 }
0x1021   : > { %p10914_p9 = scmp.ge.s32.totalorder %s10912_s25, 2 }
0x1023   : > { %p8376_p11 = pnand %p10914_p9, %p10913_p3 }
0x1025   : > { %p8377_p10 = pneg %p8376_p11 }
0x1027   : > { %8797 = dma.done.wait (%p8377_p10), %s7551_s7, 128  }
0x1028   : > { %8799 = vsyncadd (%p8377_p10), %s7551_s7, 4294967168  ;;  %s10915_s29 = sadd.s32 4294967294, %s10912_s25  }
0x1029   : > { %s7559_s24 = sand.u32 1, %s10915_s29  }
0x102a   : > { %s7560_s22 = scalar_lea.sflag [#allocation15], %s7559_s24 }
0x102b   : > { %8801 = dma.done.wait (%p8377_p10), %s7560_s22, 32  }
0x102c   : > { %8803 = vsyncadd (%p8377_p10), %s7560_s22, 4294967264  ;;  %s10916_s30 = sld [smem:[#allocation26_spill]]  ;;  %s10919_s29 = smov %s8810_s2 }
0x102d   : > { %s10917_s27 = sld [smem:[#allocation24_spill]] }
0x102e   : > { %s10918_s6 = sld [smem:[#allocation27_spill]] }
0x1032   : > { %p47_p0 = scmp.ge.s32.totalorder %s10916_s30, 4  }
0x1033   : > { %s10920_s2 = smov %s10917_s27 }
0x1034   :  { %49 = sbr.rel (!%p47_p0) target bundleno = 31 (0x1f), region = 225 }
0x1039   :  { %7572 = vsyncpa [#allocation3], 1 }
0x103a   :  { %7574 = vsyncpa [#allocation3 + $0x1], 1 }
0x103b   :  { %7575 = vsyncpa [#allocation6], 1 }
0x103c   :  { %7577 = vsyncpa [#allocation6 + $0x1], 1 }
0x103d   :  { %7578 = vsyncpa [#allocation9], 1 }
0x103e   :  { %7579 = vsyncpa [#allocation12], 1 }
0x103f   :  { %7580 = vsyncpa [#allocation4], 1 }
0x1040   :  { %7582 = vsyncpa [#allocation4 + $0x1], 1 }
0x1041   :  { %7583 = vsyncpa [#allocation15], 1 }
0x1042   :  { %7585 = vsyncpa [#allocation15 + $0x1], 1 }

</bundles_post_ra>
